<compile_context>
chip_gen: v7x
topology: tpu7x:2x2x1
jax: 0.10.0
libtpu: 0.0.40
codegen_flags: <defaults>
</compile_context>

<pallas_src>
import functools
import math

import jax
import jax.numpy as jnp
from jax import lax
from jax.experimental import pallas as pl
from jax.experimental.pallas import tpu as pltpu


# ---------------------------------------------------------------------------
# tiling helper
# ---------------------------------------------------------------------------
def _pick_tile(n, preferred):
    # Largest tile <= preferred that divides n; else fall back to full n.
    if n <= preferred or n % preferred == 0:
        return min(n, preferred)
    # TODO(synk): ragged N tiling (masked tail tile) for arbitrary H*W.
    return n


# ---------------------------------------------------------------------------
# Kernel 1: merged w1_conv (+folded BN) and node_conv == one batched matmul.
#   x (1, TN, Cin) @ Wcomb (Cin, 2C) + bcomb, then split into the two heads.
#   Outputs are bf16 (they are only consumed as bf16 MXU operands downstream).
# ---------------------------------------------------------------------------
def _w1_node_kernel(x_ref, w_ref, b_ref, wf_ref, nodes_ref, *, c):
    y = (
        jnp.dot(
            x_ref[0].astype(jnp.bfloat16),
            w_ref[...].astype(jnp.bfloat16),
            preferred_element_type=jnp.float32,
        )
        + b_ref[...]
    )                                                   # (TN, 2C) f32
    wf_ref[0] = y[:, :c].astype(jnp.bfloat16)
    nodes_ref[0] = y[:, c:].astype(jnp.bfloat16)


def w1_node_conv(x_flat, w_comb, b_comb, c, tn=256):
    B, N, Cin = x_flat.shape
    tn = _pick_tile(N, tn)
    grid = (B, N // tn)
    return pl.pallas_call(
        functools.partial(_w1_node_kernel, c=c),
        out_shape=(
            jax.ShapeDtypeStruct((B, N, c), jnp.bfloat16),
            jax.ShapeDtypeStruct((B, N, c), jnp.bfloat16),
        ),
        grid=grid,
        in_specs=[
            pl.BlockSpec((1, tn, Cin), lambda b, n: (b, n, 0)),
            pl.BlockSpec((Cin, 2 * c), lambda b, n: (0, 0)),
            pl.BlockSpec((1, 2 * c), lambda b, n: (0, 0)),
        ],
        out_specs=(
            pl.BlockSpec((1, tn, c), lambda b, n: (b, n, 0)),
            pl.BlockSpec((1, tn, c), lambda b, n: (b, n, 0)),
        ),
        compiler_params=pltpu.CompilerParams(
            dimension_semantics=("parallel", "parallel")
        ),
    )(x_flat, w_comb, b_comb)


# ---------------------------------------------------------------------------
# Kernel 2: fused sparse_hop + hop convs + fuse_conv + res_conv.
#   Per (batch, query-row tile):
#     a      = C^-1/2 * wf @ wf^T                (gram computed in-kernel)
#     b0     = (a >= logit(delta))               (== sigmoid(a) >= delta)
#     bh     = b0[rows]
#     acc    = x[rows] @ res_top + merged_bias   (residual path of res_conv)
#     for i in hops:
#        p   = softmax(bh * a[rows])
#        acc += (p @ nodes) @ M_i                (M_i = hop_wt_i@fuse_i@res_bot)
#        bh  = bh @ b0                           (f32 accumulation)
#     out[rows] = acc
#   bf16 MXU operands / f32 accumulation everywhere along the N dimension.
# ---------------------------------------------------------------------------
def _hop_fused_kernel(x_ref, wf_ref, nodes_ref, mh_ref, rtop_ref, bias_ref,
                      o_ref, *, hop, scale, logit_delta, tq):
    q = pl.program_id(1)
    row0 = pl.multiple_of(q * tq, tq)

    wf = wf_ref[0]                                  # (N, C)  bf16
    wf_q = wf_ref[0, pl.ds(row0, tq), :]            # (tq, C) bf16
    nodes = nodes_ref[0]                            # (N, C)  bf16

    dn = (((1,), (1,)), ((), ()))                   # contract last dims (A @ B^T)
    a_full = scale * lax.dot_general(
        wf, wf, dn, preferred_element_type=jnp.float32)       # (N, N)
    a_q = scale * lax.dot_general(
        wf_q, wf, dn, preferred_element_type=jnp.float32)     # (tq, N)

    # sigmoid(a) - delta >= 0  <=>  a >= logit(delta)
    b0 = (a_full >= logit_delta).astype(jnp.bfloat16)         # (N, N) 0/1 exact
    bh = (a_q >= logit_delta).astype(jnp.float32)             # (tq, N)

    # residual path of res_conv + fully merged bias (hop/fuse/res biases folded)
    acc = (
        jnp.dot(x_ref[0], rtop_ref[...], preferred_element_type=jnp.float32)
        + bias_ref[...]
    )                                                          # (tq, Cout)

    for i in range(hop):
        s = bh * a_q
        m = jnp.max(s, axis=-1, keepdims=True)
        e = jnp.exp(s - m)
        p = e * pl.reciprocal(jnp.sum(e, axis=-1, keepdims=True), approx=True)
        t = jnp.dot(p.astype(jnp.bfloat16), nodes,
                    preferred_element_type=jnp.float32)        # (tq, C)
        acc = acc + jnp.dot(t, mh_ref[i],
                            preferred_element_type=jnp.float32)  # (tq, Cout)
        if i != hop - 1:
            # bh holds integer path counts; inputs cast to bf16, accumulate f32.
            bh = jnp.dot(bh.astype(jnp.bfloat16), b0,
                         preferred_element_type=jnp.float32)

    o_ref[0] = acc


def hop_fused(x_flat, wfeat, nodes, mh, res_top, final_bias, *,
              hop, scale, logit_delta, tq=128):
    B, N, Cin = x_flat.shape
    C = wfeat.shape[2]
    Cout = res_top.shape[1]
    tq = _pick_tile(N, tq)
    grid = (B, N // tq)
    kernel = functools.partial(
        _hop_fused_kernel, hop=hop, scale=scale,
        logit_delta=logit_delta, tq=tq)
    return pl.pallas_call(
        kernel,
        out_shape=jax.ShapeDtypeStruct((B, N, Cout), jnp.float32),
        grid=grid,
        in_specs=[
            pl.BlockSpec((1, tq, Cin), lambda b, q: (b, q, 0)),
            pl.BlockSpec((1, N, C), lambda b, q: (b, 0, 0)),
            pl.BlockSpec((1, N, C), lambda b, q: (b, 0, 0)),
            pl.BlockSpec((hop, C, Cout), lambda b, q: (0, 0, 0)),
            pl.BlockSpec((Cin, Cout), lambda b, q: (0, 0)),
            pl.BlockSpec((1, Cout), lambda b, q: (0, 0)),
        ],
        out_specs=pl.BlockSpec((1, tq, Cout), lambda b, q: (b, q, 0)),
        compiler_params=pltpu.CompilerParams(
            dimension_semantics=("parallel", "parallel"),
            vmem_limit_bytes=48 * 1024 * 1024,
        ),
    )(x_flat, wfeat, nodes, mh, res_top, final_bias)


# ---------------------------------------------------------------------------
# Parameter construction (deterministic, synthetic).  Eval-mode BatchNorm is
# folded into the preceding 1x1 conv weights/bias.
# ---------------------------------------------------------------------------
def _fold_bn(w, b, gamma, beta, mean, var, eps=1e-5):
    s = gamma / jnp.sqrt(var + eps)
    return w * s[:, None], (b - mean) * s + beta


def init_params(key, in_ch, inter_ch, out_ch, hop, delta):
    ks = list(jax.random.split(key, 32))
    ki = iter(ks)

    def conv(cout, cin):
        w = 0.1 * jax.random.normal(next(ki), (cout, cin), jnp.float32)
        b = 0.05 * jax.random.normal(next(ki), (cout,), jnp.float32)
        return w, b

    def bn(c):
        gamma = 1.0 + 0.1 * jax.random.normal(next(ki), (c,), jnp.float32)
        beta = 0.05 * jax.random.normal(next(ki), (c,), jnp.float32)
        mean = 0.05 * jax.random.normal(next(ki), (c,), jnp.float32)
        var = 1.0 + 0.1 * jnp.abs(jax.random.normal(next(ki), (c,), jnp.float32))
        return gamma, beta, mean, var

    p = {}

    # w1_conv = Conv2d(in, inter, 1) + BN   (w2_conv is the SAME module)
    w, b = conv(inter_ch, in_ch)
    w, b = _fold_bn(w, b, *bn(inter_ch))
    p["w1_wt"], p["w1_b"] = w.T, b            # (Cin, C)

    # node_conv = Conv2d(in, inter, 1)
    w, b = conv(inter_ch, in_ch)
    p["node_wt"], p["node_b"] = w.T, b

    # sparse_hop: hop_conv[i] = Conv2d(inter, inter, 1)
    p["hop_wt"], p["hop_b"] = [], []
    for _ in range(hop):
        w, b = conv(inter_ch, inter_ch)
        p["hop_wt"].append(w.T)
        p["hop_b"].append(b)

    # fuse_conv = Conv2d(hop*inter, inter, 1) + BN
    w, b = conv(inter_ch, hop * inter_ch)
    w, b = _fold_bn(w, b, *bn(inter_ch))
    p["fuse_wt"], p["fuse_b"] = w.T, b        # (hop*C, C)

    # res_conv = Conv2d(in + inter, out, 1) + BN + Dropout2d(eval)
    w, b = conv(out_ch, in_ch + inter_ch)
    w, b = _fold_bn(w, b, *bn(out_ch))
    p["res_wt"], p["res_b"] = w.T, b          # (Cin + C, Cout)

    p["delta"] = float(delta)
    return p


def prepare_fused_params(p, hop):
    """Algebraically merge hop convs + fuse_conv + res_conv (exact rewrite).

      fuse(cat_i(t_i @ Wh_i + bh_i)) @ res_bot + x @ res_top + res_b
        = sum_i t_i @ (Wh_i @ F_i @ res_bot) + x @ res_top + merged_bias
    """
    cin = p["w1_wt"].shape[0]
    c = p["w1_wt"].shape[1]

    w_comb = jnp.concatenate([p["w1_wt"], p["node_wt"]], axis=1)       # (Cin, 2C)
    b_comb = jnp.concatenate([p["w1_b"], p["node_b"]]).reshape(1, 2 * c)

    res_top = p["res_wt"][:cin]                                        # (Cin, Cout)
    res_bot = p["res_wt"][cin:]                                        # (C, Cout)

    mh = []
    fuse_bias = p["fuse_b"]
    for i in range(hop):
        f_i = p["fuse_wt"][i * c:(i + 1) * c]                          # (C, C)
        mh.append(p["hop_wt"][i] @ f_i @ res_bot)                      # (C, Cout)
        fuse_bias = fuse_bias + p["hop_b"][i] @ f_i
    mh = jnp.stack(mh, axis=0)                                         # (hop, C, Cout)
    final_bias = (fuse_bias @ res_bot + p["res_b"]).reshape(1, -1)     # (1, Cout)

    return dict(w_comb=w_comb, b_comb=b_comb, mh=mh,
                res_top=res_top, final_bias=final_bias)


# ---------------------------------------------------------------------------
# HA_unit forward
# ---------------------------------------------------------------------------
def ha_unit_forward(x_nchw, fused, *, hop, logit_delta, tq=128, tn=256):
    B, Cin, H, W = x_nchw.shape
    N = H * W
    C = fused["mh"].shape[1]
    Cout = fused["mh"].shape[2]
    scale = float(C) ** (-0.5)

    x_flat = jnp.transpose(x_nchw.reshape(B, Cin, N), (0, 2, 1))       # (B, N, Cin)

    # shared w1/w2 features + node features in one pass over x
    wfeat, nodes = w1_node_conv(x_flat, fused["w_comb"], fused["b_comb"], C, tn)

    # gram + sparse-hop + hop convs + fuse_conv + res_conv, fully fused
    out_flat = hop_fused(
        x_flat, wfeat, nodes, fused["mh"], fused["res_top"], fused["final_bias"],
        hop=hop, scale=scale, logit_delta=logit_delta, tq=tq)          # (B, N, Cout)

    return jnp.transpose(out_flat, (0, 2, 1)).reshape(B, Cout, H, W)


# ---------------------------------------------------------------------------
if __name__ == "__main__":
    B = 2
    IN_CH = 32          # in_channels must equal inter_channels for res_conv
    INTER_CH = 32
    OUT_CH = IN_CH      # out_channels=None -> in_channels
    H = W = 16          # N = 256 -> 2 query-row tiles of 128
    HOP = 3
    DELTA = 0.5

    key = jax.random.PRNGKey(0)
    k_x, k_p = jax.random.split(key)
    x = jax.random.normal(k_x, (B, IN_CH, H, W), jnp.float32)

    params = init_params(k_p, IN_CH, INTER_CH, OUT_CH, HOP, DELTA)
    fused = prepare_fused_params(params, HOP)
    logit_delta = math.log(DELTA / (1.0 - DELTA))   # sigmoid(a)>=delta <=> a>=logit(delta)

    fwd = jax.jit(functools.partial(ha_unit_forward, hop=HOP, logit_delta=logit_delta))
    out = jax.block_until_ready(fwd(x, fused))

    assert out.shape == (B, OUT_CH, H, W), out.shape
    assert bool(jnp.all(jnp.isfinite(out)))
    print("KERNEL_OK")
</pallas_src>

<mosaic_0001>
module attributes {stable_mosaic.version = 11 : i64} {
  func.func @_w1_node_kernel(%arg0: i32, %arg1: i32, %arg2: memref<1x256x32xf32, #tpu.memory_space<vmem>>, %arg3: memref<32x64xf32, #tpu.memory_space<vmem>>, %arg4: memref<1x64xf32, #tpu.memory_space<vmem>>, %arg5: memref<1x256x32xbf16, #tpu.memory_space<vmem>>, %arg6: memref<1x256x32xbf16, #tpu.memory_space<vmem>>) attributes {dimension_semantics = [#tpu.dimension_semantics<parallel>, #tpu.dimension_semantics<parallel>], iteration_bounds = array<i64: 2, 1>, scalar_prefetch = 0 : i64, scratch_operands = 0 : i64, tpu.core_type = #tpu.core_type<tc>, window_params = [{transform_indices = @transform_0, window_bounds = array<i64: 1, 256, 32>}, {pipeline_mode = #tpu.pipeline_mode<synchronous>, transform_indices = @transform_1, window_bounds = array<i64: 32, 64>}, {pipeline_mode = #tpu.pipeline_mode<synchronous>, transform_indices = @transform_2, window_bounds = array<i64: 1, 64>}, {transform_indices = @transform_3, window_bounds = array<i64: 1, 256, 32>}, {transform_indices = @transform_4, window_bounds = array<i64: 1, 256, 32>}]} {
    %c0 = arith.constant 0 : index
    %c0_0 = arith.constant 0 : index
    %c0_1 = arith.constant 0 : index
    %0 = vector.load %arg2[%c0, %c0_0, %c0_1] : memref<1x256x32xf32, #tpu.memory_space<vmem>>, vector<1x256x32xf32>
    %1 = vector.shape_cast %0 : vector<1x256x32xf32> to vector<256x32xf32>
    %2 = arith.truncf %1 : vector<256x32xf32> to vector<256x32xbf16>
    %c0_2 = arith.constant 0 : index
    %c0_3 = arith.constant 0 : index
    %3 = vector.load %arg3[%c0_2, %c0_3] : memref<32x64xf32, #tpu.memory_space<vmem>>, vector<32x64xf32>
    %4 = arith.truncf %3 : vector<32x64xf32> to vector<32x64xbf16>
    %cst = arith.constant dense<0.000000e+00> : vector<256x64xf32>
    %5 = tpu.matmul %2, %4, %cst {dimension_numbers = #tpu.dot_dimension_numbers<[1], [0], [0], [1], [0, 0, 1, 1], [], []>} : vector<256x32xbf16>, vector<32x64xbf16>, vector<256x64xf32> -> vector<256x64xf32>
    %c0_4 = arith.constant 0 : index
    %c0_5 = arith.constant 0 : index
    %6 = vector.load %arg4[%c0_4, %c0_5] : memref<1x64xf32, #tpu.memory_space<vmem>>, vector<1x64xf32>
    %7 = vector.broadcast %6 : vector<1x64xf32> to vector<256x64xf32>
    %8 = arith.addf %5, %7 : vector<256x64xf32>
    %9 = vector.extract_strided_slice %8 {offsets = [0, 0], sizes = [256, 32], strides = [1, 1]} : vector<256x64xf32> to vector<256x32xf32>
    %10 = arith.truncf %9 : vector<256x32xf32> to vector<256x32xbf16>
    %c0_6 = arith.constant 0 : index
    %c0_7 = arith.constant 0 : index
    %c0_8 = arith.constant 0 : index
    %11 = vector.load %arg5[%c0_6, %c0_7, %c0_8] : memref<1x256x32xbf16, #tpu.memory_space<vmem>>, vector<1x256x32xbf16>
    %12 = vector.shape_cast %11 : vector<1x256x32xbf16> to vector<256x32xbf16>
    %13 = vector.shape_cast %10 : vector<256x32xbf16> to vector<1x256x32xbf16>
    tpu.vector_store %arg5[%c0_6, %c0_7, %c0_8], %13 {strides = array<i32>} : memref<1x256x32xbf16, #tpu.memory_space<vmem>>, vector<1x256x32xbf16>,
    %14 = vector.extract_strided_slice %8 {offsets = [0, 32], sizes = [256, 32], strides = [1, 1]} : vector<256x64xf32> to vector<256x32xf32>
    %15 = arith.truncf %14 : vector<256x32xf32> to vector<256x32xbf16>
    %c0_9 = arith.constant 0 : index
    %c0_10 = arith.constant 0 : index
    %c0_11 = arith.constant 0 : index
    %16 = vector.load %arg6[%c0_9, %c0_10, %c0_11] : memref<1x256x32xbf16, #tpu.memory_space<vmem>>, vector<1x256x32xbf16>
    %17 = vector.shape_cast %16 : vector<1x256x32xbf16> to vector<256x32xbf16>
    %18 = vector.shape_cast %15 : vector<256x32xbf16> to vector<1x256x32xbf16>
    tpu.vector_store %arg6[%c0_9, %c0_10, %c0_11], %18 {strides = array<i32>} : memref<1x256x32xbf16, #tpu.memory_space<vmem>>, vector<1x256x32xbf16>,
    return
  }
  func.func @transform_0(%arg0: i32, %arg1: i32) -> (i32, i32, i32) {
    %c0_i32 = arith.constant 0 : i32
    %c0_i32_0 = arith.constant 0 : i32
    return %arg0, %arg1, %c0_i32 : i32, i32, i32
  }
  func.func @transform_1(%arg0: i32, %arg1: i32) -> (i32, i32) {
    %c0_i32 = arith.constant 0 : i32
    %c0_i32_0 = arith.constant 0 : i32
    %c0_i32_1 = arith.constant 0 : i32
    return %c0_i32, %c0_i32_0 : i32, i32
  }
  func.func @transform_2(%arg0: i32, %arg1: i32) -> (i32, i32) {
    %c0_i32 = arith.constant 0 : i32
    %c0_i32_0 = arith.constant 0 : i32
    %c0_i32_1 = arith.constant 0 : i32
    return %c0_i32, %c0_i32_0 : i32, i32
  }
  func.func @transform_3(%arg0: i32, %arg1: i32) -> (i32, i32, i32) {
    %c0_i32 = arith.constant 0 : i32
    %c0_i32_0 = arith.constant 0 : i32
    return %arg0, %arg1, %c0_i32 : i32, i32, i32
  }
  func.func @transform_4(%arg0: i32, %arg1: i32) -> (i32, i32, i32) {
    %c0_i32 = arith.constant 0 : i32
    %c0_i32_0 = arith.constant 0 : i32
    return %arg0, %arg1, %c0_i32 : i32, i32, i32
  }
}

module attributes {stable_mosaic.version = 11 : i64} {
  func.func @_hop_fused_kernel(%arg0: i32, %arg1: i32, %arg2: memref<1x128x32xf32, #tpu.memory_space<vmem>>, %arg3: memref<1x256x32xbf16, #tpu.memory_space<vmem>>, %arg4: memref<1x256x32xbf16, #tpu.memory_space<vmem>>, %arg5: memref<3x32x32xf32, #tpu.memory_space<vmem>>, %arg6: memref<32x32xf32, #tpu.memory_space<vmem>>, %arg7: memref<1x32xf32, #tpu.memory_space<vmem>>, %arg8: memref<1x128x32xf32, #tpu.memory_space<vmem>>) attributes {dimension_semantics = [#tpu.dimension_semantics<parallel>, #tpu.dimension_semantics<parallel>], iteration_bounds = array<i64: 2, 2>, scalar_prefetch = 0 : i64, scratch_operands = 0 : i64, tpu.core_type = #tpu.core_type<tc>, window_params = [{transform_indices = @transform_0, window_bounds = array<i64: 1, 128, 32>}, {transform_indices = @transform_1, window_bounds = array<i64: 1, 256, 32>}, {transform_indices = @transform_2, window_bounds = array<i64: 1, 256, 32>}, {pipeline_mode = #tpu.pipeline_mode<synchronous>, transform_indices = @transform_3, window_bounds = array<i64: 3, 32, 32>}, {pipeline_mode = #tpu.pipeline_mode<synchronous>, transform_indices = @transform_4, window_bounds = array<i64: 32, 32>}, {pipeline_mode = #tpu.pipeline_mode<synchronous>, transform_indices = @transform_5, window_bounds = array<i64: 1, 32>}, {transform_indices = @transform_6, window_bounds = array<i64: 1, 128, 32>}]} {
    %c128_i32 = arith.constant 128 : i32
    %0 = arith.muli %arg1, %c128_i32 : i32
    %1 = tpu.assume_multiple %0, 128 : i32
    %c0 = arith.constant 0 : index
    %c0_0 = arith.constant 0 : index
    %c0_1 = arith.constant 0 : index
    %2 = vector.load %arg3[%c0, %c0_0, %c0_1] : memref<1x256x32xbf16, #tpu.memory_space<vmem>>, vector<1x256x32xbf16>
    %3 = vector.shape_cast %2 : vector<1x256x32xbf16> to vector<256x32xbf16>
    %c0_2 = arith.constant 0 : index
    %4 = arith.index_cast %1 : i32 to index
    %c0_3 = arith.constant 0 : index
    %5 = vector.load %arg3[%c0_2, %4, %c0_3] : memref<1x256x32xbf16, #tpu.memory_space<vmem>>, vector<1x128x32xbf16>
    %6 = vector.shape_cast %5 : vector<1x128x32xbf16> to vector<128x32xbf16>
    %c0_4 = arith.constant 0 : index
    %c0_5 = arith.constant 0 : index
    %c0_6 = arith.constant 0 : index
    %7 = vector.load %arg4[%c0_4, %c0_5, %c0_6] : memref<1x256x32xbf16, #tpu.memory_space<vmem>>, vector<1x256x32xbf16>
    %8 = vector.shape_cast %7 : vector<1x256x32xbf16> to vector<256x32xbf16>
    %cst = arith.constant dense<0.000000e+00> : vector<256x256xf32>
    %9 = tpu.matmul %3, %3, %cst {dimension_numbers = #tpu.dot_dimension_numbers<[1], [1], [0], [0], [0, 0, 1, 0], [], []>} : vector<256x32xbf16>, vector<256x32xbf16>, vector<256x256xf32> -> vector<256x256xf32>
    %cst_7 = arith.constant 0.176776692 : f32
    %10 = vector.broadcast %cst_7 : f32 to vector<256x256xf32>
    %11 = arith.mulf %10, %9 : vector<256x256xf32>
    %cst_8 = arith.constant dense<0.000000e+00> : vector<128x256xf32>
    %12 = tpu.matmul %6, %3, %cst_8 {dimension_numbers = #tpu.dot_dimension_numbers<[1], [1], [0], [0], [0, 0, 1, 0], [], []>} : vector<128x32xbf16>, vector<256x32xbf16>, vector<128x256xf32> -> vector<128x256xf32>
    %cst_9 = arith.constant 0.176776692 : f32
    %13 = vector.broadcast %cst_9 : f32 to vector<128x256xf32>
    %14 = arith.mulf %13, %12 : vector<128x256xf32>
    %cst_10 = arith.constant 0.000000e+00 : f32
    %15 = vector.broadcast %cst_10 : f32 to vector<256x256xf32>
    %16 = arith.cmpf oge, %11, %15 : vector<256x256xf32>
    %17 = arith.extui %16 : vector<256x256xi1> to vector<256x256xi32>
    %18 = arith.sitofp %17 : vector<256x256xi32> to vector<256x256xf32>
    %19 = arith.truncf %18 : vector<256x256xf32> to vector<256x256xbf16>
    %cst_11 = arith.constant 0.000000e+00 : f32
    %20 = vector.broadcast %cst_11 : f32 to vector<128x256xf32>
    %21 = arith.cmpf oge, %14, %20 : vector<128x256xf32>
    %22 = arith.extui %21 : vector<128x256xi1> to vector<128x256xi32>
    %23 = arith.sitofp %22 : vector<128x256xi32> to vector<128x256xf32>
    %c0_12 = arith.constant 0 : index
    %c0_13 = arith.constant 0 : index
    %c0_14 = arith.constant 0 : index
    %24 = vector.load %arg2[%c0_12, %c0_13, %c0_14] : memref<1x128x32xf32, #tpu.memory_space<vmem>>, vector<1x128x32xf32>
    %25 = vector.shape_cast %24 : vector<1x128x32xf32> to vector<128x32xf32>
    %c0_15 = arith.constant 0 : index
    %c0_16 = arith.constant 0 : index
    %26 = vector.load %arg6[%c0_15, %c0_16] : memref<32x32xf32, #tpu.memory_space<vmem>>, vector<32x32xf32>
    %cst_17 = arith.constant dense<0.000000e+00> : vector<128x32xf32>
    %27 = tpu.matmul %25, %26, %cst_17 {dimension_numbers = #tpu.dot_dimension_numbers<[1], [0], [0], [1], [0, 0, 1, 1], [], []>} : vector<128x32xf32>, vector<32x32xf32>, vector<128x32xf32> -> vector<128x32xf32>
    %c0_18 = arith.constant 0 : index
    %c0_19 = arith.constant 0 : index
    %28 = vector.load %arg7[%c0_18, %c0_19] : memref<1x32xf32, #tpu.memory_space<vmem>>, vector<1x32xf32>
    %29 = vector.broadcast %28 : vector<1x32xf32> to vector<128x32xf32>
    %30 = arith.addf %27, %29 : vector<128x32xf32>
    %31 = arith.mulf %23, %14 : vector<128x256xf32>
    %cst_20 = arith.constant dense<0xFF800000> : vector<128xf32>
    %32 = vector.multi_reduction <maximumf>, %31, %cst_20 [1] : vector<128x256xf32> to vector<128xf32>
    %33 = vector.shape_cast %32 : vector<128xf32> to vector<128x1xf32>
    %34 = vector.broadcast %33 : vector<128x1xf32> to vector<128x256xf32>
    %35 = arith.subf %31, %34 : vector<128x256xf32>
    %36 = math.exp %35 : vector<128x256xf32>
    %cst_21 = arith.constant dense<0.000000e+00> : vector<128xf32>
    %37 = vector.multi_reduction <add>, %36, %cst_21 [1] : vector<128x256xf32> to vector<128xf32>
    %38 = vector.shape_cast %37 : vector<128xf32> to vector<128x1xf32>
    %39 = tpu.reciprocal %38 {approx = true} : vector<128x1xf32> -> vector<128x1xf32>
    %40 = vector.broadcast %39 : vector<128x1xf32> to vector<128x256xf32>
    %41 = arith.mulf %36, %40 : vector<128x256xf32>
    %42 = arith.truncf %41 : vector<128x256xf32> to vector<128x256xbf16>
    %cst_22 = arith.constant dense<0.000000e+00> : vector<128x32xf32>
    %43 = tpu.matmul %42, %8, %cst_22 {dimension_numbers = #tpu.dot_dimension_numbers<[1], [0], [0], [1], [0, 0, 1, 1], [], []>} : vector<128x256xbf16>, vector<256x32xbf16>, vector<128x32xf32> -> vector<128x32xf32>
    %c0_23 = arith.constant 0 : index
    %c0_24 = arith.constant 0 : index
    %c0_25 = arith.constant 0 : index
    %44 = vector.load %arg5[%c0_23, %c0_24, %c0_25] : memref<3x32x32xf32, #tpu.memory_space<vmem>>, vector<1x32x32xf32>
    %45 = vector.shape_cast %44 : vector<1x32x32xf32> to vector<32x32xf32>
    %cst_26 = arith.constant dense<0.000000e+00> : vector<128x32xf32>
    %46 = tpu.matmul %43, %45, %cst_26 {dimension_numbers = #tpu.dot_dimension_numbers<[1], [0], [0], [1], [0, 0, 1, 1], [], []>} : vector<128x32xf32>, vector<32x32xf32>, vector<128x32xf32> -> vector<128x32xf32>
    %47 = arith.addf %30, %46 : vector<128x32xf32>
    %48 = arith.truncf %23 : vector<128x256xf32> to vector<128x256xbf16>
    %cst_27 = arith.constant dense<0.000000e+00> : vector<128x256xf32>
    %49 = tpu.matmul %48, %19, %cst_27 {dimension_numbers = #tpu.dot_dimension_numbers<[1], [0], [0], [1], [0, 0, 1, 1], [], []>} : vector<128x256xbf16>, vector<256x256xbf16>, vector<128x256xf32> -> vector<128x256xf32>
    %50 = arith.mulf %49, %14 : vector<128x256xf32>
    %cst_28 = arith.constant dense<0xFF800000> : vector<128xf32>
    %51 = vector.multi_reduction <maximumf>, %50, %cst_28 [1] : vector<128x256xf32> to vector<128xf32>
    %52 = vector.shape_cast %51 : vector<128xf32> to vector<128x1xf32>
    %53 = vector.broadcast %52 : vector<128x1xf32> to vector<128x256xf32>
    %54 = arith.subf %50, %53 : vector<128x256xf32>
    %55 = math.exp %54 : vector<128x256xf32>
    %cst_29 = arith.constant dense<0.000000e+00> : vector<128xf32>
    %56 = vector.multi_reduction <add>, %55, %cst_29 [1] : vector<128x256xf32> to vector<128xf32>
    %57 = vector.shape_cast %56 : vector<128xf32> to vector<128x1xf32>
    %58 = tpu.reciprocal %57 {approx = true} : vector<128x1xf32> -> vector<128x1xf32>
    %59 = vector.broadcast %58 : vector<128x1xf32> to vector<128x256xf32>
    %60 = arith.mulf %55, %59 : vector<128x256xf32>
    %61 = arith.truncf %60 : vector<128x256xf32> to vector<128x256xbf16>
    %cst_30 = arith.constant dense<0.000000e+00> : vector<128x32xf32>
    %62 = tpu.matmul %61, %8, %cst_30 {dimension_numbers = #tpu.dot_dimension_numbers<[1], [0], [0], [1], [0, 0, 1, 1], [], []>} : vector<128x256xbf16>, vector<256x32xbf16>, vector<128x32xf32> -> vector<128x32xf32>
    %c1 = arith.constant 1 : index
    %c0_31 = arith.constant 0 : index
    %c0_32 = arith.constant 0 : index
    %63 = vector.load %arg5[%c1, %c0_31, %c0_32] : memref<3x32x32xf32, #tpu.memory_space<vmem>>, vector<1x32x32xf32>
    %64 = vector.shape_cast %63 : vector<1x32x32xf32> to vector<32x32xf32>
    %cst_33 = arith.constant dense<0.000000e+00> : vector<128x32xf32>
    %65 = tpu.matmul %62, %64, %cst_33 {dimension_numbers = #tpu.dot_dimension_numbers<[1], [0], [0], [1], [0, 0, 1, 1], [], []>} : vector<128x32xf32>, vector<32x32xf32>, vector<128x32xf32> -> vector<128x32xf32>
    %66 = arith.addf %47, %65 : vector<128x32xf32>
    %67 = arith.truncf %49 : vector<128x256xf32> to vector<128x256xbf16>
    %cst_34 = arith.constant dense<0.000000e+00> : vector<128x256xf32>
    %68 = tpu.matmul %67, %19, %cst_34 {dimension_numbers = #tpu.dot_dimension_numbers<[1], [0], [0], [1], [0, 0, 1, 1], [], []>} : vector<128x256xbf16>, vector<256x256xbf16>, vector<128x256xf32> -> vector<128x256xf32>
    %69 = arith.mulf %68, %14 : vector<128x256xf32>
    %cst_35 = arith.constant dense<0xFF800000> : vector<128xf32>
    %70 = vector.multi_reduction <maximumf>, %69, %cst_35 [1] : vector<128x256xf32> to vector<128xf32>
    %71 = vector.shape_cast %70 : vector<128xf32> to vector<128x1xf32>
    %72 = vector.broadcast %71 : vector<128x1xf32> to vector<128x256xf32>
    %73 = arith.subf %69, %72 : vector<128x256xf32>
    %74 = math.exp %73 : vector<128x256xf32>
    %cst_36 = arith.constant dense<0.000000e+00> : vector<128xf32>
    %75 = vector.multi_reduction <add>, %74, %cst_36 [1] : vector<128x256xf32> to vector<128xf32>
    %76 = vector.shape_cast %75 : vector<128xf32> to vector<128x1xf32>
    %77 = tpu.reciprocal %76 {approx = true} : vector<128x1xf32> -> vector<128x1xf32>
    %78 = vector.broadcast %77 : vector<128x1xf32> to vector<128x256xf32>
    %79 = arith.mulf %74, %78 : vector<128x256xf32>
    %80 = arith.truncf %79 : vector<128x256xf32> to vector<128x256xbf16>
    %cst_37 = arith.constant dense<0.000000e+00> : vector<128x32xf32>
    %81 = tpu.matmul %80, %8, %cst_37 {dimension_numbers = #tpu.dot_dimension_numbers<[1], [0], [0], [1], [0, 0, 1, 1], [], []>} : vector<128x256xbf16>, vector<256x32xbf16>, vector<128x32xf32> -> vector<128x32xf32>
    %c2 = arith.constant 2 : index
    %c0_38 = arith.constant 0 : index
    %c0_39 = arith.constant 0 : index
    %82 = vector.load %arg5[%c2, %c0_38, %c0_39] : memref<3x32x32xf32, #tpu.memory_space<vmem>>, vector<1x32x32xf32>
    %83 = vector.shape_cast %82 : vector<1x32x32xf32> to vector<32x32xf32>
    %cst_40 = arith.constant dense<0.000000e+00> : vector<128x32xf32>
    %84 = tpu.matmul %81, %83, %cst_40 {dimension_numbers = #tpu.dot_dimension_numbers<[1], [0], [0], [1], [0, 0, 1, 1], [], []>} : vector<128x32xf32>, vector<32x32xf32>, vector<128x32xf32> -> vector<128x32xf32>
    %85 = arith.addf %66, %84 : vector<128x32xf32>
    %c0_41 = arith.constant 0 : index
    %c0_42 = arith.constant 0 : index
    %c0_43 = arith.constant 0 : index
    %86 = vector.load %arg8[%c0_41, %c0_42, %c0_43] : memref<1x128x32xf32, #tpu.memory_space<vmem>>, vector<1x128x32xf32>
    %87 = vector.shape_cast %86 : vector<1x128x32xf32> to vector<128x32xf32>
    %88 = vector.shape_cast %85 : vector<128x32xf32> to vector<1x128x32xf32>
    tpu.vector_store %arg8[%c0_41, %c0_42, %c0_43], %88 {strides = array<i32>} : memref<1x128x32xf32, #tpu.memory_space<vmem>>, vector<1x128x32xf32>,
    return
  }
  func.func @transform_0(%arg0: i32, %arg1: i32) -> (i32, i32, i32) {
    %c0_i32 = arith.constant 0 : i32
    %c0_i32_0 = arith.constant 0 : i32
    return %arg0, %arg1, %c0_i32 : i32, i32, i32
  }
  func.func @transform_1(%arg0: i32, %arg1: i32) -> (i32, i32, i32) {
    %c0_i32 = arith.constant 0 : i32
    %c0_i32_0 = arith.constant 0 : i32
    %c0_i32_1 = arith.constant 0 : i32
    return %arg0, %c0_i32, %c0_i32_0 : i32, i32, i32
  }
  func.func @transform_2(%arg0: i32, %arg1: i32) -> (i32, i32, i32) {
    %c0_i32 = arith.constant 0 : i32
    %c0_i32_0 = arith.constant 0 : i32
    %c0_i32_1 = arith.constant 0 : i32
    return %arg0, %c0_i32, %c0_i32_0 : i32, i32, i32
  }
  func.func @transform_3(%arg0: i32, %arg1: i32) -> (i32, i32, i32) {
    %c0_i32 = arith.constant 0 : i32
    %c0_i32_0 = arith.constant 0 : i32
    %c0_i32_1 = arith.constant 0 : i32
    %c0_i32_2 = arith.constant 0 : i32
    return %c0_i32, %c0_i32_0, %c0_i32_1 : i32, i32, i32
  }
  func.func @transform_4(%arg0: i32, %arg1: i32) -> (i32, i32) {
    %c0_i32 = arith.constant 0 : i32
    %c0_i32_0 = arith.constant 0 : i32
    %c0_i32_1 = arith.constant 0 : i32
    return %c0_i32, %c0_i32_0 : i32, i32
  }
  func.func @transform_5(%arg0: i32, %arg1: i32) -> (i32, i32) {
    %c0_i32 = arith.constant 0 : i32
    %c0_i32_0 = arith.constant 0 : i32
    %c0_i32_1 = arith.constant 0 : i32
    return %c0_i32, %c0_i32_0 : i32, i32
  }
  func.func @transform_6(%arg0: i32, %arg1: i32) -> (i32, i32, i32) {
    %c0_i32 = arith.constant 0 : i32
    %c0_i32_0 = arith.constant 0 : i32
    return %arg0, %arg1, %c0_i32 : i32, i32, i32
  }
}

</mosaic_0001>

<bundles_post_ra>
// kernel: ha_unit_forward.2
= control target key start
LH: loop header
LB: loop body
LE: loop exit
PB: predicated region body
PF: predicated region fallthrough
CT: control target
= control target key end

     0   :  { %10 = vsyncpa [#allocation3], 0  ;;  %s1814_s0 = inlined_call_operand.hbm [shape: f32[2,256,32], index: 0, kind: input, shape index: {}]   ;;  %s1815_s1 = inlined_call_operand.hbm [shape: f32[32,64], index: 1, kind: input, shape index: {}]   ;;  %s1816_s2 = inlined_call_operand.vmem [shape: f32[1,64], index: 2, kind: input, shape index: {}]   ;;  %s1817_s3 = inlined_call_operand.vmem [shape: bf16[2,256,32], index: 3, kind: output, shape index: {0}]   ;;  %s1818_s4 = inlined_call_operand.vmem [shape: bf16[2,256,32], index: 4, kind: output, shape index: {1}]  }
   0x1   :  { %12 = vsyncpa [#allocation3 + $0x1], 0 }
   0x2   :  { %13 = vsyncpa [#allocation5], 0  ;;  %s1373_s15 = smov 0   ;;  %s1375_s16 = smov 0  }
   0x3   :  { %s1377_s17 = smov 0   ;;  %s1379_s18 = smov 0  }
   0x4   :  { %s1381_s19 = smov 0   ;;  %s1383_s20 = smov 0  }
   0x5 LB: > { %s1001_s21 = sadd.s32 4294967295, %s1341_s20   ;;  %p53_p0 = scmp.ne.s32.totalorder %s1325_s16, %s1321_s15  ;;  %s1341_s20 = sphi %s1383_s20, %s19_s20   ;;  %s1337_s19 = sphi %s1381_s19, %s1835_s19   ;;  %s1333_s18 = sphi %s1379_s18, %s1834_s18   ;;  %s1329_s17 = sphi %s1377_s17, %s1833_s17   ;;  %s1325_s16 = sphi %s1375_s16, %s1832_s16   ;;  %s1321_s15 = sphi %s1373_s15, %s1831_s15  }
   0x6   : > { %p1403_p1 = scmp.eq.s32.totalorder %s1001_s21, 0  ;;  %p1003_p2 = scmp.ge.s32.totalorder %s1341_s20, 1 }
   0x7   : > { %p162_p3 = scmp.lt.s32.totalorder %s1341_s20, 3  ;;  %s1343_s25 = smov [#allocation4]  }
   0x8   : > { %s1823_s22 = scalar_select %p1403_p1, 1, 0 }
   0x9   : > { %p1411_p4 = por %p1403_p1, %p53_p0  ;;  %p1415_p5 = pnand %p1003_p2, %p162_p3 }
   0xa   : > { %s174_s26 = sshll.u32 %s1343_s25, 4  ;;  %s31_s28 = sadd.s32 1, %s1337_s19  ;;  %s175_s26 = int_to_ptr.vmem [resolvable:$true] %s174_s26 }
   0xb   : > { %s1824_s23 = scalar_select %p1411_p4, 1, 0 }
   0xc   : > { %s1825_s24 = scalar_select %p1415_p5, 1, 0 }
   0xd   : > { %p1166_p6 = pneg %p1415_p5  ;;  %s1229_s5 = scalar_lea.hbm %s1815_s1, 512 }
   0xe   : > { %p1230_p8 = scmp.ne.s32.totalorder %s1815_s1, %s1229_s5  ;;  %p1236_p12 = scmp.lt.u32.totalorder %s1229_s5, %s1815_s1 }
   0xf   : > { %p1423_p7 = pnand %p1166_p6, %p1403_p1 }
  0x11   : > { %p1231_p9 = pneg %p1423_p7 }
  0x13   : > { %p1232_p10 = pnand %p1231_p9, %p1230_p8 }
  0x15   : > { %p1233_p11 = pneg %p1232_p10 }
  0x17   : > { %p1238_p13 = pnand %p1236_p12, %p1233_p11 }
  0x19   : > { %1241 = shalt.err (!%p1238_p13)
}
  0x1a   : > { %s1242_s10 = scalar_lea.vmem %s175_s26, 512  ;;  %p1250_p6 = scmp.lt.s32.totalorder %s175_s26, %s175_s26 }
  0x1b   : > { %p1243_p0 = scmp.ne.s32.totalorder %s175_s26, %s1242_s10  ;;  %p1251_p1 = scmp.lt.s32.totalorder %s1242_s10, %s1242_s10 }
  0x1d   : > { %p1245_p2 = pnand %p1243_p0, %p1231_p9  ;;  %p1252_p4 = por %p1251_p1, %p1250_p6 }
  0x1f   : > { %p1246_p3 = pneg %p1245_p2 }
  0x21   : > { %p1253_p5 = pnand %p1252_p4, %p1246_p3 }
  0x23   : > { %1256 = shalt.err (!%p1253_p5)
}
  0x24   : > { %s1344_s11 = smov 128   ;;  %s1345_s12 = smov 8  }
  0x25   : > { %1169 = dma.hbm_to_vmem [thread:$0]  (!%p1423_p7), %s1815_s1, 512, %s175_s26, [#allocation5], %s1344_s11, %s1344_s11, %s1345_s12  }
  0x26   : > { %p33_p1 = scmp.ge.s32.totalorder %s31_s28, 2  ;;  %s40_s15 = sadd.s32 1, %s1329_s17 }
  0x27   : > { %p47_p4 = scmp.ne.s32.totalorder %s1329_s17, %s1325_s16  ;;  %p48_p5 = scmp.eq.s32.totalorder %s1341_s20, 0 }
  0x28   : > { %s1837_s28 = smov (%p33_p1, %s31_s28), 0  ;;  %p1175_p9 = scmp.lt.s32.totalorder %s1341_s20, 2 }
  0x29   : > { %p49_p8 = por %p48_p5, %p47_p4  ;;  %s35_s21 = ssub.s32 %s1337_s19, %s1837_s28 }
  0x2a   : > { %s191_s25 = sand.u32 1, %s1329_s17   ;;  %p38_p10 = scmp.eq.s32.totalorder %s35_s21, 0 }
  0x2b   : > { %s1006_s27 = sshll.u32 %s191_s25, 8  ;;  %s1067_s29 = sshll.u32 %s1337_s19, 12 }
  0x2c   : > { %s1459_s30 = scalar_select %p38_p10, %s1329_s17, %s40_s15  }
  0x2d   : > { %s1464_s26 = scalar_lea.hbm %s1814_s0, %s1067_s29  ;;  %s195_s7 = scalar_lea.vmem [#allocation2], %s1006_s27 }
  0x2e   : > { %s204_s8 = sshll.u32 %s195_s7, 4  ;;  %p1466_p7 = pnand %p1175_p9, %p49_p8  ;;  %s1470_s8 = int_to_ptr.vmem [resolvable:$true] %s204_s8 }
  0x2f   : > { %s1472_s10 = scalar_lea.sflag [#allocation3], %s191_s25  ;;  %s1257_s13 = scalar_lea.hbm %s1464_s26, 4096 }
  0x30   : > { %p1258_p11 = scmp.ne.s32.totalorder %s1464_s26, %s1257_s13  ;;  %p1259_p12 = pneg %p1466_p7 }
  0x31   : > { %s1262_s21 = scalar_lea.hbm %s1814_s0, 8192  ;;  %p1263_p2 = scmp.lt.u32.totalorder %s1464_s26, %s1814_s0 }
  0x32   : > { %p1260_p13 = pnand %p1259_p12, %p1258_p11  ;;  %p1264_p3 = scmp.lt.u32.totalorder %s1262_s21, %s1257_s13 }
  0x33   : > { %p1266_p1 = scmp.lt.u32.totalorder %s1257_s13, %s1464_s26 }
  0x34   : > { %p1261_p0 = pneg %p1260_p13  ;;  %p1265_p6 = por %p1264_p3, %p1263_p2 }
  0x36   : > { %p1267_p4 = por %p1266_p1, %p1265_p6 }
  0x38   : > { %p1268_p5 = pnand %p1267_p4, %p1261_p0 }
  0x3a   : > { %1271 = shalt.err (!%p1268_p5)
}
  0x3b   : > { %s1272_s25 = scalar_lea.vmem %s1470_s8, 4096  ;;  %s1346_s5 = smov [#allocation2]  }
  0x3c   : > { %p1273_p8 = scmp.ne.s32.totalorder %s1470_s8, %s1272_s25  ;;  %s1277_s6 = sshll.u32 %s1346_s5, 4  ;;  %s1278_s6 = int_to_ptr.vmem [resolvable:$false] %s1277_s6 }
  0x3d   : > { %s1279_s7 = scalar_lea.vmem %s1278_s6, 8192  ;;  %p1280_p11 = scmp.lt.s32.totalorder %s1470_s8, %s1278_s6 }
  0x3e   : > { %p1275_p9 = pnand %p1273_p8, %p1259_p12  ;;  %p1281_p13 = scmp.lt.s32.totalorder %s1279_s7, %s1272_s25 }
  0x40   : > { %p1276_p10 = pneg %p1275_p9  ;;  %p1282_p2 = por %p1281_p13, %p1280_p11 }
  0x42   : > { %p1283_p3 = pnand %p1282_p2, %p1276_p10 }
  0x44   : > { %1286 = shalt.err (!%p1283_p3)
}
  0x45   : > { %1173 = dma.hbm_to_vmem [thread:$0]  (!%p1466_p7), %s1464_s26, 4096, %s1470_s8, %s1472_s10, %s1344_s11, %s1344_s11, %s1345_s12  }
  0x46   : > { %p1828_p12 = scmp.ne.s32.totalorder %s1825_s24, 0 }
  0x47   : > { %s218_s13 = sand.u32 (!%p1828_p12), 1, %s1325_s16   ;;  %p1829_p0 = scmp.ne.s32.totalorder (!%p1828_p12), %s1824_s23, 0 }
  0x48   : > { %216 = sbr.rel (%p1828_p12) target bundleno = 486 (0x1e6), region = 32  ;;  %s1010_s14 = sshll.u32 (!%p1828_p12), %s218_s13, 8 }
  0x49   : > { %s219_s15 = scalar_lea.sflag (!%p1828_p12), [#allocation3], %s218_s13  ;;  %s1506_s21 = scalar_lea.vmem (!%p1828_p12), [#allocation2], %s1010_s14 }
  0x4f   : > { %1312 = dma.done.wait (%p1829_p0), %s219_s15, 4096  }
  0x50   : > { %1314 = vsyncadd (%p1829_p0), %s219_s15, 4294963200  ;;  %p1830_p6 = scmp.ne.s32.totalorder %s1823_s22, 0 }
  0x52   : > { %1316 = dma.done.wait (%p1830_p6), [#allocation5], 512  }
  0x53   : > { %1318 = vsyncadd (%p1830_p6), [#allocation5], 4294966784  ;;  %v334_v0 = vld [vmem:[#allocation4] sm:$0xff]  ;;  %v335_v1 = vld [vmem:[#allocation4 + $0x8] sm:$0xff]  ;;  %vm347_vm0 = vcmask 261120   ;;  %p266_p7 = scmp.lt.s32.totalorder %s1333_s18, 1 }
  0x54   : > { %v336_v2 = vld [vmem:[#allocation4 + $0x10] sm:$0xff]  ;;  %v338_v3 = vpack.c.bf16 %v335_v1, %v334_v0  ;;  %v337_v4 = vld [vmem:[#allocation4 + $0x18] sm:$0xff]  ;;  %v286_v5 = vld [vmem:[%s1506_s21] sm:$0xff]  ;;  %vm685_vm1 = vcmask 257024   ;;  %s1347_s8 = smov 96  }
  0x55   : > { %v287_v6 = vld [vmem:[%s1506_s21 + $0x8] sm:$0xff]  ;;  %v339_v7 = vpack.c.bf16 %v337_v4, %v336_v2  ;;  %v302_v9 = vld [vmem:[%s1506_s21 + $0x80] sm:$0xff]  ;;  %v288_v12 = vld [vmem:[%s1506_s21 + $0x10] sm:$0xff]  ;;  %s1839_s18 = smov (!%p266_p7, %s1333_s18), 1 }
  0x56   : > { %v318_v8 = vpack.c.bf16 %v287_v6, %v286_v5  ;;  %v303_v10 = vld [vmem:[%s1506_s21 + $0x88] sm:$0xff]  ;;  %1120 = vmatprep.subr.bf16.mxu0 %v338_v3  ;;  %1156 = vmatprep.subr.bf16.mxu1 %v338_v3  ;;  %v289_v13 = vld [vmem:[%s1506_s21 + $0x18] sm:$0xff]  ;;  %v304_v14 = vld [vmem:[%s1506_s21 + $0x90] sm:$0xff]  ;;  %s1068_s24 = sshll.u32 %s1839_s18, 7 }
  0x57   : > { %v326_v11 = vpack.c.bf16 %v303_v10, %v302_v9  ;;  %1121 = vmatpush3.bf16.msra.mxu0 %v338_v3  ;;  %1158 = vmatpush3.bf16.msra.mxu1 %v338_v3  ;;  %v305_v15 = vld [vmem:[%s1506_s21 + $0x98] sm:$0xff]  ;;  %v290_v16 = vld [vmem:[%s1506_s21 + $0x20] sm:$0xff]  ;;  %v291_v17 = vld [vmem:[%s1506_s21 + $0x28] sm:$0xff]  ;;  %v319_v20 = vpack.c.bf16 %v289_v13, %v288_v12  ;;  %s1581_s26 = scalar_lea.vmem %s1817_s3, %s1068_s24  ;;  %s1730_s27 = scalar_lea.vmem %s1818_s4, %s1068_s24 }
  0x58   : > { %1122 = vmatprep.subr.bf16.mxu0 %v339_v7  ;;  %1157 = vmatprep.subr.bf16.mxu1 %v339_v7  ;;  %v306_v18 = vld [vmem:[%s1506_s21 + $0xa0] sm:$0xff]  ;;  %v307_v19 = vld [vmem:[%s1506_s21 + $0xa8] sm:$0xff]  ;;  %v327_v21 = vpack.c.bf16 %v305_v15, %v304_v14  ;;  %v320_v22 = vpack.c.bf16 %v291_v17, %v290_v16  ;;  %v292_v24 = vld [vmem:[%s1506_s21 + $0x30] sm:$0xff] }
  0x59   : > { %1124 = vmatprep.mubr.msk.bf16.mxu0 %vm347_vm0, %v318_v8  ;;  %1140 = vmatprep.mubr.msk.bf16.mxu1 %vm347_vm0, %v326_v11  ;;  %v328_v23 = vpack.c.bf16 %v307_v19, %v306_v18  ;;  %v293_v25 = vld [vmem:[%s1506_s21 + $0x38] sm:$0xff]  ;;  %v308_v26 = vld [vmem:[%s1506_s21 + $0xb0] sm:$0xff]  ;;  %v294_v28 = vld [vmem:[%s1506_s21 + $0x40] sm:$0xff] }
  0x5a   : > { %v309_v27 = vld [vmem:[%s1506_s21 + $0xb8] sm:$0xff]  ;;  %v295_v29 = vld [vmem:[%s1506_s21 + $0x48] sm:$0xff]  ;;  %v310_v30 = vld [vmem:[%s1506_s21 + $0xc0] sm:$0xff]  ;;  %v321_v32 = vpack.c.bf16 %v293_v25, %v292_v24 }
  0x5b   : > { %1123 = vmatpush3.bf16.msra.mxu0 %v339_v7  ;;  %1159 = vmatpush3.bf16.msra.mxu1 %v339_v7  ;;  %v311_v31 = vld [vmem:[%s1506_s21 + $0xc8] sm:$0xff]  ;;  %v329_v33 = vpack.c.bf16 %v309_v27, %v308_v26  ;;  %v322_v34 = vpack.c.bf16 %v295_v29, %v294_v28  ;;  %v296_v36 = vld [vmem:[%s1506_s21 + $0x50] sm:$0xff]  ;;  %v297_v37 = vld [vmem:[%s1506_s21 + $0x58] sm:$0xff] }
  0x5c   : > { %v330_v35 = vpack.c.bf16 %v311_v31, %v310_v30  ;;  %v312_v38 = vld [vmem:[%s1506_s21 + $0xd0] sm:$0xff]  ;;  %v313_v39 = vld [vmem:[%s1506_s21 + $0xd8] sm:$0xff]  ;;  %v298_v40 = vld [vmem:[%s1506_s21 + $0x60] sm:$0xff]  ;;  %v323_v44 = vpack.c.bf16 %v297_v37, %v296_v36 }
  0x5d   : > { %v299_v41 = vld [vmem:[%s1506_s21 + $0x68] sm:$0xff]  ;;  %v314_v42 = vld [vmem:[%s1506_s21 + $0xe0] sm:$0xff]  ;;  %v331_v45 = vpack.c.bf16 %v313_v39, %v312_v38  ;;  %v300_v48 = vld [vmem:[%s1506_s21 + $0x70] sm:$0xff] }
  0x5e   : > { %1125 = vmatmul.mubr.msk.bf16.vlgmr.msra.gmra.mrb[0].mxu0 %vm347_vm0, %v319_v20  ;;  %1141 = vmatmul.mubr.msk.bf16.vlgmr.msra.gmra.mrb[0].mxu1 %vm347_vm0, %v327_v21  ;;  %v315_v43 = vld [vmem:[%s1506_s21 + $0xe8] sm:$0xff]  ;;  %v324_v46 = vpack.c.bf16 %v299_v41, %v298_v40  ;;  %v301_v49 = vld [vmem:[%s1506_s21 + $0x78] sm:$0xff]  ;;  %v316_v50 = vld [vmem:[%s1506_s21 + $0xf0] sm:$0xff] }
  0x5f   : > { %1128 = vmatprep.mubr.msk.bf16.mxu0 %vm347_vm0, %v320_v22  ;;  %1144 = vmatprep.mubr.msk.bf16.mxu1 %vm347_vm0, %v328_v23  ;;  %v332_v47 = vpack.c.bf16 %v315_v43, %v314_v42  ;;  %v317_v51 = vld [vmem:[%s1506_s21 + $0xf8] sm:$0xff]  ;;  %v325_v52 = vpack.c.bf16 %v301_v49, %v300_v48  ;;  %v1571_v54 = vld [vmem:[%s1816_s2] ss:$0 sm:$0xff] }
  0x60   : > { %v333_v53 = vpack.c.bf16 %v317_v51, %v316_v50 }
  0x66   : > { %1129 = vmatmul.mubr.msk.bf16.gmra.mrb[4].mxu0 %vm347_vm0, %v321_v32  ;;  %1145 = vmatmul.mubr.msk.bf16.gmra.mrb[4].mxu1 %vm347_vm0, %v329_v33 }
  0x67   : > { %1132 = vmatprep.mubr.msk.bf16.mxu0 %vm347_vm0, %v322_v34  ;;  %1148 = vmatprep.mubr.msk.bf16.mxu1 %vm347_vm0, %v330_v35 }
  0x6e   : > { %1133 = vmatmul.mubr.msk.bf16.gmra.mrb[8].mxu0 %vm347_vm0, %v323_v44  ;;  %1149 = vmatmul.mubr.msk.bf16.gmra.mrb[8].mxu1 %vm347_vm0, %v331_v45 }
  0x6f   : > { %1136 = vmatprep.mubr.msk.bf16.mxu0 %vm347_vm0, %v324_v46  ;;  %1152 = vmatprep.mubr.msk.bf16.mxu1 %vm347_vm0, %v332_v47 }
  0x76   : > { %1137 = vmatmul.mubr.msk.bf16.gmra.mrb[12].mxu0 %vm347_vm0, %v325_v52  ;;  %1153 = vmatmul.mubr.msk.bf16.gmra.mrb[12].mxu1 %vm347_vm0, %v333_v53 }
 0x131   : > { %v1126_v55 = vpop.f32.mrb[0].mxu0  ;;  %v1142_v56 = vpop.f32.mrb[0].mxu1 }
 0x132   : > { %v439_v57 = vadd.f32 %v1126_v55, %v1571_v54  ;;  %v503_v58 = vadd.f32 %v1142_v56, %v1571_v54  ;;  %v430_v59 = vpop.f32.mrb[1].mxu0  ;;  %v494_v60 = vpop.f32.mrb[1].mxu1 }
 0x133   : > { %v431_v61 = vadd.f32 %v1571_v54, %v430_v59  ;;  %v495_v62 = vadd.f32 %v1571_v54, %v494_v60  ;;  %v1127_v63 = vpop.f32.mrb[2].mxu0  ;;  %v1143_v0 = vpop.f32.mrb[2].mxu1 }
 0x134   : > { %v1072_v1 = vpack.c.bf16 %v439_v57, %v439_v57  ;;  %v1088_v2 = vpack.c.bf16 %v503_v58, %v503_v58  ;;  %v442_v3 = vadd.f32 %v1127_v63, %v1571_v54  ;;  %v506_v4 = vadd.f32 %v1143_v0, %v1571_v54  ;;  %v433_v5 = vpop.f32.mrb[3].mxu0  ;;  %v497_v6 = vpop.f32.mrb[3].mxu1 }
 0x135   : > { %v1070_v7 = vpack.c.bf16 %v431_v61, %v431_v61  ;;  %v1086_v8 = vpack.c.bf16 %v495_v62, %v495_v62  ;;  %v434_v9 = vadd.f32 %v1571_v54, %v433_v5  ;;  %v498_v10 = vadd.f32 %v1571_v54, %v497_v6 }
 0x136   : > { %688 = vst.msk [vmem:[%s1581_s26 + $0x8] sm:$0xf] %vm685_vm1, %v1072_v1  ;;  %704 = vst.msk [vmem:[%s1581_s26 + $0x48] sm:$0xf] %vm685_vm1, %v1088_v2  ;;  %v1073_v11 = vpack.c.bf16 %v442_v3, %v442_v3  ;;  %v1089_v12 = vpack.c.bf16 %v506_v4, %v506_v4  ;;  %754 = vrot.lane.b32.xlu0 %v1088_v2, %s1347_s8  ;;  %722 = vrot.lane.b32.xlu1 %v1072_v1, %s1347_s8 }
 0x137   : > { %686 = vst.msk [vmem:[%s1581_s26] sm:$0xf] %vm685_vm1, %v1070_v7  ;;  %702 = vst.msk [vmem:[%s1581_s26 + $0x40] sm:$0xf] %vm685_vm1, %v1086_v8  ;;  %v1071_v13 = vpack.c.bf16 %v434_v9, %v434_v9  ;;  %v1087_v14 = vpack.c.bf16 %v498_v10, %v498_v10 }
 0x138   : > { %689 = vst.msk [vmem:[%s1581_s26 + $0xc] sm:$0xf] %vm685_vm1, %v1073_v11  ;;  %705 = vst.msk [vmem:[%s1581_s26 + $0x4c] sm:$0xf] %vm685_vm1, %v1089_v12 }
 0x139   : > { %687 = vst.msk [vmem:[%s1581_s26 + $0x4] sm:$0xf] %vm685_vm1, %v1071_v13  ;;  %703 = vst.msk [vmem:[%s1581_s26 + $0x44] sm:$0xf] %vm685_vm1, %v1087_v14  ;;  %v1130_v15 = vpop.f32.mrb[4].mxu0  ;;  %v1146_v16 = vpop.f32.mrb[4].mxu1 }
 0x13a   : > { %724 = vrot.lane.b32.xlu1 %v1073_v11, %s1347_s8  ;;  %718 = vrot.lane.b32.xlu0 %v1070_v7, %s1347_s8  ;;  %v455_v17 = vadd.f32 %v1130_v15, %v1571_v54  ;;  %v446_v18 = vpop.f32.mrb[5].mxu0  ;;  %v519_v19 = vadd.f32 %v1146_v16, %v1571_v54  ;;  %v510_v20 = vpop.f32.mrb[5].mxu1 }
 0x13b   : > { %v447_v21 = vadd.f32 %v1571_v54, %v446_v18  ;;  %v1131_v22 = vpop.f32.mrb[6].mxu0  ;;  %v511_v23 = vadd.f32 %v1571_v54, %v510_v20  ;;  %v1147_v24 = vpop.f32.mrb[6].mxu1 }
 0x13c   : > { %v1076_v25 = vpack.c.bf16 %v455_v17, %v455_v17  ;;  %v458_v26 = vadd.f32 %v1131_v22, %v1571_v54  ;;  %v449_v27 = vpop.f32.mrb[7].mxu0  ;;  %v1092_v28 = vpack.c.bf16 %v519_v19, %v519_v19  ;;  %v522_v29 = vadd.f32 %v1147_v24, %v1571_v54  ;;  %v513_v30 = vpop.f32.mrb[7].mxu1 }
 0x13d   : > { %v1615_v31 = vpack.c.bf16 %v447_v21, %v447_v21  ;;  %v450_v32 = vadd.f32 %v1571_v54, %v449_v27  ;;  %v1618_v33 = vpack.c.bf16 %v511_v23, %v511_v23  ;;  %v514_v34 = vadd.f32 %v1571_v54, %v513_v30 }
 0x13e   : > { %692 = vst.msk [vmem:[%s1581_s26 + $0x18] sm:$0xf] %vm685_vm1, %v1076_v25  ;;  %756 = vrot.lane.b32.xlu1 %v1089_v12, %s1347_s8  ;;  %v1077_v35 = vpack.c.bf16 %v458_v26, %v458_v26  ;;  %750 = vrot.lane.b32.xlu0 %v1086_v8, %s1347_s8  ;;  %708 = vst.msk [vmem:[%s1581_s26 + $0x58] sm:$0xf] %vm685_vm1, %v1092_v28  ;;  %v1093_v36 = vpack.c.bf16 %v522_v29, %v522_v29 }
 0x13f   : > { %690 = vst.msk [vmem:[%s1581_s26 + $0x10] sm:$0xf] %vm685_vm1, %v1615_v31  ;;  %v1630_v37 = vpack.c.bf16 %v450_v32, %v450_v32  ;;  %706 = vst.msk [vmem:[%s1581_s26 + $0x50] sm:$0xf] %vm685_vm1, %v1618_v33  ;;  %v1635_v38 = vpack.c.bf16 %v514_v34, %v514_v34 }
 0x140   : > { %693 = vst.msk [vmem:[%s1581_s26 + $0x1c] sm:$0xf] %vm685_vm1, %v1077_v35  ;;  %709 = vst.msk [vmem:[%s1581_s26 + $0x5c] sm:$0xf] %vm685_vm1, %v1093_v36 }
 0x141   : > { %691 = vst.msk [vmem:[%s1581_s26 + $0x14] sm:$0xf] %vm685_vm1, %v1630_v37  ;;  %707 = vst.msk [vmem:[%s1581_s26 + $0x54] sm:$0xf] %vm685_vm1, %v1635_v38  ;;  %v1134_v39 = vpop.f32.mrb[8].mxu0  ;;  %v1150_v40 = vpop.f32.mrb[8].mxu1 }
 0x142   : > { %752 = vrot.lane.b32.xlu1 %v1087_v14, %s1347_s8  ;;  %720 = vrot.lane.b32.xlu0 %v1071_v13, %s1347_s8  ;;  %v471_v41 = vadd.f32 %v1134_v39, %v1571_v54  ;;  %v462_v42 = vpop.f32.mrb[9].mxu0  ;;  %v535_v43 = vadd.f32 %v1150_v40, %v1571_v54  ;;  %v526_v44 = vpop.f32.mrb[9].mxu1 }
 0x143   : > { %v463_v45 = vadd.f32 %v1571_v54, %v462_v42  ;;  %v1135_v46 = vpop.f32.mrb[10].mxu0  ;;  %v527_v47 = vadd.f32 %v1571_v54, %v526_v44  ;;  %v1151_v48 = vpop.f32.mrb[10].mxu1 }
 0x144   : > { %v1080_v49 = vpack.c.bf16 %v471_v41, %v471_v41  ;;  %v474_v50 = vadd.f32 %v1135_v46, %v1571_v54  ;;  %v465_v51 = vpop.f32.mrb[11].mxu0  ;;  %v1096_v52 = vpack.c.bf16 %v535_v43, %v535_v43  ;;  %v538_v53 = vadd.f32 %v1151_v48, %v1571_v54  ;;  %v529_v55 = vpop.f32.mrb[11].mxu1 }
 0x145   : > { %v1078_v56 = vpack.c.bf16 %v463_v45, %v463_v45  ;;  %v466_v57 = vadd.f32 %v1571_v54, %v465_v51  ;;  %v1094_v58 = vpack.c.bf16 %v527_v47, %v527_v47  ;;  %v530_v59 = vadd.f32 %v1571_v54, %v529_v55 }
 0x146   : > { %732 = vrot.lane.b32.xlu1 %v1077_v35, %s1347_s8  ;;  %730 = vrot.lane.b32.xlu0 %v1076_v25, %s1347_s8  ;;  %696 = vst.msk [vmem:[%s1581_s26 + $0x28] sm:$0xf] %vm685_vm1, %v1080_v49  ;;  %v1081_v60 = vpack.c.bf16 %v474_v50, %v474_v50  ;;  %712 = vst.msk [vmem:[%s1581_s26 + $0x68] sm:$0xf] %vm685_vm1, %v1096_v52  ;;  %v1097_v61 = vpack.c.bf16 %v538_v53, %v538_v53 }
 0x147   : > { %694 = vst.msk [vmem:[%s1581_s26 + $0x20] sm:$0xf] %vm685_vm1, %v1078_v56  ;;  %v1079_v62 = vpack.c.bf16 %v466_v57, %v466_v57  ;;  %710 = vst.msk [vmem:[%s1581_s26 + $0x60] sm:$0xf] %vm685_vm1, %v1094_v58  ;;  %v1095_v63 = vpack.c.bf16 %v530_v59, %v530_v59 }
 0x148   : > { %697 = vst.msk [vmem:[%s1581_s26 + $0x2c] sm:$0xf] %vm685_vm1, %v1081_v60  ;;  %713 = vst.msk [vmem:[%s1581_s26 + $0x6c] sm:$0xf] %vm685_vm1, %v1097_v61 }
 0x149   : > { %695 = vst.msk [vmem:[%s1581_s26 + $0x24] sm:$0xf] %vm685_vm1, %v1079_v62  ;;  %711 = vst.msk [vmem:[%s1581_s26 + $0x64] sm:$0xf] %vm685_vm1, %v1095_v63  ;;  %v1138_v0 = vpop.f32.mrb[12].mxu0  ;;  %v1154_v1 = vpop.f32.mrb[12].mxu1 }
 0x14a   : > { %764 = vrot.lane.b32.xlu1 %v1093_v36, %s1347_s8  ;;  %762 = vrot.lane.b32.xlu0 %v1092_v28, %s1347_s8  ;;  %v487_v2 = vadd.f32 %v1138_v0, %v1571_v54  ;;  %v478_v3 = vpop.f32.mrb[13].mxu0  ;;  %v551_v4 = vadd.f32 %v1154_v1, %v1571_v54  ;;  %v542_v5 = vpop.f32.mrb[13].mxu1 }
 0x14b   : > { %v479_v6 = vadd.f32 %v1571_v54, %v478_v3  ;;  %v1139_v7 = vpop.f32.mrb[14].mxu0  ;;  %v543_v8 = vadd.f32 %v1571_v54, %v542_v5  ;;  %v1155_v9 = vpop.f32.mrb[14].mxu1 }
 0x14c   : > { %v1084_v10 = vpack.c.bf16 %v487_v2, %v487_v2  ;;  %v490_v11 = vadd.f32 %v1139_v7, %v1571_v54  ;;  %v481_v12 = vpop.f32.mrb[15].mxu0  ;;  %v1100_v13 = vpack.c.bf16 %v551_v4, %v551_v4  ;;  %v554_v14 = vadd.f32 %v1155_v9, %v1571_v54  ;;  %v545_v15 = vpop.f32.mrb[15].mxu1 }
 0x14d   : > { %v1082_v16 = vpack.c.bf16 %v479_v6, %v479_v6  ;;  %v482_v17 = vadd.f32 %v1571_v54, %v481_v12  ;;  %v1098_v18 = vpack.c.bf16 %v543_v8, %v543_v8  ;;  %v546_v19 = vadd.f32 %v1571_v54, %v545_v15 }
 0x14e   : > { %728 = vrot.lane.b32.xlu1 %v1630_v37, %s1347_s8  ;;  %726 = vrot.lane.b32.xlu0 %v1615_v31, %s1347_s8  ;;  %700 = vst.msk [vmem:[%s1581_s26 + $0x38] sm:$0xf] %vm685_vm1, %v1084_v10  ;;  %v1085_v20 = vpack.c.bf16 %v490_v11, %v490_v11  ;;  %716 = vst.msk [vmem:[%s1581_s26 + $0x78] sm:$0xf] %vm685_vm1, %v1100_v13  ;;  %v1101_v21 = vpack.c.bf16 %v554_v14, %v554_v14 }
 0x14f   : > { %698 = vst.msk [vmem:[%s1581_s26 + $0x30] sm:$0xf] %vm685_vm1, %v1082_v16  ;;  %v1083_v22 = vpack.c.bf16 %v482_v17, %v482_v17  ;;  %714 = vst.msk [vmem:[%s1581_s26 + $0x70] sm:$0xf] %vm685_vm1, %v1098_v18  ;;  %v1099_v23 = vpack.c.bf16 %v546_v19, %v546_v19 }
 0x150   : > { %701 = vst.msk [vmem:[%s1581_s26 + $0x3c] sm:$0xf] %vm685_vm1, %v1085_v20  ;;  %717 = vst.msk [vmem:[%s1581_s26 + $0x7c] sm:$0xf] %vm685_vm1, %v1101_v21 }
 0x151   : > { %699 = vst.msk [vmem:[%s1581_s26 + $0x34] sm:$0xf] %vm685_vm1, %v1083_v22  ;;  %715 = vst.msk [vmem:[%s1581_s26 + $0x74] sm:$0xf] %vm685_vm1, %v1099_v23 }
 0x152   : > { %760 = vrot.lane.b32.xlu1 %v1635_v38, %s1347_s8  ;;  %758 = vrot.lane.b32.xlu0 %v1618_v33, %s1347_s8 }
 0x156   : > { %740 = vrot.lane.b32.xlu1 %v1081_v60, %s1347_s8  ;;  %738 = vrot.lane.b32.xlu0 %v1080_v49, %s1347_s8 }
 0x15a   : > { %772 = vrot.lane.b32.xlu1 %v1097_v61, %s1347_s8  ;;  %770 = vrot.lane.b32.xlu0 %v1096_v52, %s1347_s8 }
 0x15e   : > { %736 = vrot.lane.b32.xlu1 %v1079_v62, %s1347_s8  ;;  %734 = vrot.lane.b32.xlu0 %v1078_v56, %s1347_s8 }
 0x162   : > { %768 = vrot.lane.b32.xlu1 %v1095_v63, %s1347_s8  ;;  %766 = vrot.lane.b32.xlu0 %v1094_v58, %s1347_s8 }
 0x166   : > { %748 = vrot.lane.b32.xlu1 %v1085_v20, %s1347_s8  ;;  %746 = vrot.lane.b32.xlu0 %v1084_v10, %s1347_s8 }
 0x16a   : > { %744 = vrot.lane.b32.xlu1 %v1083_v22, %s1347_s8  ;;  %742 = vrot.lane.b32.xlu0 %v1082_v16, %s1347_s8 }
 0x16e   : > { %776 = vrot.lane.b32.xlu1 %v1099_v23, %s1347_s8  ;;  %774 = vrot.lane.b32.xlu0 %v1098_v18, %s1347_s8 }
 0x172   : > { %780 = vrot.lane.b32.xlu1 %v1101_v21, %s1347_s8  ;;  %778 = vrot.lane.b32.xlu0 %v1100_v13, %s1347_s8 }
 0x1a8   : > { %v755_v54 = vpop.permute.xlu0 %754  ;;  %v723_v24 = vpop.permute.xlu1 %722 }
 0x1a9   : > { %832 = vst.msk [vmem:[%s1730_s27 + $0x48] sm:$0xf] %vm685_vm1, %v755_v54  ;;  %816 = vst.msk [vmem:[%s1730_s27 + $0x8] sm:$0xf] %vm685_vm1, %v723_v24 }
 0x1ac   : > { %v725_v25 = vpop.permute.xlu1 %724  ;;  %v719_v26 = vpop.permute.xlu0 %718 }
 0x1ad   : > { %817 = vst.msk [vmem:[%s1730_s27 + $0xc] sm:$0xf] %vm685_vm1, %v725_v25  ;;  %814 = vst.msk [vmem:[%s1730_s27] sm:$0xf] %vm685_vm1, %v719_v26 }
 0x1b0   : > { %v757_v27 = vpop.permute.xlu1 %756  ;;  %v751_v28 = vpop.permute.xlu0 %750 }
 0x1b1   : > { %833 = vst.msk [vmem:[%s1730_s27 + $0x4c] sm:$0xf] %vm685_vm1, %v757_v27  ;;  %830 = vst.msk [vmem:[%s1730_s27 + $0x40] sm:$0xf] %vm685_vm1, %v751_v28 }
 0x1b4   : > { %v753_v29 = vpop.permute.xlu1 %752  ;;  %v721_v30 = vpop.permute.xlu0 %720 }
 0x1b5   : > { %831 = vst.msk [vmem:[%s1730_s27 + $0x44] sm:$0xf] %vm685_vm1, %v753_v29  ;;  %815 = vst.msk [vmem:[%s1730_s27 + $0x4] sm:$0xf] %vm685_vm1, %v721_v30 }
 0x1b8   : > { %v733_v31 = vpop.permute.xlu1 %732  ;;  %v731_v32 = vpop.permute.xlu0 %730 }
 0x1b9   : > { %821 = vst.msk [vmem:[%s1730_s27 + $0x1c] sm:$0xf] %vm685_vm1, %v733_v31  ;;  %820 = vst.msk [vmem:[%s1730_s27 + $0x18] sm:$0xf] %vm685_vm1, %v731_v32 }
 0x1bc   : > { %v765_v33 = vpop.permute.xlu1 %764  ;;  %v763_v34 = vpop.permute.xlu0 %762 }
 0x1bd   : > { %837 = vst.msk [vmem:[%s1730_s27 + $0x5c] sm:$0xf] %vm685_vm1, %v765_v33  ;;  %836 = vst.msk [vmem:[%s1730_s27 + $0x58] sm:$0xf] %vm685_vm1, %v763_v34 }
 0x1c0   : > { %v729_v35 = vpop.permute.xlu1 %728  ;;  %v727_v36 = vpop.permute.xlu0 %726 }
 0x1c1   : > { %819 = vst.msk [vmem:[%s1730_s27 + $0x14] sm:$0xf] %vm685_vm1, %v729_v35  ;;  %818 = vst.msk [vmem:[%s1730_s27 + $0x10] sm:$0xf] %vm685_vm1, %v727_v36 }
 0x1c4   : > { %v761_v37 = vpop.permute.xlu1 %760  ;;  %v759_v38 = vpop.permute.xlu0 %758 }
 0x1c5   : > { %835 = vst.msk [vmem:[%s1730_s27 + $0x54] sm:$0xf] %vm685_vm1, %v761_v37  ;;  %834 = vst.msk [vmem:[%s1730_s27 + $0x50] sm:$0xf] %vm685_vm1, %v759_v38 }
 0x1c8   : > { %v741_v39 = vpop.permute.xlu1 %740  ;;  %v739_v40 = vpop.permute.xlu0 %738 }
 0x1c9   : > { %825 = vst.msk [vmem:[%s1730_s27 + $0x2c] sm:$0xf] %vm685_vm1, %v741_v39  ;;  %824 = vst.msk [vmem:[%s1730_s27 + $0x28] sm:$0xf] %vm685_vm1, %v739_v40 }
 0x1cc   : > { %v773_v41 = vpop.permute.xlu1 %772  ;;  %v771_v42 = vpop.permute.xlu0 %770 }
 0x1cd   : > { %841 = vst.msk [vmem:[%s1730_s27 + $0x6c] sm:$0xf] %vm685_vm1, %v773_v41  ;;  %840 = vst.msk [vmem:[%s1730_s27 + $0x68] sm:$0xf] %vm685_vm1, %v771_v42 }
 0x1d0   : > { %v737_v43 = vpop.permute.xlu1 %736  ;;  %v735_v44 = vpop.permute.xlu0 %734 }
 0x1d1   : > { %823 = vst.msk [vmem:[%s1730_s27 + $0x24] sm:$0xf] %vm685_vm1, %v737_v43  ;;  %822 = vst.msk [vmem:[%s1730_s27 + $0x20] sm:$0xf] %vm685_vm1, %v735_v44 }
 0x1d4   : > { %v769_v45 = vpop.permute.xlu1 %768  ;;  %v767_v46 = vpop.permute.xlu0 %766 }
 0x1d5   : > { %839 = vst.msk [vmem:[%s1730_s27 + $0x64] sm:$0xf] %vm685_vm1, %v769_v45  ;;  %838 = vst.msk [vmem:[%s1730_s27 + $0x60] sm:$0xf] %vm685_vm1, %v767_v46 }
 0x1d8   : > { %v749_v47 = vpop.permute.xlu1 %748  ;;  %v747_v48 = vpop.permute.xlu0 %746 }
 0x1d9   : > { %829 = vst.msk [vmem:[%s1730_s27 + $0x3c] sm:$0xf] %vm685_vm1, %v749_v47  ;;  %828 = vst.msk [vmem:[%s1730_s27 + $0x38] sm:$0xf] %vm685_vm1, %v747_v48 }
 0x1dc   : > { %v745_v49 = vpop.permute.xlu1 %744  ;;  %v743_v50 = vpop.permute.xlu0 %742 }
 0x1dd   : > { %827 = vst.msk [vmem:[%s1730_s27 + $0x34] sm:$0xf] %vm685_vm1, %v745_v49  ;;  %826 = vst.msk [vmem:[%s1730_s27 + $0x30] sm:$0xf] %vm685_vm1, %v743_v50 }
 0x1e0   : > { %v777_v51 = vpop.permute.xlu1 %776  ;;  %v775_v52 = vpop.permute.xlu0 %774 }
 0x1e1   : > { %843 = vst.msk [vmem:[%s1730_s27 + $0x74] sm:$0xf] %vm685_vm1, %v777_v51  ;;  %842 = vst.msk [vmem:[%s1730_s27 + $0x70] sm:$0xf] %vm685_vm1, %v775_v52 }
 0x1e4   : > { %v781_v53 = vpop.permute.xlu1 %780  ;;  %v779_v55 = vpop.permute.xlu0 %778 }
 0x1e5   : > { %845 = vst.msk [vmem:[%s1730_s27 + $0x7c] sm:$0xf] %vm685_vm1, %v781_v53  ;;  %844 = vst.msk [vmem:[%s1730_s27 + $0x78] sm:$0xf] %vm685_vm1, %v779_v55 }
 0x1e6 PF: > { %s19_s20 = sadd.s32 1, %s1341_s20   ;;  %s1831_s15 = smov %s1325_s16 }
 0x1e7   : > { %p16_p1 = scmp.ge.s32.totalorder %s19_s20, 4   ;;  %s1832_s16 = smov %s1329_s17 }
 0x1e8   : > { %s1833_s17 = smov %s1459_s30  ;;  %s1834_s18 = smov %s1337_s19 }
 0x1e9   : > { %s1835_s19 = smov %s1837_s28  ;;  %18 = sbr.rel (!%p16_p1) target bundleno = 5 (0x5), region = 88 }
 0x1f0   :  { %901 = vsyncpa [#allocation3], 1 }
 0x1f1   :  { %903 = vsyncpa [#allocation3 + $0x1], 1 }
 0x1f2   :  { %904 = vsyncpa [#allocation5], 1 }

// kernel: ha_unit_forward.3
= control target key start
LH: loop header
LB: loop body
LE: loop exit
PB: predicated region body
PF: predicated region fallthrough
CT: control target
= control target key end

     0   :  { %11 = vsyncpa [#allocation3], 0  ;;  %s7786_s0 = inlined_call_operand.vmem [shape: f32[2,256,32], index: 0, kind: input, shape index: {}]   ;;  %s7787_s1 = inlined_call_operand.vmem [shape: bf16[2,256,32], index: 1, kind: input, shape index: {}]   ;;  %s7788_s2 = inlined_call_operand.vmem [shape: bf16[2,256,32], index: 2, kind: input, shape index: {}]   ;;  %s7789_s3 = inlined_call_operand.hbm [shape: f32[3,32,32], index: 3, kind: input, shape index: {}]   ;;  %s7790_s4 = inlined_call_operand.vmem [shape: f32[32,32], index: 4, kind: input, shape index: {}]   ;;  %s7791_s5 = inlined_call_operand.vmem [shape: f32[1,32], index: 5, kind: input, shape index: {}]   ;;  %s7792_s6 = inlined_call_operand.hbm [shape: f32[2,256,32], index: 6, kind: output, shape index: {}]  }
   0x1   :  { %12 = vsyncpa [#allocation4], 0 }
   0x2   :  { %14 = vsyncpa [#allocation4 + $0x1], 0  ;;  %s5480_s21 = smov 0   ;;  %s5482_s22 = smov 0  }
   0x3   :  { %s5484_s23 = smov 0   ;;  %s5486_s24 = smov 0  }
   0x4   :  { %s5488_s25 = smov 0   ;;  %s5490_s26 = smov 0  }
   0x5   :  { %s5492_s27 = smov 0   ;;  %s5494_s28 = smov 0  }
   0x6 LB: > { %s3859_s29 = sadd.s32 4294967295, %s5435_s28   ;;  %s3860_s30 = sadd.s32 4294967294, %s5435_s28   ;;  %s5435_s28 = sphi %s5494_s28, %s20_s28   ;;  %s5431_s27 = sphi %s5492_s27, %s8441_s27   ;;  %s5427_s26 = sphi %s5490_s26, %s8440_s26   ;;  %s5423_s25 = sphi %s5488_s25, %s8439_s25   ;;  %s5419_s24 = sphi %s5486_s24, %s8438_s24   ;;  %s5415_s23 = sphi %s5484_s23, %s8437_s23   ;;  %s5411_s22 = sphi %s5482_s22, %s8436_s22   ;;  %s5407_s21 = sphi %s5480_s21, %s8435_s21  }
   0x7   : > { %s29_s7 = sadd.s32 1, %s5427_s26  ;;  %s32_s8 = sadd.s32 1, %s5431_s27 }
   0x8   : > { %p30_p0 = scmp.ge.s32.totalorder %s29_s7, 2  ;;  %s184_s9 = sadd.s32 1, %s5415_s23 }
   0x9   : > { %p194_p1 = scmp.ne.s32.totalorder %s5415_s23, %s5411_s22  ;;  %p195_p2 = scmp.eq.s32.totalorder %s3859_s29, 3 }
   0xa   : > { %s8443_s7 = smov (%p30_p0, %s29_s7), 0  ;;  %s8445_s8 = smov (!%p30_p0, %s32_s8), %s5431_s27 }
   0xb   : > { %s180_s10 = ssub.s32 %s5427_s26, %s8443_s7  ;;  %p5532_p3 = por %p195_p2, %p194_p1 }
   0xc   : > { %p34_p4 = scmp.ge.s32.totalorder %s8445_s8, 2  ;;  %p200_p5 = scmp.ne.s32.totalorder %s5411_s22, %s5407_s21 }
   0xd   : > { %s7986_s11 = scalar_select %p5532_p3, 1, 0 }
   0xe   : > { %p201_p6 = scmp.eq.s32.totalorder %s3860_s30, 3  ;;  %p3861_p7 = scmp.ge.s32.totalorder %s5435_s28, 1 }
   0xf   : > { %s8447_s8 = smov (%p34_p4, %s8445_s8), 0  ;;  %p208_p9 = scmp.lt.s32.totalorder %s5435_s28, 5 }
  0x10   : > { %7987 = sst [smem:[#allocation8_spill]] %s8447_s8  ;;  %p5541_p8 = por %p201_p6, %p200_p5 }
  0x11   : > { %s179_s13 = ssub.s32 %s5431_s27, %s8447_s8  ;;  %p5548_p10 = pnand %p3861_p7, %p208_p9 }
  0x12   : > { %s7988_s12 = scalar_select %p5541_p8, 1, 0 }
  0x13   : > { %s181_s14 = sor.u32 %s180_s10, %s179_s13  ;;  %p5552_p12 = scmp.eq.s32.totalorder %s3859_s29, 0 }
  0x14   : > { %s7989_s15 = scalar_select %p5548_p10, 1, 0 }
  0x15   : > { %p182_p11 = scmp.eq.s32.totalorder %s181_s14, 0  ;;  %p4867_p13 = pneg %p5548_p10 }
  0x16   : > { %s7990_s16 = scalar_select %p5552_p12, 1, 0 }
  0x17   : > { %s5559_s17 = scalar_select %p182_p11, %s5415_s23, %s184_s9  }
  0x18   : > { %s5437_s18 = smov [#allocation2]   ;;  %p5563_p0 = pnand %p5552_p12, %p4867_p13 }
  0x19   : > { %s220_s19 = sshll.u32 %s5437_s18, 4  ;;  %s5309_s29 = scalar_lea.hbm %s7789_s3, 1536  ;;  %s221_s19 = int_to_ptr.vmem [resolvable:$true] %s220_s19 }
  0x1a   : > { %p5310_p1 = scmp.ne.s32.totalorder %s7789_s3, %s5309_s29  ;;  %p5311_p2 = pneg %p5563_p0 }
  0x1b   : > { %p5316_p6 = scmp.lt.u32.totalorder %s5309_s29, %s7789_s3 }
  0x1c   : > { %p5312_p4 = pnand %p5311_p2, %p5310_p1 }
  0x1e   : > { %p5313_p5 = pneg %p5312_p4 }
  0x20   : > { %p5318_p7 = pnand %p5316_p6, %p5313_p5 }
  0x22   : > { %5321 = shalt.err (!%p5318_p7)
}
  0x23   : > { %s5322_s8 = scalar_lea.vmem %s221_s19, 1536  ;;  %p5330_p8 = scmp.lt.s32.totalorder %s221_s19, %s221_s19 }
  0x24   : > { %p5323_p9 = scmp.ne.s32.totalorder %s221_s19, %s5322_s8  ;;  %p5331_p3 = scmp.lt.s32.totalorder %s5322_s8, %s5322_s8 }
  0x26   : > { %p5325_p11 = pnand %p5323_p9, %p5311_p2  ;;  %p5332_p12 = por %p5331_p3, %p5330_p8 }
  0x28   : > { %p5326_p13 = pneg %p5325_p11 }
  0x2a   : > { %p5333_p10 = pnand %p5332_p12, %p5326_p13 }
  0x2c   : > { %5336 = shalt.err (!%p5333_p10)
}
  0x2d   : > { %s5438_s30 = smov 128   ;;  %s5439_s10 = smov 8  }
  0x2e   : > { %4870 = dma.hbm_to_vmem [thread:$0]  (!%p5563_p0), %s7789_s3, 1536, %s221_s19, [#allocation3], %s5438_s30, %s5438_s30, %s5439_s10  }
  0x2f   : > { %p7992_p1 = scmp.ne.s32.totalorder %s7989_s15, 0 }
  0x31   : > { %271 = sbr.rel (%p7992_p1) target bundleno = 2119 (0x847), region = 44 }
  0x38   : > { %p7993_p4 = scmp.ne.s32.totalorder %s7990_s16, 0 }
  0x3a   : > { %5398 = dma.done.wait (%p7993_p4), [#allocation3], 1536  }
  0x3b   : > { %5400 = vsyncadd (%p7993_p4), [#allocation3], 4294965760  ;;  %p316_p3 = scmp.lt.s32.totalorder %s5423_s25, 1  ;;  %vm7798_vm0 = vcmask 261120   ;;  %s3874_s16 = sshll.u32 %s5419_s24, 7  ;;  %v7996_v46 = vmov 0 }
  0x3c   : > { %s370_s9 = sshra.s32 %s3874_s16, 3  ;;  %v7858_v49 = vmov 1.0|1.0   ;;  %v8001_v61 = vmov 0  ;;  %v8004_v62 = vmov 0  ;;  %p8432_p12 = scmp.ne.s32.totalorder %s7986_s11, 0 }
  0x3d   : > { %s5591_s8 = scalar_select %p316_p3, %s5423_s25, 1 }
  0x3e   : > { %s3875_s18 = sshll.u32 %s370_s9, 2 }
  0x3f   : > { %s4267_s20 = sshll.u32 %s5591_s8, 7  ;;  %s3868_s13 = sshll.u32 %s5591_s8, 5 }
  0x40   : > { %s5599_s15 = scalar_lea.vmem %s7787_s1, %s4267_s20  ;;  %s5765_s14 = scalar_lea.vmem %s7788_s2, %s4267_s20 }
  0x41   : > { %v5602_v0 = vld [vmem:[%s5599_s15 + $0x40] sm:$0xff]   ;;  %v5610_v2 = vld [vmem:[%s5599_s15 + $0x48] sm:$0xff]   ;;  %v5625_v6 = vld [vmem:[%s5599_s15 + $0x50] sm:$0xff]   ;;  %s5679_s30 = scalar_lea.vmem %s5599_s15, %s3875_s18  ;;  %s6888_s18 = sshll.u32 %s5419_s24, 4 }
  0x42   : > { %v5605_v1 = vld [vmem:[%s5599_s15] sm:$0xff]   ;;  %4845 = vmatprep.subr.msk.bf16.mxu0 %vm7798_vm0, %v5602_v0  ;;  %4853 = vmatprep.subr.msk.bf16.mxu1 %vm7798_vm0, %v5602_v0  ;;  %v4952_v4 = vld [vmem:[%s5599_s15 + $0x8] sm:$0xff]   ;;  %v4954_v7 = vld [vmem:[%s5599_s15 + $0x10] sm:$0xff]   ;;  %p318_p8 = scmp.lt.s32.totalorder %s6888_s18, 31 }
  0x43   : > { %v504_v3 = vsel %vm7798_vm0, %v5605_v1, 0  ;;  %4285 = vmatprep.mubr.msk.bf16.mxu0 %vm7798_vm0, %v5605_v1  ;;  %v507_v5 = vsel %vm7798_vm0, %v4952_v4, 0  ;;  %v510_v8 = vsel %vm7798_vm0, %v4954_v7, 0  ;;  %v5634_v9 = vld [vmem:[%s5599_s15 + $0x58] sm:$0xff]   ;;  %v5643_v12 = vld [vmem:[%s5599_s15 + $0x60] sm:$0xff]   ;;  %v5652_v15 = vld [vmem:[%s5599_s15 + $0x68] sm:$0xff]  }
  0x44   : > { %4270 = vmatpush3.bf16.xpose.msra.mxu0 %v504_v3  ;;  %4318 = vmatpush3.bf16.xpose.msra.mxu1 %v504_v3  ;;  %v4956_v10 = vld [vmem:[%s5599_s15 + $0x18] sm:$0xff]   ;;  %v4958_v13 = vld [vmem:[%s5599_s15 + $0x20] sm:$0xff]   ;;  %v4960_v16 = vld [vmem:[%s5599_s15 + $0x28] sm:$0xff]   ;;  %s319_s24 = scalar_select %p318_p8, %s6888_s18, 31 }
  0x45   : > { %4846 = vmatprep.subr.msk.bf16.mxu0 %vm7798_vm0, %v5610_v2  ;;  %4854 = vmatprep.subr.msk.bf16.mxu1 %vm7798_vm0, %v5610_v2  ;;  %v513_v11 = vsel %vm7798_vm0, %v4956_v10, 0  ;;  %v516_v14 = vsel %vm7798_vm0, %v4958_v13, 0  ;;  %v519_v17 = vsel %vm7798_vm0, %v4960_v16, 0  ;;  %v5661_v18 = vld [vmem:[%s5599_s15 + $0x70] sm:$0xff]   ;;  %v5670_v21 = vld [vmem:[%s5599_s15 + $0x78] sm:$0xff]   ;;  %v4965_v24 = vld [vmem:[%s5679_s30] sm:$0xff]  }
  0x46   : > { %v4962_v19 = vld [vmem:[%s5599_s15 + $0x30] sm:$0xff]   ;;  %v4964_v22 = vld [vmem:[%s5599_s15 + $0x38] sm:$0xff]   ;;  %4333 = vmatprep.mubr.msk.bf16.mxu1 %vm7798_vm0, %v4965_v24  ;;  %v4966_v25 = vld [vmem:[%s5679_s30 + $0x8] sm:$0xff]   ;;  %s321_s20 = sadd.s32 %s3868_s13, %s319_s24  ;;  %s4263_s13 = sshll.u32 %s5423_s25, 5 }
  0x47   : > { %v522_v20 = vsel %vm7798_vm0, %v4962_v19, 0  ;;  %v525_v23 = vsel %vm7798_vm0, %v4964_v22, 0  ;;  %v4967_v26 = vld [vmem:[%s5679_s30 + $0x10] sm:$0xff]   ;;  %v4968_v27 = vld [vmem:[%s5679_s30 + $0x18] sm:$0xff]   ;;  %v4969_v28 = vld [vmem:[%s5679_s30 + $0x20] sm:$0xff]   ;;  %s3869_s8 = sshll.u32 %s321_s20, 3  ;;  %s3736_s24 = sadd.s32 %s4263_s13, %s6888_s18 }
  0x48   : > { %v4970_v29 = vld [vmem:[%s5679_s30 + $0x28] sm:$0xff]   ;;  %v4971_v30 = vld [vmem:[%s5679_s30 + $0x30] sm:$0xff]   ;;  %v4972_v31 = vld [vmem:[%s5679_s30 + $0x38] sm:$0xff]   ;;  %s6903_s15 = scalar_lea.vmem %s7786_s0, %s3869_s8  ;;  %s4264_s20 = sshll.u32 %s3736_s24, 7 }
  0x4c   : > { %4272 = vmatpush3.bf16.xpose.msra.mxu0 %v507_v5  ;;  %4320 = vmatpush3.bf16.xpose.msra.mxu1 %v507_v5 }
  0x4d   : > { %4847 = vmatprep.subr.msk.bf16.mxu0 %vm7798_vm0, %v5625_v6  ;;  %4855 = vmatprep.subr.msk.bf16.mxu1 %vm7798_vm0, %v5625_v6 }
  0x54   : > { %4274 = vmatpush3.bf16.xpose.msra.mxu0 %v510_v8  ;;  %4322 = vmatpush3.bf16.xpose.msra.mxu1 %v510_v8 }
  0x55   : > { %4848 = vmatprep.subr.msk.bf16.mxu0 %vm7798_vm0, %v5634_v9  ;;  %4856 = vmatprep.subr.msk.bf16.mxu1 %vm7798_vm0, %v5634_v9 }
  0x5c   : > { %4276 = vmatpush3.bf16.xpose.msra.mxu0 %v513_v11  ;;  %4324 = vmatpush3.bf16.xpose.msra.mxu1 %v513_v11  ;;  %v8007_v11 = vmov 0 }
  0x5d   : > { %4849 = vmatprep.subr.msk.bf16.mxu0 %vm7798_vm0, %v5643_v12  ;;  %4857 = vmatprep.subr.msk.bf16.mxu1 %vm7798_vm0, %v5643_v12 }
  0x64   : > { %4278 = vmatpush3.bf16.xpose.msra.mxu0 %v516_v14  ;;  %4326 = vmatpush3.bf16.xpose.msra.mxu1 %v516_v14 }
  0x65   : > { %4850 = vmatprep.subr.msk.bf16.mxu0 %vm7798_vm0, %v5652_v15  ;;  %4858 = vmatprep.subr.msk.bf16.mxu1 %vm7798_vm0, %v5652_v15 }
  0x6c   : > { %4280 = vmatpush3.bf16.xpose.msra.mxu0 %v519_v17  ;;  %4328 = vmatpush3.bf16.xpose.msra.mxu1 %v519_v17 }
  0x6d   : > { %4851 = vmatprep.subr.msk.bf16.mxu0 %vm7798_vm0, %v5661_v18  ;;  %4859 = vmatprep.subr.msk.bf16.mxu1 %vm7798_vm0, %v5661_v18 }
  0x74   : > { %4282 = vmatpush3.bf16.xpose.msra.mxu0 %v522_v20  ;;  %4330 = vmatpush3.bf16.xpose.msra.mxu1 %v522_v20 }
  0x75   : > { %4852 = vmatprep.subr.msk.bf16.mxu0 %vm7798_vm0, %v5670_v21  ;;  %4860 = vmatprep.subr.msk.bf16.mxu1 %vm7798_vm0, %v5670_v21 }
  0x7c   : > { %4284 = vmatpush3.bf16.xpose.msra.mxu0 %v525_v23  ;;  %4332 = vmatpush3.bf16.xpose.msra.mxu1 %v525_v23 }
  0x83   : > { %4286 = vmatmul.mubr.msk.bf16.vlgmr.msra.gmra.mrb[0].mxu0 %vm7798_vm0, %v5605_v1  ;;  %4334 = vmatmul.mubr.msk.bf16.vlgmr.msra.gmra.mrb[0].mxu1 %vm7798_vm0, %v4965_v24 }
  0x84   : > { %4287 = vmatprep.mubr.msk.bf16.mxu0 %vm7798_vm0, %v4952_v4  ;;  %4335 = vmatprep.mubr.msk.bf16.mxu1 %vm7798_vm0, %v4966_v25 }
  0x8b   : > { %4288 = vmatmul.mubr.msk.bf16.gmra.mrb[4].mxu0 %vm7798_vm0, %v4952_v4  ;;  %4336 = vmatmul.mubr.msk.bf16.gmra.mrb[4].mxu1 %vm7798_vm0, %v4966_v25  ;;  %v8013_v25 = vmov 0 }
  0x8c   : > { %4289 = vmatprep.mubr.msk.bf16.mxu0 %vm7798_vm0, %v4954_v7  ;;  %4337 = vmatprep.mubr.msk.bf16.mxu1 %vm7798_vm0, %v4967_v26 }
  0x93   : > { %4290 = vmatmul.mubr.msk.bf16.gmra.mrb[8].mxu0 %vm7798_vm0, %v4954_v7  ;;  %4338 = vmatmul.mubr.msk.bf16.gmra.mrb[8].mxu1 %vm7798_vm0, %v4967_v26  ;;  %v8016_v26 = vmov 0 }
  0x94   : > { %4291 = vmatprep.mubr.msk.bf16.mxu0 %vm7798_vm0, %v4956_v10  ;;  %4339 = vmatprep.mubr.msk.bf16.mxu1 %vm7798_vm0, %v4968_v27 }
  0x9b   : > { %4292 = vmatmul.mubr.msk.bf16.gmra.mrb[12].mxu0 %vm7798_vm0, %v4956_v10  ;;  %4340 = vmatmul.mubr.msk.bf16.gmra.mrb[12].mxu1 %vm7798_vm0, %v4968_v27 }
  0x9c   : > { %4293 = vmatprep.mubr.msk.bf16.mxu0 %vm7798_vm0, %v4958_v13  ;;  %4341 = vmatprep.mubr.msk.bf16.mxu1 %vm7798_vm0, %v4969_v28 }
  0xa3   : > { %4294 = vmatmul.mubr.msk.bf16.gmra.mrb[16].mxu0 %vm7798_vm0, %v4958_v13  ;;  %4342 = vmatmul.mubr.msk.bf16.gmra.mrb[16].mxu1 %vm7798_vm0, %v4969_v28 }
  0xa4   : > { %4295 = vmatprep.mubr.msk.bf16.mxu0 %vm7798_vm0, %v4960_v16  ;;  %4343 = vmatprep.mubr.msk.bf16.mxu1 %vm7798_vm0, %v4970_v29 }
  0xab   : > { %4296 = vmatmul.mubr.msk.bf16.gmra.mrb[20].mxu0 %vm7798_vm0, %v4960_v16  ;;  %4344 = vmatmul.mubr.msk.bf16.gmra.mrb[20].mxu1 %vm7798_vm0, %v4970_v29 }
  0xac   : > { %4297 = vmatprep.mubr.msk.bf16.mxu0 %vm7798_vm0, %v4962_v19  ;;  %4345 = vmatprep.mubr.msk.bf16.mxu1 %vm7798_vm0, %v4971_v30 }
  0xb3   : > { %4298 = vmatmul.mubr.msk.bf16.gmra.mrb[24].mxu0 %vm7798_vm0, %v4962_v19  ;;  %4346 = vmatmul.mubr.msk.bf16.gmra.mrb[24].mxu1 %vm7798_vm0, %v4971_v30 }
  0xb4   : > { %4299 = vmatprep.mubr.msk.bf16.mxu0 %vm7798_vm0, %v4964_v22  ;;  %4347 = vmatprep.mubr.msk.bf16.mxu1 %vm7798_vm0, %v4972_v31 }
  0xbb   : > { %4300 = vmatmul.mubr.msk.bf16.gmra.mrb[28].mxu0 %vm7798_vm0, %v4964_v22  ;;  %4348 = vmatmul.mubr.msk.bf16.gmra.mrb[28].mxu1 %vm7798_vm0, %v4972_v31 }
  0xbc   : > { %4301 = vmatprep.mubr.msk.bf16.mxu0 %vm7798_vm0, %v5602_v0 }
  0xc3   : > { %4302 = vmatmul.mubr.msk.bf16.gmra.mrb[32].mxu0 %vm7798_vm0, %v5602_v0 }
  0xc4   : > { %4303 = vmatprep.mubr.msk.bf16.mxu0 %vm7798_vm0, %v5610_v2 }
  0xcb   : > { %4304 = vmatmul.mubr.msk.bf16.gmra.mrb[36].mxu0 %vm7798_vm0, %v5610_v2 }
  0xcc   : > { %4305 = vmatprep.mubr.msk.bf16.mxu0 %vm7798_vm0, %v5625_v6 }
  0xd3   : > { %4306 = vmatmul.mubr.msk.bf16.gmra.mrb[40].mxu0 %vm7798_vm0, %v5625_v6 }
  0xd4   : > { %4307 = vmatprep.mubr.msk.bf16.mxu0 %vm7798_vm0, %v5634_v9 }
  0xdb   : > { %4308 = vmatmul.mubr.msk.bf16.gmra.mrb[44].mxu0 %vm7798_vm0, %v5634_v9 }
  0xdc   : > { %4309 = vmatprep.mubr.msk.bf16.mxu0 %vm7798_vm0, %v5643_v12 }
  0xe3   : > { %4310 = vmatmul.mubr.msk.bf16.gmra.mrb[48].mxu0 %vm7798_vm0, %v5643_v12  ;;  %v8010_v12 = vmov 0 }
  0xe4   : > { %4311 = vmatprep.mubr.msk.bf16.mxu0 %vm7798_vm0, %v5652_v15 }
  0xeb   : > { %4312 = vmatmul.mubr.msk.bf16.gmra.mrb[52].mxu0 %vm7798_vm0, %v5652_v15 }
  0xec   : > { %4313 = vmatprep.mubr.msk.bf16.mxu0 %vm7798_vm0, %v5661_v18 }
  0xf3   : > { %4314 = vmatmul.mubr.msk.bf16.gmra.mrb[56].mxu0 %vm7798_vm0, %v5661_v18 }
  0xf4   : > { %4315 = vmatprep.mubr.msk.bf16.mxu0 %vm7798_vm0, %v5670_v21 }
  0xfb   : > { %4316 = vmatmul.mubr.msk.bf16.gmra.mrb[60].mxu0 %vm7798_vm0, %v5670_v21 }
 0x156   : > { %v585_v32 = vpop.f32.mrb[0].mxu0  ;;  %v5754_v33 = vpop.f32.mrb[0].mxu1 }
 0x157   : > { %v744_v34 = vmul.f32 0.17677669, %v585_v32  ;;  %v587_v35 = vpop.f32.mrb[1].mxu0  ;;  %v908_v36 = vpop.f32.mrb[1].mxu1 }
 0x158   : > { %v745_v37 = vmul.f32 0.17677669, %v587_v35  ;;  %v589_v38 = vpop.f32.mrb[2].mxu0  ;;  %v5756_v39 = vpop.f32.mrb[2].mxu1  ;;  %v5758_v42 = vmul.f32 0.17677669, %v908_v36 }
 0x159   : > { %v746_v40 = vmul.f32 0.17677669, %v589_v38  ;;  %v591_v41 = vpop.f32.mrb[3].mxu0  ;;  %v912_v43 = vpop.f32.mrb[3].mxu1  ;;  %vm1017_vm1 = vcmp.ge.f32.partialorder %v744_v34, 0.0 }
 0x15a   : > { %7994 = vst [vmem:[#allocation9_spill] sm:$0xff] %v5758_v42  ;;  %v747_v44 = vmul.f32 0.17677669, %v591_v41  ;;  %v5767_v45 = vmul.f32 0.17677669, %v912_v43  ;;  %vm1018_vm3 = vcmp.ge.f32.partialorder %v745_v37, 0.0 }
 0x15b   : > { %vm1019_vm2 = vcmp.ge.f32.partialorder %v746_v40, 0.0  ;;  %vm7800_vm7 = vcmp.ge.f32.partialorder %v5758_v42, 0.0  ;;  %v8019_v41 = vmov 0  ;;  %v8022_v43 = vmov 0 }
 0x15c   : > { %7995 = vst [vmem:[#allocation10_spill] sm:$0xff] %v5767_v45  ;;  %vm5769_vm4 = vmpackc.low %vm1019_vm2, %vm1017_vm1  ;;  %vm1020_vm5 = vcmp.ge.f32.partialorder %v747_v44, 0.0  ;;  %vm7799_vm8 = vcmp.ge.f32.partialorder %v5767_v45, 0.0 }
 0x15d   : > { %v7997_v46 = vsel %vm5769_vm4, 4294967295, %v7996_v46  ;;  %vm5773_vm6 = vmpackc.low %vm1020_vm5, %vm1018_vm3 }
 0x15e   : > { %7998 = vst [vmem:[#allocation11_spill] sm:$0xff] %v7997_v46  ;;  %v595_v48 = vpop.f32.mrb[4].mxu0  ;;  %4070 = vmatprep.subr.msk.bf16.mxu0 %vm5773_vm6, %v7858_v49  ;;  %v5782_v50 = vpop.f32.mrb[4].mxu1  ;;  %vm4133_vm9 = vmpackc.low %vm7799_vm8, %vm7800_vm7 }
 0x15f   : > { %v748_v51 = vmul.f32 0.17677669, %v595_v48  ;;  %v597_v52 = vpop.f32.mrb[5].mxu0  ;;  %4072 = vmatpush1.bf16.msk.msra.mxu0 %vm5769_vm4, %v7858_v49  ;;  %4134 = vmatprep.mubr.msk.bf16.mxu0 %vm4133_vm9, %v7858_v49  ;;  %v5792_v53 = vpop.f32.mrb[5].mxu1 }
 0x160   : > { %v749_v54 = vmul.f32 0.17677669, %v597_v52  ;;  %v599_v55 = vpop.f32.mrb[6].mxu0  ;;  %v5794_v56 = vpop.f32.mrb[6].mxu1 }
 0x161   : > { %v750_v57 = vmul.f32 0.17677669, %v599_v55  ;;  %v601_v58 = vpop.f32.mrb[7].mxu0  ;;  %v5796_v60 = vpop.f32.mrb[7].mxu1  ;;  %vm1021_vm10 = vcmp.ge.f32.partialorder %v748_v51, 0.0 }
 0x162   : > { %v751_v59 = vmul.f32 0.17677669, %v601_v58  ;;  %vm1022_vm12 = vcmp.ge.f32.partialorder %v749_v54, 0.0 }
 0x163   : > { %vm1023_vm11 = vcmp.ge.f32.partialorder %v750_v57, 0.0 }
 0x164   : > { %vm5798_vm13 = vmpackc.low %vm1023_vm11, %vm1021_vm10  ;;  %vm1024_vm14 = vcmp.ge.f32.partialorder %v751_v59, 0.0 }
 0x165   : > { %v8002_v61 = vsel %vm5798_vm13, 4294967295, %v8001_v61  ;;  %vm5802_vm15 = vmpackc.low %vm1024_vm14, %vm1022_vm12 }
 0x166   : > { %8003 = vst [vmem:[#allocation12_spill] sm:$0xff] %v8002_v61  ;;  %v8005_v62 = vsel %vm5802_vm15, 4294967295, %v8004_v62  ;;  %v605_v63 = vpop.f32.mrb[8].mxu0  ;;  %4074 = vmatprep.subr.msk.bf16.mxu0 %vm5802_vm15, %v7858_v49  ;;  %v5809_v0 = vpop.f32.mrb[8].mxu1 }
 0x167   : > { %8006 = vst [vmem:[#allocation13_spill] sm:$0xff] %v8005_v62  ;;  %v752_v1 = vmul.f32 0.17677669, %v605_v63  ;;  %v607_v2 = vpop.f32.mrb[9].mxu0  ;;  %4076 = vmatpush1.bf16.msk.msra.mxu0 %vm5798_vm13, %v7858_v49  ;;  %v5814_v3 = vpop.f32.mrb[9].mxu1 }
 0x168   : > { %v753_v4 = vmul.f32 0.17677669, %v607_v2  ;;  %v609_v5 = vpop.f32.mrb[10].mxu0  ;;  %v5816_v6 = vpop.f32.mrb[10].mxu1 }
 0x169   : > { %v754_v7 = vmul.f32 0.17677669, %v609_v5  ;;  %v611_v8 = vpop.f32.mrb[11].mxu0  ;;  %v5818_v10 = vpop.f32.mrb[11].mxu1  ;;  %vm1025_vm1 = vcmp.ge.f32.partialorder %v752_v1, 0.0  ;;  %v8028_v5 = vmov 0 }
 0x16a   : > { %v755_v9 = vmul.f32 0.17677669, %v611_v8  ;;  %vm1026_vm3 = vcmp.ge.f32.partialorder %v753_v4, 0.0  ;;  %v8025_v4 = vmov 0 }
 0x16b   : > { %vm1027_vm2 = vcmp.ge.f32.partialorder %v754_v7, 0.0 }
 0x16c   : > { %vm5820_vm5 = vmpackc.low %vm1027_vm2, %vm1025_vm1  ;;  %vm1028_vm9 = vcmp.ge.f32.partialorder %v755_v9, 0.0 }
 0x16d   : > { %v8008_v11 = vsel %vm5820_vm5, 4294967295, %v8007_v11  ;;  %vm5824_vm10 = vmpackc.low %vm1028_vm9, %vm1026_vm3 }
 0x16e   : > { %8009 = vst [vmem:[#allocation14_spill] sm:$0xff] %v8008_v11  ;;  %v8011_v12 = vsel %vm5824_vm10, 4294967295, %v8010_v12  ;;  %v615_v13 = vpop.f32.mrb[12].mxu0  ;;  %4078 = vmatprep.subr.msk.bf16.mxu0 %vm5824_vm10, %v7858_v49  ;;  %v5831_v14 = vpop.f32.mrb[12].mxu1 }
 0x16f   : > { %8012 = vst [vmem:[#allocation15_spill] sm:$0xff] %v8011_v12  ;;  %v756_v15 = vmul.f32 0.17677669, %v615_v13  ;;  %v617_v16 = vpop.f32.mrb[13].mxu0  ;;  %4080 = vmatpush1.bf16.msk.msra.mxu0 %vm5820_vm5, %v7858_v49  ;;  %v5836_v17 = vpop.f32.mrb[13].mxu1 }
 0x170   : > { %v757_v18 = vmul.f32 0.17677669, %v617_v16  ;;  %v619_v19 = vpop.f32.mrb[14].mxu0  ;;  %v5838_v20 = vpop.f32.mrb[14].mxu1 }
 0x171   : > { %v758_v21 = vmul.f32 0.17677669, %v619_v19  ;;  %v621_v22 = vpop.f32.mrb[15].mxu0  ;;  %vm1029_vm11 = vcmp.ge.f32.partialorder %v756_v15, 0.0  ;;  %v5840_v24 = vpop.f32.mrb[15].mxu1 }
 0x172   : > { %v759_v23 = vmul.f32 0.17677669, %v621_v22  ;;  %vm1030_vm14 = vcmp.ge.f32.partialorder %v757_v18, 0.0 }
 0x173   : > { %vm1031_vm12 = vcmp.ge.f32.partialorder %v758_v21, 0.0 }
 0x174   : > { %vm5842_vm1 = vmpackc.low %vm1031_vm12, %vm1029_vm11  ;;  %vm1032_vm2 = vcmp.ge.f32.partialorder %v759_v23, 0.0 }
 0x175   : > { %v8014_v25 = vsel %vm5842_vm1, 4294967295, %v8013_v25  ;;  %vm5846_vm3 = vmpackc.low %vm1032_vm2, %vm1030_vm14 }
 0x176   : > { %8015 = vst [vmem:[#allocation16_spill] sm:$0xff] %v8014_v25  ;;  %v8017_v26 = vsel %vm5846_vm3, 4294967295, %v8016_v26  ;;  %v625_v27 = vpop.f32.mrb[16].mxu0  ;;  %4082 = vmatprep.subr.msk.bf16.mxu0 %vm5846_vm3, %v7858_v49  ;;  %v5853_v28 = vpop.f32.mrb[16].mxu1 }
 0x177   : > { %8018 = vst [vmem:[#allocation17_spill] sm:$0xff] %v8017_v26  ;;  %v760_v29 = vmul.f32 0.17677669, %v625_v27  ;;  %v627_v30 = vpop.f32.mrb[17].mxu0  ;;  %4084 = vmatpush1.bf16.msk.msra.mxu0 %vm5842_vm1, %v7858_v49  ;;  %v5858_v31 = vpop.f32.mrb[17].mxu1 }
 0x178   : > { %v761_v32 = vmul.f32 0.17677669, %v627_v30  ;;  %v629_v34 = vpop.f32.mrb[18].mxu0  ;;  %v5860_v35 = vpop.f32.mrb[18].mxu1  ;;  %v8034_v30 = vmov 0 }
 0x179   : > { %v762_v36 = vmul.f32 0.17677669, %v629_v34  ;;  %v631_v37 = vpop.f32.mrb[19].mxu0  ;;  %vm1033_vm9 = vcmp.ge.f32.partialorder %v760_v29, 0.0  ;;  %v5862_v40 = vpop.f32.mrb[19].mxu1  ;;  %v8031_v29 = vmov 0 }
 0x17a   : > { %v763_v38 = vmul.f32 0.17677669, %v631_v37  ;;  %vm1034_vm12 = vcmp.ge.f32.partialorder %v761_v32, 0.0 }
 0x17b   : > { %vm1035_vm11 = vcmp.ge.f32.partialorder %v762_v36, 0.0 }
 0x17c   : > { %vm5864_vm14 = vmpackc.low %vm1035_vm11, %vm1033_vm9  ;;  %vm1036_vm2 = vcmp.ge.f32.partialorder %v763_v38, 0.0 }
 0x17d   : > { %v8020_v41 = vsel %vm5864_vm14, 4294967295, %v8019_v41  ;;  %vm5868_vm0 = vmpackc.low %vm1036_vm2, %vm1034_vm12 }
 0x17e   : > { %8021 = vst [vmem:[#allocation18_spill] sm:$0xff] %v8020_v41  ;;  %v8023_v43 = vsel %vm5868_vm0, 4294967295, %v8022_v43  ;;  %v635_v44 = vpop.f32.mrb[20].mxu0  ;;  %4086 = vmatprep.subr.msk.bf16.mxu0 %vm5868_vm0, %v7858_v49  ;;  %v5878_v52 = vpop.f32.mrb[20].mxu1 }
 0x17f   : > { %8024 = vst [vmem:[#allocation19_spill] sm:$0xff] %v8023_v43  ;;  %v764_v48 = vmul.f32 0.17677669, %v635_v44  ;;  %v637_v51 = vpop.f32.mrb[21].mxu0  ;;  %4088 = vmatpush1.bf16.msk.msra.mxu0 %vm5864_vm14, %v7858_v49  ;;  %v5880_v57 = vpop.f32.mrb[21].mxu1 }
 0x180   : > { %v765_v54 = vmul.f32 0.17677669, %v637_v51  ;;  %v639_v55 = vpop.f32.mrb[22].mxu0  ;;  %v5882_v1 = vpop.f32.mrb[22].mxu1 }
 0x181   : > { %v766_v58 = vmul.f32 0.17677669, %v639_v55  ;;  %v641_v59 = vpop.f32.mrb[23].mxu0  ;;  %vm1037_vm9 = vcmp.ge.f32.partialorder %v764_v48, 0.0  ;;  %v5884_v2 = vpop.f32.mrb[23].mxu1 }
 0x182   : > { %v767_v63 = vmul.f32 0.17677669, %v641_v59  ;;  %vm1038_vm12 = vcmp.ge.f32.partialorder %v765_v54, 0.0 }
 0x183   : > { %vm1039_vm11 = vcmp.ge.f32.partialorder %v766_v58, 0.0 }
 0x184   : > { %vm5886_vm2 = vmpackc.low %vm1039_vm11, %vm1037_vm9  ;;  %vm1040_vm8 = vcmp.ge.f32.partialorder %v767_v63, 0.0  ;;  %v8037_v63 = vmov 0 }
 0x185   : > { %v8026_v4 = vsel %vm5886_vm2, 4294967295, %v8025_v4  ;;  %vm5890_vm7 = vmpackc.low %vm1040_vm8, %vm1038_vm12 }
 0x186   : > { %8027 = vst [vmem:[#allocation20_spill] sm:$0xff] %v8026_v4  ;;  %v8029_v5 = vsel %vm5890_vm7, 4294967295, %v8028_v5  ;;  %v645_v7 = vpop.f32.mrb[24].mxu0  ;;  %4090 = vmatprep.subr.msk.bf16.mxu0 %vm5890_vm7, %v7858_v49  ;;  %v5897_v8 = vpop.f32.mrb[24].mxu1 }
 0x187   : > { %8030 = vst [vmem:[#allocation21_spill] sm:$0xff] %v8029_v5  ;;  %v768_v9 = vmul.f32 0.17677669, %v645_v7  ;;  %v647_v13 = vpop.f32.mrb[25].mxu0  ;;  %4092 = vmatpush1.bf16.msk.msra.mxu0 %vm5886_vm2, %v7858_v49  ;;  %v5902_v15 = vpop.f32.mrb[25].mxu1  ;;  %v8040_v7 = vmov 0 }
 0x188   : > { %v769_v16 = vmul.f32 0.17677669, %v647_v13  ;;  %v649_v18 = vpop.f32.mrb[26].mxu0  ;;  %v5904_v19 = vpop.f32.mrb[26].mxu1  ;;  %v6206_v47 = vmul.f32 0.17677669, %v5902_v15 }
 0x189   : > { %v770_v21 = vmul.f32 0.17677669, %v649_v18  ;;  %v651_v22 = vpop.f32.mrb[27].mxu0  ;;  %v5906_v27 = vpop.f32.mrb[27].mxu1  ;;  %vm1041_vm8 = vcmp.ge.f32.partialorder %v768_v9, 0.0 }
 0x18a   : > { %v771_v23 = vmul.f32 0.17677669, %v651_v22  ;;  %vm1042_vm11 = vcmp.ge.f32.partialorder %v769_v16, 0.0  ;;  %8111 = vst [vmem:[#allocation62_spill] sm:$0xff] %v6206_v47  ;;  %v6241_v15 = vmul.f32 0.17677669, %v5904_v19 }
 0x18b   : > { %vm1043_vm9 = vcmp.ge.f32.partialorder %v770_v21, 0.0 }
 0x18c   : > { %vm5908_vm12 = vmpackc.low %vm1043_vm9, %vm1041_vm8  ;;  %vm1044_vm7 = vcmp.ge.f32.partialorder %v771_v23, 0.0  ;;  %8118 = vst [vmem:[#allocation69_spill] sm:$0xff] %v6241_v15 }
 0x18d   : > { %v8032_v29 = vsel %vm5908_vm12, 4294967295, %v8031_v29  ;;  %vm5912_vm2 = vmpackc.low %vm1044_vm7, %vm1042_vm11 }
 0x18e   : > { %8033 = vst [vmem:[#allocation22_spill] sm:$0xff] %v8032_v29  ;;  %v8035_v30 = vsel %vm5912_vm2, 4294967295, %v8034_v30  ;;  %v655_v32 = vpop.f32.mrb[28].mxu0  ;;  %4094 = vmatprep.subr.msk.bf16.mxu0 %vm5912_vm2, %v7858_v49  ;;  %v5919_v34 = vpop.f32.mrb[28].mxu1 }
 0x18f   : > { %8036 = vst [vmem:[#allocation23_spill] sm:$0xff] %v8035_v30  ;;  %v772_v36 = vmul.f32 0.17677669, %v655_v32  ;;  %v657_v37 = vpop.f32.mrb[29].mxu0  ;;  %4096 = vmatpush1.bf16.msk.msra.mxu0 %vm5908_vm12, %v7858_v49  ;;  %v5924_v38 = vpop.f32.mrb[29].mxu1 }
 0x190   : > { %v773_v44 = vmul.f32 0.17677669, %v657_v37  ;;  %v659_v48 = vpop.f32.mrb[30].mxu0  ;;  %v5926_v51 = vpop.f32.mrb[30].mxu1  ;;  %v8046_v37 = vmov 0 }
 0x191   : > { %v774_v54 = vmul.f32 0.17677669, %v659_v48  ;;  %v661_v55 = vpop.f32.mrb[31].mxu0  ;;  %v5928_v59 = vpop.f32.mrb[31].mxu1  ;;  %vm1045_vm7 = vcmp.ge.f32.partialorder %v772_v36, 0.0  ;;  %v8043_v36 = vmov 0 }
 0x192   : > { %v775_v58 = vmul.f32 0.17677669, %v661_v55  ;;  %vm1046_vm9 = vcmp.ge.f32.partialorder %v773_v44, 0.0  ;;  %v6261_v19 = vmul.f32 0.17677669, %v5926_v51 }
 0x193   : > { %vm1047_vm8 = vcmp.ge.f32.partialorder %v774_v54, 0.0 }
 0x194   : > { %vm5930_vm11 = vmpackc.low %vm1047_vm8, %vm1045_vm7  ;;  %vm1048_vm2 = vcmp.ge.f32.partialorder %v775_v58, 0.0  ;;  %8120 = vst [vmem:[#allocation71_spill] sm:$0xff] %v6261_v19 }
 0x195   : > { %v8038_v63 = vsel %vm5930_vm11, 4294967295, %v8037_v63  ;;  %vm5934_vm12 = vmpackc.low %vm1048_vm2, %vm1046_vm9 }
 0x196   : > { %8039 = vst [vmem:[#allocation24_spill] sm:$0xff] %v8038_v63  ;;  %v8041_v7 = vsel %vm5934_vm12, 4294967295, %v8040_v7  ;;  %v665_v9 = vpop.f32.mrb[32].mxu0  ;;  %4098 = vmatprep.subr.msk.bf16.mxu0 %vm5934_vm12, %v7858_v49 }
 0x197   : > { %8042 = vst [vmem:[#allocation25_spill] sm:$0xff] %v8041_v7  ;;  %v776_v13 = vmul.f32 0.17677669, %v665_v9  ;;  %v667_v16 = vpop.f32.mrb[33].mxu0  ;;  %4100 = vmatpush1.bf16.msk.msra.mxu0 %vm5930_vm11, %v7858_v49 }
 0x198   : > { %v777_v18 = vmul.f32 0.17677669, %v667_v16  ;;  %v669_v21 = vpop.f32.mrb[34].mxu0 }
 0x199   : > { %v778_v22 = vmul.f32 0.17677669, %v669_v21  ;;  %v671_v23 = vpop.f32.mrb[35].mxu0  ;;  %vm1049_vm2 = vcmp.ge.f32.partialorder %v776_v13, 0.0  ;;  %v8052_v21 = vmov 0 }
 0x19a   : > { %v779_v32 = vmul.f32 0.17677669, %v671_v23  ;;  %vm1050_vm8 = vcmp.ge.f32.partialorder %v777_v18, 0.0  ;;  %v8049_v18 = vmov 0 }
 0x19b   : > { %vm1051_vm7 = vcmp.ge.f32.partialorder %v778_v22, 0.0 }
 0x19c   : > { %vm5944_vm9 = vmpackc.low %vm1051_vm7, %vm1049_vm2  ;;  %vm1052_vm14 = vcmp.ge.f32.partialorder %v779_v32, 0.0 }
 0x19d   : > { %v8044_v36 = vsel %vm5944_vm9, 4294967295, %v8043_v36  ;;  %vm5948_vm12 = vmpackc.low %vm1052_vm14, %vm1050_vm8 }
 0x19e   : > { %8045 = vst [vmem:[#allocation26_spill] sm:$0xff] %v8044_v36  ;;  %v8047_v37 = vsel %vm5948_vm12, 4294967295, %v8046_v37  ;;  %v675_v44 = vpop.f32.mrb[36].mxu0  ;;  %4102 = vmatprep.subr.msk.bf16.mxu0 %vm5948_vm12, %v7858_v49 }
 0x19f   : > { %8048 = vst [vmem:[#allocation27_spill] sm:$0xff] %v8047_v37  ;;  %v780_v48 = vmul.f32 0.17677669, %v675_v44  ;;  %v677_v54 = vpop.f32.mrb[37].mxu0  ;;  %4104 = vmatpush1.bf16.msk.msra.mxu0 %vm5944_vm9, %v7858_v49 }
 0x1a0   : > { %v781_v55 = vmul.f32 0.17677669, %v677_v54  ;;  %v679_v58 = vpop.f32.mrb[38].mxu0 }
 0x1a1   : > { %v782_v9 = vmul.f32 0.17677669, %v679_v58  ;;  %v681_v13 = vpop.f32.mrb[39].mxu0  ;;  %vm1053_vm14 = vcmp.ge.f32.partialorder %v780_v48, 0.0 }
 0x1a2   : > { %v783_v16 = vmul.f32 0.17677669, %v681_v13  ;;  %vm1054_vm7 = vcmp.ge.f32.partialorder %v781_v55, 0.0  ;;  %v8058_v13 = vmov 0 }
 0x1a3   : > { %vm1055_vm2 = vcmp.ge.f32.partialorder %v782_v9, 0.0  ;;  %v8055_v9 = vmov 0 }
 0x1a4   : > { %vm5958_vm8 = vmpackc.low %vm1055_vm2, %vm1053_vm14  ;;  %vm1056_vm11 = vcmp.ge.f32.partialorder %v783_v16, 0.0 }
 0x1a5   : > { %v8050_v18 = vsel %vm5958_vm8, 4294967295, %v8049_v18  ;;  %vm5962_vm12 = vmpackc.low %vm1056_vm11, %vm1054_vm7 }
 0x1a6   : > { %8051 = vst [vmem:[#allocation28_spill] sm:$0xff] %v8050_v18  ;;  %v8053_v21 = vsel %vm5962_vm12, 4294967295, %v8052_v21  ;;  %v685_v22 = vpop.f32.mrb[40].mxu0  ;;  %4106 = vmatprep.subr.msk.bf16.mxu0 %vm5962_vm12, %v7858_v49 }
 0x1a7   : > { %8054 = vst [vmem:[#allocation29_spill] sm:$0xff] %v8053_v21  ;;  %v784_v23 = vmul.f32 0.17677669, %v685_v22  ;;  %v687_v32 = vpop.f32.mrb[41].mxu0  ;;  %4108 = vmatpush1.bf16.msk.msra.mxu0 %vm5958_vm8, %v7858_v49 }
 0x1a8   : > { %v785_v44 = vmul.f32 0.17677669, %v687_v32  ;;  %v689_v48 = vpop.f32.mrb[42].mxu0 }
 0x1a9   : > { %v786_v54 = vmul.f32 0.17677669, %v689_v48  ;;  %v691_v55 = vpop.f32.mrb[43].mxu0  ;;  %vm1057_vm11 = vcmp.ge.f32.partialorder %v784_v23, 0.0 }
 0x1aa   : > { %v787_v58 = vmul.f32 0.17677669, %v691_v55  ;;  %vm1058_vm2 = vcmp.ge.f32.partialorder %v785_v44, 0.0 }
 0x1ab   : > { %vm1059_vm14 = vcmp.ge.f32.partialorder %v786_v54, 0.0 }
 0x1ac   : > { %vm5972_vm7 = vmpackc.low %vm1059_vm14, %vm1057_vm11  ;;  %vm1060_vm9 = vcmp.ge.f32.partialorder %v787_v58, 0.0  ;;  %v8061_v58 = vmov 0 }
 0x1ad   : > { %v8056_v9 = vsel %vm5972_vm7, 4294967295, %v8055_v9  ;;  %vm5976_vm12 = vmpackc.low %vm1060_vm9, %vm1058_vm2 }
 0x1ae   : > { %8057 = vst [vmem:[#allocation30_spill] sm:$0xff] %v8056_v9  ;;  %v8059_v13 = vsel %vm5976_vm12, 4294967295, %v8058_v13  ;;  %v695_v16 = vpop.f32.mrb[44].mxu0  ;;  %4110 = vmatprep.subr.msk.bf16.mxu0 %vm5976_vm12, %v7858_v49  ;;  %v8067_v9 = vmov 0 }
 0x1af   : > { %8060 = vst [vmem:[#allocation31_spill] sm:$0xff] %v8059_v13  ;;  %v788_v22 = vmul.f32 0.17677669, %v695_v16  ;;  %v697_v32 = vpop.f32.mrb[45].mxu0  ;;  %4112 = vmatpush1.bf16.msk.msra.mxu0 %vm5972_vm7, %v7858_v49  ;;  %v8064_v16 = vmov 0 }
 0x1b0   : > { %v789_v23 = vmul.f32 0.17677669, %v697_v32  ;;  %v699_v44 = vpop.f32.mrb[46].mxu0 }
 0x1b1   : > { %v790_v48 = vmul.f32 0.17677669, %v699_v44  ;;  %v701_v54 = vpop.f32.mrb[47].mxu0  ;;  %vm1061_vm9 = vcmp.ge.f32.partialorder %v788_v22, 0.0 }
 0x1b2   : > { %v791_v55 = vmul.f32 0.17677669, %v701_v54  ;;  %vm1062_vm14 = vcmp.ge.f32.partialorder %v789_v23, 0.0 }
 0x1b3   : > { %vm1063_vm11 = vcmp.ge.f32.partialorder %v790_v48, 0.0 }
 0x1b4   : > { %vm5986_vm2 = vmpackc.low %vm1063_vm11, %vm1061_vm9  ;;  %vm1064_vm8 = vcmp.ge.f32.partialorder %v791_v55, 0.0 }
 0x1b5   : > { %v8062_v58 = vsel %vm5986_vm2, 4294967295, %v8061_v58  ;;  %vm5990_vm12 = vmpackc.low %vm1064_vm8, %vm1062_vm14 }
 0x1b6   : > { %8063 = vst [vmem:[#allocation32_spill] sm:$0xff] %v8062_v58  ;;  %v8065_v16 = vsel %vm5990_vm12, 4294967295, %v8064_v16  ;;  %v705_v13 = vpop.f32.mrb[48].mxu0  ;;  %4114 = vmatprep.subr.msk.bf16.mxu0 %vm5990_vm12, %v7858_v49  ;;  %v8073_v58 = vmov 0 }
 0x1b7   : > { %8066 = vst [vmem:[#allocation33_spill] sm:$0xff] %v8065_v16  ;;  %v792_v32 = vmul.f32 0.17677669, %v705_v13  ;;  %v707_v44 = vpop.f32.mrb[49].mxu0  ;;  %4116 = vmatpush1.bf16.msk.msra.mxu0 %vm5986_vm2, %v7858_v49  ;;  %v8070_v13 = vmov 0 }
 0x1b8   : > { %v793_v22 = vmul.f32 0.17677669, %v707_v44  ;;  %v709_v23 = vpop.f32.mrb[50].mxu0 }
 0x1b9   : > { %v794_v48 = vmul.f32 0.17677669, %v709_v23  ;;  %v711_v54 = vpop.f32.mrb[51].mxu0  ;;  %vm1065_vm8 = vcmp.ge.f32.partialorder %v792_v32, 0.0 }
 0x1ba   : > { %v795_v55 = vmul.f32 0.17677669, %v711_v54  ;;  %vm1066_vm11 = vcmp.ge.f32.partialorder %v793_v22, 0.0 }
 0x1bb   : > { %vm1067_vm9 = vcmp.ge.f32.partialorder %v794_v48, 0.0 }
 0x1bc   : > { %vm6000_vm14 = vmpackc.low %vm1067_vm9, %vm1065_vm8  ;;  %vm1068_vm7 = vcmp.ge.f32.partialorder %v795_v55, 0.0 }
 0x1bd   : > { %v8068_v9 = vsel %vm6000_vm14, 4294967295, %v8067_v9  ;;  %vm6004_vm12 = vmpackc.low %vm1068_vm7, %vm1066_vm11 }
 0x1be   : > { %8069 = vst [vmem:[#allocation34_spill] sm:$0xff] %v8068_v9  ;;  %v8071_v13 = vsel %vm6004_vm12, 4294967295, %v8070_v13  ;;  %v715_v16 = vpop.f32.mrb[52].mxu0  ;;  %4118 = vmatprep.subr.msk.bf16.mxu0 %vm6004_vm12, %v7858_v49  ;;  %v8079_v9 = vmov 0 }
 0x1bf   : > { %8072 = vst [vmem:[#allocation35_spill] sm:$0xff] %v8071_v13  ;;  %v796_v44 = vmul.f32 0.17677669, %v715_v16  ;;  %v717_v23 = vpop.f32.mrb[53].mxu0  ;;  %4120 = vmatpush1.bf16.msk.msra.mxu0 %vm6000_vm14, %v7858_v49  ;;  %v8076_v16 = vmov 0 }
 0x1c0   : > { %v797_v32 = vmul.f32 0.17677669, %v717_v23  ;;  %v719_v22 = vpop.f32.mrb[54].mxu0 }
 0x1c1   : > { %v798_v48 = vmul.f32 0.17677669, %v719_v22  ;;  %v721_v54 = vpop.f32.mrb[55].mxu0  ;;  %vm1069_vm7 = vcmp.ge.f32.partialorder %v796_v44, 0.0 }
 0x1c2   : > { %v799_v55 = vmul.f32 0.17677669, %v721_v54  ;;  %vm1070_vm9 = vcmp.ge.f32.partialorder %v797_v32, 0.0 }
 0x1c3   : > { %vm1071_vm8 = vcmp.ge.f32.partialorder %v798_v48, 0.0 }
 0x1c4   : > { %vm6014_vm11 = vmpackc.low %vm1071_vm8, %vm1069_vm7  ;;  %vm1072_vm2 = vcmp.ge.f32.partialorder %v799_v55, 0.0 }
 0x1c5   : > { %v8074_v58 = vsel %vm6014_vm11, 4294967295, %v8073_v58  ;;  %vm6018_vm12 = vmpackc.low %vm1072_vm2, %vm1070_vm9 }
 0x1c6   : > { %8075 = vst [vmem:[#allocation36_spill] sm:$0xff] %v8074_v58  ;;  %v8077_v16 = vsel %vm6018_vm12, 4294967295, %v8076_v16  ;;  %v725_v13 = vpop.f32.mrb[56].mxu0  ;;  %4122 = vmatprep.subr.msk.bf16.mxu0 %vm6018_vm12, %v7858_v49  ;;  %v6043_v58 = vmul.f32 0.17677669, %v5754_v33  ;;  %v4973_v33 = vld [vmem:[%s5765_s14 + $0x40] sm:$0xff]  }
 0x1c7   : > { %8078 = vst [vmem:[#allocation37_spill] sm:$0xff] %v8077_v16  ;;  %v800_v23 = vmul.f32 0.17677669, %v725_v13  ;;  %v727_v22 = vpop.f32.mrb[57].mxu0  ;;  %4124 = vmatpush1.bf16.msk.msra.mxu0 %vm6014_vm11, %v7858_v49  ;;  %v8082_v13 = vmov 0 }
 0x1c8   : > { %v801_v44 = vmul.f32 0.17677669, %v727_v22  ;;  %v729_v32 = vpop.f32.mrb[58].mxu0  ;;  %8085 = vst [vmem:[#allocation40_spill] sm:$0xff] %v6043_v58  ;;  %vm7835_vm11 = vcmp.ge.f32.partialorder %v6043_v58, 0.0 }
 0x1c9   : > { %v802_v48 = vmul.f32 0.17677669, %v729_v32  ;;  %v731_v54 = vpop.f32.mrb[59].mxu0  ;;  %vm1073_vm2 = vcmp.ge.f32.partialorder %v800_v23, 0.0 }
 0x1ca   : > { %v803_v55 = vmul.f32 0.17677669, %v731_v54  ;;  %vm1074_vm8 = vcmp.ge.f32.partialorder %v801_v44, 0.0 }
 0x1cb   : > { %vm1075_vm7 = vcmp.ge.f32.partialorder %v802_v48, 0.0 }
 0x1cc   : > { %vm6028_vm9 = vmpackc.low %vm1075_vm7, %vm1073_vm2  ;;  %vm1076_vm14 = vcmp.ge.f32.partialorder %v803_v55, 0.0 }
 0x1cd   : > { %v8080_v9 = vsel %vm6028_vm9, 4294967295, %v8079_v9  ;;  %vm6032_vm12 = vmpackc.low %vm1076_vm14, %vm1074_vm8 }
 0x1ce   : > { %8081 = vst [vmem:[#allocation38_spill] sm:$0xff] %v8080_v9  ;;  %v8083_v13 = vsel %vm6032_vm12, 4294967295, %v8082_v13  ;;  %v735_v16 = vpop.f32.mrb[60].mxu0  ;;  %4126 = vmatprep.subr.msk.bf16.mxu0 %vm6032_vm12, %v7858_v49 }
 0x1cf   : > { %8084 = vst [vmem:[#allocation39_spill] sm:$0xff] %v8083_v13  ;;  %v804_v22 = vmul.f32 0.17677669, %v735_v16  ;;  %v737_v32 = vpop.f32.mrb[61].mxu0  ;;  %4128 = vmatpush1.bf16.msk.msra.mxu0 %vm6028_vm9, %v7858_v49  ;;  %v6046_v13 = vmul.f32 0.17677669, %v5792_v53 }
 0x1d0   : > { %v805_v23 = vmul.f32 0.17677669, %v737_v32  ;;  %v739_v44 = vpop.f32.mrb[62].mxu0  ;;  %v6049_v16 = vmul.f32 0.17677669, %v5796_v60  ;;  %v8088_v32 = vmov 0 }
 0x1d1   : > { %v806_v48 = vmul.f32 0.17677669, %v739_v44  ;;  %v741_v54 = vpop.f32.mrb[63].mxu0  ;;  %vm1077_vm14 = vcmp.ge.f32.partialorder %v804_v22, 0.0  ;;  %8086 = vst [vmem:[#allocation41_spill] sm:$0xff] %v6046_v13  ;;  %v8092_v22 = vmov 0 }
 0x1d2   : > { %v807_v55 = vmul.f32 0.17677669, %v741_v54  ;;  %8087 = vst [vmem:[#allocation42_spill] sm:$0xff] %v6049_v16  ;;  %vm1078_vm7 = vcmp.ge.f32.partialorder %v805_v23, 0.0  ;;  %v6056_v44 = vmul.f32 0.17677669, %v5756_v39 }
 0x1d3   : > { %vm1079_vm2 = vcmp.ge.f32.partialorder %v806_v48, 0.0  ;;  %v4974_v53 = vld [vmem:[%s5765_s14] sm:$0xff]   ;;  %v4975_v39 = vld [vmem:[%s5765_s14 + $0x48] sm:$0xff]   ;;  %v6087_v23 = vmul.f32 0.17677669, %v5814_v3 }
 0x1d4   : > { %vm6051_vm8 = vmpackc.low %vm1079_vm2, %vm1077_vm14  ;;  %vm1080_vm9 = vcmp.ge.f32.partialorder %v807_v55, 0.0  ;;  %8091 = vst [vmem:[#allocation44_spill] sm:$0xff] %v6056_v44  ;;  %vm7833_vm14 = vcmp.ge.f32.partialorder %v6046_v13, 0.0  ;;  %vm7832_vm2 = vcmp.ge.f32.partialorder %v6049_v16, 0.0  ;;  %v4976_v60 = vld [vmem:[%s5765_s14 + $0x8] sm:$0xff]  }
 0x1d5   : > { %v8089_v32 = vsel %vm6051_vm8, 4294967295, %v8088_v32  ;;  %vm6059_vm12 = vmpackc.low %vm1080_vm9, %vm1078_vm7  ;;  %vm7834_vm9 = vcmp.ge.f32.partialorder %v6056_v44, 0.0  ;;  %8095 = vst [vmem:[#allocation46_spill] sm:$0xff] %v6087_v23  ;;  %v6090_v48 = vmul.f32 0.17677669, %v5818_v10 }
 0x1d6   : > { %8090 = vst [vmem:[#allocation43_spill] sm:$0xff] %v8089_v32  ;;  %v8093_v22 = vsel %vm6059_vm12, 4294967295, %v8092_v22  ;;  %4130 = vmatprep.subr.msk.bf16.mxu0 %vm6059_vm12, %v7858_v49  ;;  %vm4137_vm7 = vmpackc.low %vm7832_vm2, %vm7833_vm14  ;;  %v6093_v54 = vmul.f32 0.17677669, %v5782_v50  ;;  %v6096_v55 = vmul.f32 0.17677669, %v5794_v56 }
 0x1d7   : > { %8094 = vst [vmem:[#allocation45_spill] sm:$0xff] %v8093_v22  ;;  %4132 = vmatpush1.bf16.msk.msra.mxu0 %vm6051_vm8, %v7858_v49  ;;  %vm4135_vm8 = vmpackc.low %vm7834_vm9, %vm7835_vm11  ;;  %v4979_v50 = vld [vmem:[%s5765_s14 + $0x58] sm:$0xff]   ;;  %v6117_v3 = vmul.f32 0.17677669, %v5836_v17  ;;  %v6120_v10 = vmul.f32 0.17677669, %v5840_v24 }
 0x1d8   : > { %4453 = vmatprep.subr.bf16.mxu0 %v4973_v33  ;;  %8096 = vst [vmem:[#allocation47_spill] sm:$0xff] %v6090_v48  ;;  %8097 = vst [vmem:[#allocation48_spill] sm:$0xff] %v6093_v54  ;;  %v4977_v33 = vld [vmem:[%s5765_s14 + $0x50] sm:$0xff]   ;;  %vm7839_vm2 = vcmp.ge.f32.partialorder %v6093_v54, 0.0  ;;  %vm7838_vm14 = vcmp.ge.f32.partialorder %v6096_v55, 0.0  ;;  %v4980_v56 = vld [vmem:[%s5765_s14 + $0x18] sm:$0xff]  }
 0x1d9   : > { %8098 = vst [vmem:[#allocation49_spill] sm:$0xff] %v6096_v55  ;;  %vm4139_vm11 = vmpackc.low %vm7838_vm14, %vm7839_vm2  ;;  %v6147_v17 = vmul.f32 0.17677669, %v5858_v31  ;;  %v6150_v24 = vmul.f32 0.17677669, %v5862_v40  ;;  %v4987_v31 = vld [vmem:[%s5765_s14 + $0x78] sm:$0xff]  }
 0x1da   : > { %4136 = vmatmul.mubr.msk.bf16.vlgmr.msra.gmra.mrb[64].mxu0 %vm4135_vm8, %v7858_v49  ;;  %vm7837_vm8 = vcmp.ge.f32.partialorder %v6087_v23, 0.0  ;;  %8099 = vst [vmem:[#allocation50_spill] sm:$0xff] %v6117_v3  ;;  %8100 = vst [vmem:[#allocation51_spill] sm:$0xff] %v6120_v10  ;;  %v6180_v40 = vmul.f32 0.17677669, %v5884_v2  ;;  %vm7940_vm12 = vcmp.ge.f32.partialorder %v6261_v19, 0.0 }
 0x1db   : > { %4454 = vmatpush3.bf16.msra.mxu0 %v4974_v53  ;;  %4138 = vmatprep.mubr.msk.bf16.mxu0 %vm4137_vm7, %v7858_v49  ;;  %v4978_v53 = vld [vmem:[%s5765_s14 + $0x10] sm:$0xff]   ;;  %vm7836_vm7 = vcmp.ge.f32.partialorder %v6090_v48, 0.0  ;;  %8103 = vst [vmem:[#allocation54_spill] sm:$0xff] %v6147_v17  ;;  %8104 = vst [vmem:[#allocation55_spill] sm:$0xff] %v6150_v24  ;;  %v6238_v2 = vmul.f32 0.17677669, %v5897_v8 }
 0x1dc   : > { %4455 = vmatprep.subr.bf16.mxu0 %v4975_v39  ;;  %vm4141_vm9 = vmpackc.low %vm7836_vm7, %vm7837_vm8  ;;  %v6123_v39 = vmul.f32 0.17677669, %v5809_v0  ;;  %v4983_v0 = vld [vmem:[%s5765_s14 + $0x68] sm:$0xff]   ;;  %8108 = vst [vmem:[#allocation59_spill] sm:$0xff] %v6180_v40  ;;  %v6258_v8 = vmul.f32 0.17677669, %v5919_v34 }
 0x1dd   : > { %8117 = vst [vmem:[#allocation68_spill] sm:$0xff] %v6238_v2 }
 0x1de   : > { %8101 = vst [vmem:[#allocation52_spill] sm:$0xff] %v6123_v39  ;;  %vm7843_vm7 = vcmp.ge.f32.partialorder %v6123_v39, 0.0  ;;  %8119 = vst [vmem:[#allocation70_spill] sm:$0xff] %v6258_v8 }
 0x1df   : > { %4456 = vmatpush3.bf16.msra.mxu0 %v4976_v60  ;;  %v6126_v60 = vmul.f32 0.17677669, %v5816_v6  ;;  %v4984_v6 = vld [vmem:[%s5765_s14 + $0x28] sm:$0xff]  }
 0x1e0   : > { %4457 = vmatprep.subr.bf16.mxu0 %v4977_v33  ;;  %v4981_v33 = vld [vmem:[%s5765_s14 + $0x60] sm:$0xff]  }
 0x1e1   : > { %8102 = vst [vmem:[#allocation53_spill] sm:$0xff] %v6126_v60  ;;  %vm7842_vm8 = vcmp.ge.f32.partialorder %v6126_v60, 0.0 }
 0x1e2   : > { %4140 = vmatmul.mubr.msk.bf16.gmra.mrb[68].mxu0 %vm4139_vm11, %v7858_v49  ;;  %vm7841_vm11 = vcmp.ge.f32.partialorder %v6117_v3, 0.0  ;;  %vm4143_vm2 = vmpackc.low %vm7842_vm8, %vm7843_vm7 }
 0x1e3   : > { %4458 = vmatpush3.bf16.msra.mxu0 %v4978_v53  ;;  %4142 = vmatprep.mubr.msk.bf16.mxu0 %vm4141_vm9, %v7858_v49  ;;  %v4982_v53 = vld [vmem:[%s5765_s14 + $0x20] sm:$0xff]   ;;  %vm7840_vm9 = vcmp.ge.f32.partialorder %v6120_v10, 0.0 }
 0x1e4   : > { %4459 = vmatprep.subr.bf16.mxu0 %v4979_v50  ;;  %vm4145_vm14 = vmpackc.low %vm7840_vm9, %vm7841_vm11  ;;  %v6153_v50 = vmul.f32 0.17677669, %v5831_v14  ;;  %v4988_v14 = vld [vmem:[%s5765_s14 + $0x38] sm:$0xff]  }
 0x1e6   : > { %8105 = vst [vmem:[#allocation56_spill] sm:$0xff] %v6153_v50  ;;  %vm7847_vm9 = vcmp.ge.f32.partialorder %v6153_v50, 0.0 }
 0x1e7   : > { %4460 = vmatpush3.bf16.msra.mxu0 %v4980_v56  ;;  %v6156_v56 = vmul.f32 0.17677669, %v5838_v20  ;;  %v6177_v20 = vmul.f32 0.17677669, %v5880_v57  ;;  %v6215_v57 = vmul.f32 0.17677669, %v5882_v1 }
 0x1e8   : > { %4461 = vmatprep.subr.bf16.mxu0 %v4981_v33  ;;  %v4985_v33 = vld [vmem:[%s5765_s14 + $0x70] sm:$0xff]   ;;  %v6235_v1 = vmul.f32 0.17677669, %v5928_v59 }
 0x1e9   : > { %8106 = vst [vmem:[#allocation57_spill] sm:$0xff] %v6156_v56  ;;  %vm7846_vm11 = vcmp.ge.f32.partialorder %v6156_v56, 0.0  ;;  %8107 = vst [vmem:[#allocation58_spill] sm:$0xff] %v6177_v20 }
 0x1ea   : > { %4144 = vmatmul.mubr.msk.bf16.gmra.mrb[72].mxu0 %vm4143_vm2, %v7858_v49  ;;  %vm7845_vm2 = vcmp.ge.f32.partialorder %v6147_v17, 0.0  ;;  %vm4147_vm7 = vmpackc.low %vm7846_vm11, %vm7847_vm9  ;;  %8114 = vst [vmem:[#allocation65_spill] sm:$0xff] %v6215_v57 }
 0x1eb   : > { %4462 = vmatpush3.bf16.msra.mxu0 %v4982_v53  ;;  %4146 = vmatprep.mubr.msk.bf16.mxu0 %vm4145_vm14, %v7858_v49  ;;  %v4986_v53 = vld [vmem:[%s5765_s14 + $0x30] sm:$0xff]   ;;  %vm7844_vm14 = vcmp.ge.f32.partialorder %v6150_v24, 0.0  ;;  %8116 = vst [vmem:[#allocation67_spill] sm:$0xff] %v6235_v1 }
 0x1ec   : > { %4463 = vmatprep.subr.bf16.mxu0 %v4983_v0  ;;  %vm4149_vm8 = vmpackc.low %vm7844_vm14, %vm7845_vm2  ;;  %v6183_v0 = vmul.f32 0.17677669, %v5853_v28  ;;  %vm7848_vm14 = vcmp.ge.f32.partialorder %v6180_v40, 0.0  ;;  %v6209_v28 = vmul.f32 0.17677669, %v5906_v27 }
 0x1ee   : > { %8109 = vst [vmem:[#allocation60_spill] sm:$0xff] %v6183_v0  ;;  %8112 = vst [vmem:[#allocation63_spill] sm:$0xff] %v6209_v28 }
 0x1ef   : > { %4464 = vmatpush3.bf16.msra.mxu0 %v4984_v6  ;;  %v6186_v6 = vmul.f32 0.17677669, %v5860_v35  ;;  %v6212_v35 = vmul.f32 0.17677669, %v5878_v52  ;;  %v6232_v52 = vmul.f32 0.17677669, %v5924_v38 }
 0x1f0   : > { %4465 = vmatprep.subr.bf16.mxu0 %v4985_v33 }
 0x1f1   : > { %8110 = vst [vmem:[#allocation61_spill] sm:$0xff] %v6186_v6  ;;  %vm7850_vm2 = vcmp.ge.f32.partialorder %v6186_v6, 0.0  ;;  %8113 = vst [vmem:[#allocation64_spill] sm:$0xff] %v6212_v35 }
 0x1f2   : > { %4148 = vmatmul.mubr.msk.bf16.gmra.mrb[76].mxu0 %vm4147_vm7, %v7858_v49  ;;  %vm7849_vm7 = vcmp.ge.f32.partialorder %v6177_v20, 0.0  ;;  %8115 = vst [vmem:[#allocation66_spill] sm:$0xff] %v6232_v52 }
 0x1f3   : > { %4466 = vmatpush3.bf16.msra.mxu0 %v4986_v53  ;;  %4150 = vmatprep.mubr.msk.bf16.mxu0 %vm4149_vm8, %v7858_v49  ;;  %vm7855_vm8 = vcmp.ge.f32.partialorder %v6183_v0, 0.0  ;;  %vm4153_vm11 = vmpackc.low %vm7848_vm14, %vm7849_vm7  ;;  %vm7851_vm14 = vcmp.ge.f32.partialorder %v6209_v28, 0.0 }
 0x1f4   : > { %4467 = vmatprep.subr.bf16.mxu0 %v4987_v31  ;;  %vm4151_vm9 = vmpackc.low %vm7850_vm2, %vm7855_vm8  ;;  %vm1269_vm8 = vcmp.ge.f32.partialorder %v6258_v8, 0.0 }
 0x1f7   : > { %4468 = vmatpush3.bf16.msra.mxu0 %v4988_v14 }
 0x1f8   : > { %4182 = vmatprep.subr.msk.bf16.mxu0 %vm5773_vm6, %v7858_v49  ;;  %vm7852_vm6 = vcmp.ge.f32.partialorder %v6206_v47, 0.0 }
 0x1f9   : > { %vm4157_vm7 = vmpackc.low %vm7851_vm14, %vm7852_vm6  ;;  %vm1270_vm14 = vcmp.ge.f32.partialorder %v6232_v52, 0.0  ;;  %vm7857_vm6 = vcmp.ge.f32.partialorder %v6235_v1, 0.0 }
 0x1fa   : > { %4152 = vmatmul.mubr.msk.bf16.gmra.mrb[80].mxu0 %vm4151_vm9, %v7858_v49  ;;  %vm7854_vm9 = vcmp.ge.f32.partialorder %v6212_v35, 0.0 }
 0x1fb   : > { %4154 = vmatprep.mubr.msk.bf16.mxu0 %vm4153_vm11, %v7858_v49  ;;  %vm7853_vm11 = vcmp.ge.f32.partialorder %v6215_v57, 0.0 }
 0x1fc   : > { %vm4155_vm2 = vmpackc.low %vm7853_vm11, %vm7854_vm9 }
 0x1fd   : > { %vm4161_vm11 = vmpackc.low %vm7857_vm6, %vm1270_vm14 }
 0x1fe   : > { %vm4163_vm6 = vmpackc.low %vm7940_vm12, %vm1269_vm8  ;;  %vm8157_vm12 = vcmp.ge.f32.partialorder %v5767_v45, 0.0 }
 0x202   : > { %4156 = vmatmul.mubr.msk.bf16.gmra.mrb[84].mxu0 %vm4155_vm2, %v7858_v49  ;;  %vm1265_vm2 = vcmp.ge.f32.partialorder %v6238_v2, 0.0 }
 0x203   : > { %4158 = vmatprep.mubr.msk.bf16.mxu0 %vm4157_vm7, %v7858_v49  ;;  %vm1267_vm7 = vcmp.ge.f32.partialorder %v6241_v15, 0.0 }
 0x204   : > { %vm4159_vm9 = vmpackc.low %vm1267_vm7, %vm1265_vm2 }
 0x20a   : > { %4160 = vmatmul.mubr.msk.bf16.gmra.mrb[88].mxu0 %vm4159_vm9, %v7858_v49  ;;  %vm8154_vm9 = vcmp.ge.f32.partialorder %v5758_v42, 0.0 }
 0x20b   : > { %4162 = vmatprep.mubr.msk.bf16.mxu0 %vm4161_vm11, %v7858_v49  ;;  %vm8156_vm11 = vcmp.ge.f32.partialorder %v6056_v44, 0.0 }
 0x212   : > { %4164 = vmatmul.mubr.msk.bf16.gmra.mrb[92].mxu0 %vm4163_vm6, %v7858_v49  ;;  %vm8153_vm6 = vcmp.ge.f32.partialorder %v6043_v58, 0.0 }
 0x2ad   : > { %v6270_v27 = vpop.f32.mrb[64].mxu0 }
 0x2ae   : > { %8121 = vst [vmem:[#allocation72_spill] sm:$0xff] %v6270_v27  ;;  %v6274_v34 = vmul.f32 %v6270_v27, %v6043_v58  ;;  %v6276_v38 = vpop.f32.mrb[65].mxu0 }
 0x2af   : > { %8122 = vst [vmem:[#allocation73_spill] sm:$0xff] %v6276_v38  ;;  %v6280_v51 = vmul.f32 %v6276_v38, %v5758_v42  ;;  %v6282_v59 = vpop.f32.mrb[66].mxu0 }
 0x2b0   : > { %8123 = vst [vmem:[#allocation74_spill] sm:$0xff] %v6282_v59  ;;  %v6286_v53 = vpop.f32.mrb[67].mxu0  ;;  %v6290_v31 = vmul.f32 %v6282_v59, %v6056_v44 }
 0x2b1   : > { %8124 = vst [vmem:[#allocation75_spill] sm:$0xff] %v6286_v53  ;;  %v6294_v14 = vmul.f32 %v6286_v53, %v5767_v45  ;;  %v2412_v32 = vmax.f32 %v6274_v34, %v6280_v51 }
 0x2b3   : > { %2413 = vmax.xlane.f32.xlu0 %v2412_v32  ;;  %v2415_v33 = vmax.f32 %v6290_v31, %v6294_v14 }
 0x2b5   : > { %v6300_v22 = vpop.f32.mrb[68].mxu0 }
 0x2b6   : > { %8125 = vst [vmem:[#allocation76_spill] sm:$0xff] %v6300_v22  ;;  %v6306_v27 = vmul.f32 %v6300_v22, %v6093_v54  ;;  %v6308_v59 = vpop.f32.mrb[69].mxu0 }
 0x2b7   : > { %8126 = vst [vmem:[#allocation77_spill] sm:$0xff] %v6308_v59  ;;  %v6312_v9 = vmul.f32 %v6308_v59, %v6046_v13  ;;  %2416 = vmax.xlane.f32.xlu0 %v2415_v33  ;;  %v6314_v49 = vpop.f32.mrb[70].mxu0 }
 0x2b8   : > { %8127 = vst [vmem:[#allocation78_spill] sm:$0xff] %v6314_v49  ;;  %v6318_v38 = vpop.f32.mrb[71].mxu0  ;;  %v6322_v53 = vmul.f32 %v6314_v49, %v6096_v55 }
 0x2b9   : > { %8128 = vst [vmem:[#allocation79_spill] sm:$0xff] %v6318_v38  ;;  %v6326_v18 = vmul.f32 %v6318_v38, %v6049_v16  ;;  %v2418_v33 = vmax.f32 %v6306_v27, %v6312_v9 }
 0x2bb   : > { %2419 = vmax.xlane.f32.xlu1 %v2418_v33  ;;  %v2421_v32 = vmax.f32 %v6322_v53, %v6326_v18 }
 0x2bd   : > { %v6332_v36 = vpop.f32.mrb[72].mxu0 }
 0x2be   : > { %8129 = vst [vmem:[#allocation80_spill] sm:$0xff] %v6332_v36  ;;  %v6338_v22 = vmul.f32 %v6332_v36, %v6123_v39  ;;  %v6340_v49 = vpop.f32.mrb[73].mxu0 }
 0x2bf   : > { %8130 = vst [vmem:[#allocation81_spill] sm:$0xff] %v6340_v49  ;;  %v6344_v37 = vmul.f32 %v6340_v49, %v6087_v23  ;;  %2422 = vmax.xlane.f32.xlu1 %v2421_v32  ;;  %v6346_v21 = vpop.f32.mrb[74].mxu0 }
 0x2c0   : > { %8131 = vst [vmem:[#allocation82_spill] sm:$0xff] %v6346_v21  ;;  %v6350_v33 = vmul.f32 %v6346_v21, %v6126_v60  ;;  %v6354_v38 = vpop.f32.mrb[75].mxu0 }
 0x2c1   : > { %8132 = vst [vmem:[#allocation83_spill] sm:$0xff] %v6354_v38  ;;  %v6358_v63 = vmul.f32 %v6354_v38, %v6090_v48  ;;  %v2424_v32 = vmax.f32 %v6338_v22, %v6344_v37 }
 0x2c3   : > { %2425 = vmax.xlane.f32.xlu0 %v2424_v32  ;;  %v2427_v29 = vmax.f32 %v6350_v33, %v6358_v63 }
 0x2c5   : > { %2428 = vmax.xlane.f32.xlu1 %v2427_v29  ;;  %v6366_v30 = vpop.f32.mrb[76].mxu0 }
 0x2c6   : > { %8133 = vst [vmem:[#allocation84_spill] sm:$0xff] %v6366_v30  ;;  %v6370_v59 = vmul.f32 %v6366_v30, %v6153_v50  ;;  %v6372_v36 = vpop.f32.mrb[77].mxu0 }
 0x2c7   : > { %8134 = vst [vmem:[#allocation85_spill] sm:$0xff] %v6372_v36  ;;  %v6376_v21 = vmul.f32 %v6372_v36, %v6117_v3  ;;  %v6378_v7 = vpop.f32.mrb[78].mxu0 }
 0x2c8   : > { %8135 = vst [vmem:[#allocation86_spill] sm:$0xff] %v6378_v7  ;;  %v6382_v32 = vmul.f32 %v6378_v7, %v6156_v56  ;;  %v6386_v49 = vpop.f32.mrb[79].mxu0 }
 0x2c9   : > { %8136 = vst [vmem:[#allocation87_spill] sm:$0xff] %v6386_v49  ;;  %v6390_v38 = vmul.f32 %v6386_v49, %v6120_v10  ;;  %v2430_v5 = vmax.f32 %v6370_v59, %v6376_v21 }
 0x2cb   : > { %2431 = vmax.xlane.f32.xlu0 %v2430_v5  ;;  %v2433_v41 = vmax.f32 %v6382_v32, %v6390_v38 }
 0x2cd   : > { %2434 = vmax.xlane.f32.xlu1 %v2433_v41  ;;  %v6398_v43 = vpop.f32.mrb[80].mxu0 }
 0x2ce   : > { %8137 = vst [vmem:[#allocation88_spill] sm:$0xff] %v6398_v43  ;;  %v6402_v29 = vmul.f32 %v6398_v43, %v6183_v0  ;;  %v6404_v30 = vpop.f32.mrb[81].mxu0 }
 0x2cf   : > { %8138 = vst [vmem:[#allocation89_spill] sm:$0xff] %v6404_v30  ;;  %v6408_v7 = vmul.f32 %v6404_v30, %v6147_v17  ;;  %v6410_v4 = vpop.f32.mrb[82].mxu0 }
 0x2d0   : > { %8139 = vst [vmem:[#allocation90_spill] sm:$0xff] %v6410_v4  ;;  %v6414_v5 = vmul.f32 %v6410_v4, %v6186_v6  ;;  %v6418_v36 = vpop.f32.mrb[83].mxu0 }
 0x2d1   : > { %8140 = vst [vmem:[#allocation91_spill] sm:$0xff] %v6418_v36  ;;  %v6422_v49 = vmul.f32 %v6418_v36, %v6150_v24  ;;  %v2436_v26 = vmax.f32 %v6402_v29, %v6408_v7 }
 0x2d3   : > { %2437 = vmax.xlane.f32.xlu0 %v2436_v26  ;;  %v2439_v11 = vmax.f32 %v6414_v5, %v6422_v49 }
 0x2d5   : > { %2440 = vmax.xlane.f32.xlu1 %v2439_v11  ;;  %v6430_v12 = vpop.f32.mrb[84].mxu0 }
 0x2d6   : > { %8141 = vst [vmem:[#allocation92_spill] sm:$0xff] %v6430_v12  ;;  %v6434_v41 = vmul.f32 %v6430_v12, %v6212_v35  ;;  %v6436_v43 = vpop.f32.mrb[85].mxu0 }
 0x2d7   : > { %8142 = vst [vmem:[#allocation93_spill] sm:$0xff] %v6436_v43  ;;  %v6440_v4 = vmul.f32 %v6436_v43, %v6177_v20  ;;  %v6442_v25 = vpop.f32.mrb[86].mxu0 }
 0x2d8   : > { %8143 = vst [vmem:[#allocation94_spill] sm:$0xff] %v6442_v25  ;;  %v6446_v26 = vmul.f32 %v6442_v25, %v6215_v57  ;;  %v6450_v30 = vpop.f32.mrb[87].mxu0 }
 0x2d9   : > { %8144 = vst [vmem:[#allocation95_spill] sm:$0xff] %v6450_v30  ;;  %v6454_v36 = vmul.f32 %v6450_v30, %v6180_v40  ;;  %v2442_v62 = vmax.f32 %v6434_v41, %v6440_v4 }
 0x2db   : > { %2443 = vmax.xlane.f32.xlu0 %v2442_v62  ;;  %v2445_v46 = vmax.f32 %v6446_v26, %v6454_v36 }
 0x2dd   : > { %2446 = vmax.xlane.f32.xlu1 %v2445_v46  ;;  %v6462_v57 = vpop.f32.mrb[88].mxu0 }
 0x2de   : > { %8145 = vst [vmem:[#allocation96_spill] sm:$0xff] %v6462_v57  ;;  %v6466_v11 = vmul.f32 %v6462_v57, %v6238_v2  ;;  %v6468_v12 = vpop.f32.mrb[89].mxu0 }
 0x2df   : > { %8146 = vst [vmem:[#allocation97_spill] sm:$0xff] %v6468_v12  ;;  %v6472_v25 = vmul.f32 %v6468_v12, %v6206_v47  ;;  %v6474_v61 = vpop.f32.mrb[90].mxu0 }
 0x2e0   : > { %8147 = vst [vmem:[#allocation98_spill] sm:$0xff] %v6474_v61  ;;  %v6478_v62 = vmul.f32 %v6474_v61, %v6241_v15  ;;  %v6482_v43 = vpop.f32.mrb[91].mxu0 }
 0x2e1   : > { %8148 = vst [vmem:[#allocation99_spill] sm:$0xff] %v6482_v43  ;;  %v6486_v30 = vmul.f32 %v6482_v43, %v6209_v28  ;;  %v2448_v47 = vmax.f32 %v6466_v11, %v6472_v25 }
 0x2e3   : > { %2449 = vmax.xlane.f32.xlu0 %v2448_v47  ;;  %v2451_v15 = vmax.f32 %v6478_v62, %v6486_v30 }
 0x2e5   : > { %2452 = vmax.xlane.f32.xlu1 %v2451_v15  ;;  %v6494_v40 = vpop.f32.mrb[92].mxu0 }
 0x2e6   : > { %8149 = vst [vmem:[#allocation100_spill] sm:$0xff] %v6494_v40  ;;  %v6498_v46 = vmul.f32 %v6494_v40, %v6258_v8  ;;  %v6500_v57 = vpop.f32.mrb[93].mxu0 }
 0x2e7   : > { %8150 = vst [vmem:[#allocation101_spill] sm:$0xff] %v6500_v57  ;;  %v6504_v61 = vmul.f32 %v6500_v57, %v6232_v52  ;;  %v6506_v2 = vpop.f32.mrb[94].mxu0 }
 0x2e8   : > { %8151 = vst [vmem:[#allocation102_spill] sm:$0xff] %v6506_v2  ;;  %v6510_v47 = vmul.f32 %v6506_v2, %v6261_v19  ;;  %v6514_v12 = vpop.f32.mrb[95].mxu0 }
 0x2e9   : > { %8152 = vst [vmem:[#allocation103_spill] sm:$0xff] %v6514_v12  ;;  %v6518_v43 = vmul.f32 %v6514_v12, %v6235_v1  ;;  %v2454_v52 = vmax.f32 %v6498_v46, %v6504_v61 }
 0x2eb   : > { %2455 = vmax.xlane.f32.xlu0 %v2454_v52  ;;  %v2457_v19 = vmax.f32 %v6510_v47, %v6518_v43 }
 0x2ed   : > { %2458 = vmax.xlane.f32.xlu1 %v2457_v19 }
 0x340   : > { %v2414_v28 = vpop.xlane.xlu0 %2413 }
 0x341   : > { %v2460_v15 = vsub.f32 %v6274_v34, %v2414_v28  ;;  %v2461_v40 = vsub.f32 %v6280_v51, %v2414_v28 }
 0x343   : > { %v2492_v2 = vmul.f32 1.442695, %v2460_v15  ;;  %v2494_v20 = vmul.f32 1.442695, %v2461_v40 }
 0x344   : > { %v2417_v1 = vpop.xlane.xlu0 %2416 }
 0x345   : > { %4989 = vpow2.f32 %v2492_v2  ;;  %v2462_v35 = vsub.f32 %v6290_v31, %v2417_v1  ;;  %v2463_v8 = vsub.f32 %v6294_v14, %v2417_v1 }
 0x346   : > { %4991 = vpow2.f32 %v2494_v20 }
 0x347   : > { %v2496_v57 = vmul.f32 1.442695, %v2462_v35  ;;  %v2498_v52 = vmul.f32 1.442695, %v2463_v8 }
 0x348   : > { %v2420_v12 = vpop.xlane.xlu1 %2419 }
 0x349   : > { %4993 = vpow2.f32 %v2496_v57  ;;  %v2464_v19 = vsub.f32 %v6306_v27, %v2420_v12  ;;  %v2465_v24 = vsub.f32 %v6312_v9, %v2420_v12 }
 0x34a   : > { %4995 = vpow2.f32 %v2498_v52 }
 0x34b   : > { %v2500_v34 = vmul.f32 1.442695, %v2464_v19  ;;  %v2502_v28 = vmul.f32 1.442695, %v2465_v24 }
 0x34c   : > { %v2423_v51 = vpop.xlane.xlu1 %2422 }
 0x34d   : > { %4997 = vpow2.f32 %v2500_v34  ;;  %v2466_v40 = vsub.f32 %v6322_v53, %v2423_v51  ;;  %v2467_v2 = vsub.f32 %v6326_v18, %v2423_v51 }
 0x34e   : > { %4999 = vpow2.f32 %v2502_v28 }
 0x34f   : > { %v6534_v1 = vpop.eup %4989  ;;  %v2504_v20 = vmul.f32 1.442695, %v2466_v40  ;;  %v2506_v35 = vmul.f32 1.442695, %v2467_v2 }
 0x350   : > { %v6536_v8 = vpop.eup %4991  ;;  %v2426_v57 = vpop.xlane.xlu0 %2425 }
 0x351   : > { %5001 = vpow2.f32 %v2504_v20  ;;  %v2468_v12 = vsub.f32 %v6338_v22, %v2426_v57  ;;  %v2469_v9 = vsub.f32 %v6344_v37, %v2426_v57  ;;  %v2556_v24 = vadd.f32 %v6536_v8, %v6534_v1 }
 0x352   : > { %5003 = vpow2.f32 %v2506_v35  ;;  %v2429_v27 = vpop.xlane.xlu1 %2428 }
 0x353   : > { %v6542_v53 = vpop.eup %4993  ;;  %v2508_v18 = vmul.f32 1.442695, %v2468_v12  ;;  %v2510_v31 = vmul.f32 1.442695, %v2469_v9  ;;  %v2470_v14 = vsub.f32 %v6350_v33, %v2429_v27  ;;  %v2471_v15 = vsub.f32 %v6358_v63, %v2429_v27  ;;  %2557 = vadd.xlane.f32.xlu0 %v2556_v24 }
 0x354   : > { %v6546_v52 = vpop.eup %4995 }
 0x355   : > { %5005 = vpow2.f32 %v2508_v18  ;;  %v2512_v22 = vmul.f32 1.442695, %v2470_v14  ;;  %v2514_v19 = vmul.f32 1.442695, %v2471_v15  ;;  %v2559_v37 = vadd.f32 %v6546_v52, %v6542_v53 }
 0x356   : > { %5007 = vpow2.f32 %v2510_v31 }
 0x357   : > { %v6550_v34 = vpop.eup %4997  ;;  %5009 = vpow2.f32 %v2512_v22  ;;  %2560 = vadd.xlane.f32.xlu1 %v2559_v37 }
 0x358   : > { %v6552_v28 = vpop.eup %4999  ;;  %5011 = vpow2.f32 %v2514_v19  ;;  %v2432_v33 = vpop.xlane.xlu0 %2431 }
 0x359   : > { %v2472_v63 = vsub.f32 %v6370_v59, %v2432_v33  ;;  %v2473_v51 = vsub.f32 %v6376_v21, %v2432_v33  ;;  %v2562_v40 = vadd.f32 %v6552_v28, %v6550_v34 }
 0x35a   : > { %v2435_v2 = vpop.xlane.xlu1 %2434 }
 0x35b   : > { %v6558_v20 = vpop.eup %5001  ;;  %v2516_v35 = vmul.f32 1.442695, %v2472_v63  ;;  %v2518_v57 = vmul.f32 1.442695, %v2473_v51  ;;  %v2474_v12 = vsub.f32 %v6382_v32, %v2435_v2  ;;  %v2475_v9 = vsub.f32 %v6390_v38, %v2435_v2  ;;  %2563 = vadd.xlane.f32.xlu0 %v2562_v40 }
 0x35c   : > { %v6562_v24 = vpop.eup %5003 }
 0x35d   : > { %5013 = vpow2.f32 %v2516_v35  ;;  %v2520_v27 = vmul.f32 1.442695, %v2474_v12  ;;  %v2522_v59 = vmul.f32 1.442695, %v2475_v9  ;;  %v2565_v21 = vadd.f32 %v6562_v24, %v6558_v20 }
 0x35e   : > { %5015 = vpow2.f32 %v2518_v57 }
 0x35f   : > { %v6566_v18 = vpop.eup %5005  ;;  %5017 = vpow2.f32 %v2520_v27  ;;  %2566 = vadd.xlane.f32.xlu1 %v2565_v21 }
 0x360   : > { %v6568_v31 = vpop.eup %5007  ;;  %5019 = vpow2.f32 %v2522_v59  ;;  %v2438_v32 = vpop.xlane.xlu0 %2437 }
 0x361   : > { %v6570_v14 = vpop.eup %5009  ;;  %v2476_v38 = vsub.f32 %v6402_v29, %v2438_v32  ;;  %v2477_v15 = vsub.f32 %v6408_v7, %v2438_v32  ;;  %v2568_v22 = vadd.f32 %v6568_v31, %v6566_v18 }
 0x362   : > { %v6576_v19 = vpop.eup %5011  ;;  %v2441_v37 = vpop.xlane.xlu1 %2440 }
 0x363   : > { %v2524_v33 = vmul.f32 1.442695, %v2476_v38  ;;  %v2526_v63 = vmul.f32 1.442695, %v2477_v15  ;;  %v2478_v51 = vsub.f32 %v6414_v5, %v2441_v37  ;;  %v2479_v40 = vsub.f32 %v6422_v49, %v2441_v37  ;;  %2569 = vadd.xlane.f32.xlu0 %v2568_v22 }
 0x364   : > { %v2571_v2 = vadd.f32 %v6576_v19, %v6570_v14 }
 0x365   : > { %5021 = vpow2.f32 %v2524_v33  ;;  %v2528_v29 = vmul.f32 1.442695, %v2478_v51  ;;  %v2530_v35 = vmul.f32 1.442695, %v2479_v40 }
 0x366   : > { %5023 = vpow2.f32 %v2526_v63  ;;  %2572 = vadd.xlane.f32.xlu1 %v2571_v2 }
 0x367   : > { %v6582_v7 = vpop.eup %5013  ;;  %5025 = vpow2.f32 %v2528_v29 }
 0x368   : > { %v6584_v57 = vpop.eup %5015  ;;  %5027 = vpow2.f32 %v2530_v35  ;;  %v2444_v12 = vpop.xlane.xlu0 %2443 }
 0x369   : > { %v6586_v9 = vpop.eup %5017  ;;  %v2480_v49 = vsub.f32 %v6434_v41, %v2444_v12  ;;  %v2481_v5 = vsub.f32 %v6440_v4, %v2444_v12  ;;  %v2574_v27 = vadd.f32 %v6584_v57, %v6582_v7 }
 0x36a   : > { %v6592_v59 = vpop.eup %5019  ;;  %v2447_v21 = vpop.xlane.xlu1 %2446 }
 0x36b   : > { %v2532_v32 = vmul.f32 1.442695, %v2480_v49  ;;  %v2534_v38 = vmul.f32 1.442695, %v2481_v5  ;;  %v2482_v15 = vsub.f32 %v6446_v26, %v2447_v21  ;;  %v2483_v22 = vsub.f32 %v6454_v36, %v2447_v21  ;;  %2575 = vadd.xlane.f32.xlu0 %v2574_v27 }
 0x36c   : > { %v2577_v37 = vadd.f32 %v6592_v59, %v6586_v9 }
 0x36d   : > { %5029 = vpow2.f32 %v2532_v32  ;;  %v2536_v41 = vmul.f32 1.442695, %v2482_v15  ;;  %v2538_v33 = vmul.f32 1.442695, %v2483_v22 }
 0x36e   : > { %5031 = vpow2.f32 %v2534_v38  ;;  %2578 = vadd.xlane.f32.xlu1 %v2577_v37 }
 0x36f   : > { %v6598_v4 = vpop.eup %5021  ;;  %5033 = vpow2.f32 %v2536_v41 }
 0x370   : > { %v6600_v63 = vpop.eup %5023  ;;  %5035 = vpow2.f32 %v2538_v33  ;;  %v2450_v51 = vpop.xlane.xlu0 %2449 }
 0x371   : > { %v6602_v40 = vpop.eup %5025  ;;  %v2484_v36 = vsub.f32 %v6466_v11, %v2450_v51  ;;  %v2485_v26 = vsub.f32 %v6472_v25, %v2450_v51  ;;  %v2580_v2 = vadd.f32 %v6600_v63, %v6598_v4 }
 0x372   : > { %v6608_v29 = vpop.eup %5027  ;;  %v2453_v35 = vpop.xlane.xlu1 %2452 }
 0x373   : > { %v2540_v12 = vmul.f32 1.442695, %v2484_v36  ;;  %v2542_v49 = vmul.f32 1.442695, %v2485_v26  ;;  %v2486_v5 = vsub.f32 %v6478_v62, %v2453_v35  ;;  %v2487_v27 = vsub.f32 %v6486_v30, %v2453_v35  ;;  %2581 = vadd.xlane.f32.xlu0 %v2580_v2 }
 0x374   : > { %v2583_v21 = vadd.f32 %v6608_v29, %v6602_v40 }
 0x375   : > { %5037 = vpow2.f32 %v2540_v12  ;;  %v2544_v11 = vmul.f32 1.442695, %v2486_v5  ;;  %v2546_v32 = vmul.f32 1.442695, %v2487_v27 }
 0x376   : > { %5039 = vpow2.f32 %v2542_v49  ;;  %2584 = vadd.xlane.f32.xlu1 %v2583_v21  ;;  %v5441_v21 = vmov 0.0  }
 0x377   : > { %v6614_v25 = vpop.eup %5029  ;;  %5041 = vpow2.f32 %v2544_v11  ;;  %v3988_v11 = vsel %vm8153_vm6, 1.0, %v5441_v21  ;;  %vm8158_vm6 = vcmp.ge.f32.partialorder %v6093_v54, 0.0 }
 0x378   : > { %v6616_v38 = vpop.eup %5031  ;;  %5043 = vpow2.f32 %v2546_v32  ;;  %v2456_v15 = vpop.xlane.xlu0 %2455  ;;  %v3989_v32 = vsel %vm8154_vm9, 1.0, %v5441_v21  ;;  %vm8160_vm9 = vcmp.ge.f32.partialorder %v6096_v55, 0.0 }
 0x379   : > { %v6618_v22 = vpop.eup %5033  ;;  %v2488_v30 = vsub.f32 %v6498_v46, %v2456_v15  ;;  %v2489_v62 = vsub.f32 %v6504_v61, %v2456_v15  ;;  %v2586_v37 = vadd.f32 %v6616_v38, %v6614_v25 }
 0x37a   : > { %v6624_v41 = vpop.eup %5035  ;;  %v2459_v33 = vpop.xlane.xlu1 %2458 }
 0x37b   : > { %v2548_v51 = vmul.f32 1.442695, %v2488_v30  ;;  %v2550_v36 = vmul.f32 1.442695, %v2489_v62  ;;  %2587 = vadd.xlane.f32.xlu0 %v2586_v37  ;;  %v2490_v26 = vsub.f32 %v6510_v47, %v2459_v33  ;;  %v2491_v2 = vsub.f32 %v6518_v43, %v2459_v33 }
 0x37c   : > { %v2589_v35 = vadd.f32 %v6624_v41, %v6618_v22  ;;  %v3990_v62 = vsel %vm8156_vm11, 1.0, %v5441_v21  ;;  %v3991_v37 = vsel %vm8157_vm12, 1.0, %v5441_v21  ;;  %vm8159_vm12 = vcmp.ge.f32.partialorder %v6046_v13, 0.0 }
 0x37d   : > { %5045 = vpow2.f32 %v2548_v51  ;;  %v2552_v46 = vmul.f32 1.442695, %v2490_v26  ;;  %v2554_v12 = vmul.f32 1.442695, %v2491_v2  ;;  %v6666_v26 = vmul.f32 %v3989_v32, %v5758_v42 }
 0x37e   : > { %5047 = vpow2.f32 %v2550_v36  ;;  %2590 = vadd.xlane.f32.xlu1 %v2589_v35  ;;  %v6663_v36 = vmul.f32 %v3988_v11, %v6043_v58  ;;  %v3992_v35 = vsel %vm8158_vm6, 1.0, %v5441_v21  ;;  %v3994_v11 = vsel %vm8160_vm9, 1.0, %v5441_v21 }
 0x37f   : > { %v6630_v61 = vpop.eup %5037  ;;  %5049 = vpow2.f32 %v2552_v46  ;;  %v3993_v46 = vsel %vm8159_vm12, 1.0, %v5441_v21  ;;  %vm8161_vm11 = vcmp.ge.f32.partialorder %v6049_v16, 0.0  ;;  %v6693_v42 = vmul.f32 %v3992_v35, %v6093_v54 }
 0x380   : > { %v6632_v49 = vpop.eup %5039  ;;  %5051 = vpow2.f32 %v2554_v12  ;;  %v3995_v32 = vsel %vm8161_vm11, 1.0, %v5441_v21  ;;  %vm8162_vm6 = vcmp.ge.f32.partialorder %v6123_v39, 0.0  ;;  %vm8163_vm12 = vcmp.ge.f32.partialorder %v6087_v23, 0.0 }
 0x381   : > { %v6634_v5 = vpop.eup %5041  ;;  %v2592_v47 = vadd.f32 %v6632_v49, %v6630_v61  ;;  %v6710_v35 = vmul.f32 %v3995_v32, %v6049_v16  ;;  %vm8164_vm9 = vcmp.ge.f32.partialorder %v6126_v60, 0.0  ;;  %vm8165_vm11 = vcmp.ge.f32.partialorder %v6090_v48, 0.0 }
 0x382   : > { %v6638_v43 = vpop.eup %5043 }
 0x383   : > { %2593 = vadd.xlane.f32.xlu0 %v2592_v47  ;;  %v2595_v27 = vadd.f32 %v6638_v43, %v6634_v5  ;;  %v6679_v47 = vmul.f32 %v3990_v62, %v6056_v44  ;;  %v6696_v62 = vmul.f32 %v3993_v46, %v6046_v13  ;;  %v6707_v44 = vmul.f32 %v3994_v11, %v6096_v55 }
 0x384   : > { %v3998_v46 = vsel %vm8164_vm9, 1.0, %v5441_v21  ;;  %v3999_v13 = vsel %vm8165_vm11, 1.0, %v5441_v21  ;;  %vm8168_vm9 = vcmp.ge.f32.partialorder %v6156_v56, 0.0  ;;  %vm8169_vm11 = vcmp.ge.f32.partialorder %v6120_v10, 0.0 }
 0x385   : > { %2596 = vadd.xlane.f32.xlu1 %v2595_v27  ;;  %v6682_v27 = vmul.f32 %v3991_v37, %v5767_v45  ;;  %v3996_v37 = vsel %vm8162_vm6, 1.0, %v5441_v21  ;;  %v3997_v45 = vsel %vm8163_vm12, 1.0, %v5441_v21  ;;  %vm8166_vm6 = vcmp.ge.f32.partialorder %v6153_v50, 0.0 }
 0x386   : > { %v6721_v54 = vmul.f32 %v3996_v37, %v6123_v39  ;;  %v6724_v11 = vmul.f32 %v3997_v45, %v6087_v23  ;;  %v4000_v32 = vsel %vm8166_vm6, 1.0, %v5441_v21  ;;  %vm8167_vm12 = vcmp.ge.f32.partialorder %v6117_v3, 0.0 }
 0x387   : > { %v6648_v15 = vpop.eup %5045  ;;  %v4001_v16 = vsel %vm8167_vm12, 1.0, %v5441_v21  ;;  %v6735_v55 = vmul.f32 %v3998_v46, %v6126_v60  ;;  %v6738_v37 = vmul.f32 %v3999_v13, %v6090_v48  ;;  %v4002_v45 = vsel %vm8168_vm9, 1.0, %v5441_v21 }
 0x388   : > { %8155 = vst [vmem:[#allocation104_spill] sm:$0xff] %v6648_v15  ;;  %v6650_v30 = vpop.eup %5047  ;;  %v4003_v23 = vsel %vm8169_vm11, 1.0, %v5441_v21  ;;  %v6749_v39 = vmul.f32 %v4000_v32, %v6153_v50  ;;  %v6752_v46 = vmul.f32 %v4001_v16, %v6117_v3  ;;  %vm8172_vm6 = vcmp.ge.f32.partialorder %v6183_v0, 0.0  ;;  %v8177_v3 = vld [vmem:[#allocation55_spill] sm:$0xff] }
 0x389   : > { %v6658_v33 = vpop.eup %5049  ;;  %v2598_v51 = vadd.f32 %v6650_v30, %v6648_v15  ;;  %v4004_v13 = vsel %vm8172_vm6, 1.0, %v5441_v21  ;;  %vm8173_vm12 = vcmp.ge.f32.partialorder %v6147_v17, 0.0  ;;  %v6763_v60 = vmul.f32 %v4002_v45, %v6156_v56  ;;  %v8183_v56 = vld [vmem:[#allocation58_spill] sm:$0xff] }
 0x38a   : > { %v6668_v2 = vpop.eup %5051  ;;  %8170 = vst [vmem:[#allocation105_spill] sm:$0xff] %v6749_v39  ;;  %8171 = vst [vmem:[#allocation106_spill] sm:$0xff] %v6752_v46  ;;  %v4005_v48 = vsel %vm8173_vm12, 1.0, %v5441_v21  ;;  %v6766_v32 = vmul.f32 %v4003_v23, %v6120_v10  ;;  %vm8176_vm9 = vcmp.ge.f32.partialorder %v6186_v6, 0.0  ;;  %vm8178_vm11 = vcmp.ge.f32.partialorder %v8177_v3, 0.0  ;;  %v8181_v23 = vld [vmem:[#allocation64_spill] sm:$0xff] }
 0x38b   : > { %2599 = vadd.xlane.f32.xlu0 %v2598_v51  ;;  %v2601_v12 = vadd.f32 %v6668_v2, %v6658_v33  ;;  %v1589_v51 = vmax.f32 %v6663_v36, %v6666_v26  ;;  %8174 = vst [vmem:[#allocation107_spill] sm:$0xff] %v6763_v60  ;;  %v4006_v16 = vsel %vm8176_vm9, 1.0, %v5441_v21  ;;  %v4007_v50 = vsel %vm8178_vm11, 1.0, %v5441_v21 }
 0x38c   : > { %8175 = vst [vmem:[#allocation108_spill] sm:$0xff] %v6766_v32  ;;  %v6777_v58 = vmul.f32 %v4004_v13, %v6183_v0  ;;  %v6780_v45 = vmul.f32 %v4005_v48, %v6147_v17  ;;  %vm8182_vm6 = vcmp.ge.f32.partialorder %v8181_v23, 0.0  ;;  %vm8184_vm12 = vcmp.ge.f32.partialorder %v8183_v56, 0.0  ;;  %v8187_v48 = vld [vmem:[#allocation65_spill] sm:$0xff]  ;;  %v8189_v0 = vld [vmem:[#allocation59_spill] sm:$0xff] }
 0x38d   : > { %2602 = vadd.xlane.f32.xlu1 %v2601_v12  ;;  %v1592_v12 = vmax.f32 %v6679_v47, %v6682_v27  ;;  %v4008_v10 = vsel %vm8182_vm6, 1.0, %v5441_v21  ;;  %v4009_v15 = vsel %vm8184_vm12, 1.0, %v5441_v21  ;;  %v6794_v13 = vmul.f32 %v4007_v50, %v8177_v3  ;;  %v8193_v50 = vld [vmem:[#allocation68_spill] sm:$0xff] }
 0x38e   : > { %8179 = vst [vmem:[#allocation109_spill] sm:$0xff] %v6777_v58  ;;  %8180 = vst [vmem:[#allocation110_spill] sm:$0xff] %v6780_v45  ;;  %vm8188_vm9 = vcmp.ge.f32.partialorder %v8187_v48, 0.0  ;;  %vm8190_vm11 = vcmp.ge.f32.partialorder %v8189_v0, 0.0  ;;  %v4012_v3 = vsel %vm1265_vm2, 1.0, %v5441_v21 }
 0x38f   : > { %1590 = vmax.xlane.f32.xlu0 %v1589_v51  ;;  %v1595_v51 = vmax.f32 %v6693_v42, %v6696_v62  ;;  %8186 = vst [vmem:[#allocation112_spill] sm:$0xff] %v6794_v13  ;;  %v4010_v17 = vsel %vm8188_vm9, 1.0, %v5441_v21 }
 0x391   : > { %1593 = vmax.xlane.f32.xlu1 %v1592_v12  ;;  %v1598_v12 = vmax.f32 %v6707_v44, %v6710_v35 }
 0x393   : > { %1596 = vmax.xlane.f32.xlu0 %v1595_v51  ;;  %v1601_v51 = vmax.f32 %v6721_v54, %v6724_v11 }
 0x395   : > { %1599 = vmax.xlane.f32.xlu1 %v1598_v12  ;;  %v1604_v12 = vmax.f32 %v6735_v55, %v6738_v37 }
 0x397   : > { %1602 = vmax.xlane.f32.xlu0 %v1601_v51  ;;  %v1607_v51 = vmax.f32 %v6749_v39, %v6752_v46  ;;  %v6791_v46 = vmul.f32 %v4006_v16, %v6186_v6  ;;  %v4011_v39 = vsel %vm8190_vm11, 1.0, %v5441_v21  ;;  %v6808_v16 = vmul.f32 %v4009_v15, %v8183_v56  ;;  %v8194_v6 = vld [vmem:[#allocation62_spill] sm:$0xff]  ;;  %v8197_v15 = vld [vmem:[#allocation69_spill] sm:$0xff] }
 0x398   : > { %vm8195_vm6 = vcmp.ge.f32.partialorder %v8194_v6, 0.0  ;;  %v4014_v56 = vsel %vm1267_vm7, 1.0, %v5441_v21 }
 0x399   : > { %1605 = vmax.xlane.f32.xlu1 %v1604_v12  ;;  %v1610_v12 = vmax.f32 %v6763_v60, %v6766_v32  ;;  %8185 = vst [vmem:[#allocation111_spill] sm:$0xff] %v6791_v46  ;;  %v6805_v32 = vmul.f32 %v4008_v10, %v8181_v23  ;;  %8192 = vst [vmem:[#allocation114_spill] sm:$0xff] %v6808_v16  ;;  %v4013_v60 = vsel %vm8195_vm6, 1.0, %v5441_v21  ;;  %v8198_v23 = vld [vmem:[#allocation63_spill] sm:$0xff] }
 0x39a   : > { %v6822_v10 = vmul.f32 %v4011_v39, %v8189_v0  ;;  %vm8199_vm2 = vcmp.ge.f32.partialorder %v8198_v23, 0.0  ;;  %v8200_v39 = vld [vmem:[#allocation70_spill] sm:$0xff]  ;;  %v4016_v0 = vsel %vm1269_vm8, 1.0, %v5441_v21 }
 0x39b   : > { %1608 = vmax.xlane.f32.xlu0 %v1607_v51  ;;  %v1613_v51 = vmax.f32 %v6777_v58, %v6780_v45  ;;  %8191 = vst [vmem:[#allocation113_spill] sm:$0xff] %v6805_v32  ;;  %v6819_v45 = vmul.f32 %v4010_v17, %v8187_v48  ;;  %v4015_v58 = vsel %vm8199_vm2, 1.0, %v5441_v21  ;;  %v6836_v17 = vmul.f32 %v4013_v60, %v8194_v6  ;;  %v8201_v48 = vld [vmem:[#allocation66_spill] sm:$0xff]  ;;  %v8202_v60 = vld [vmem:[#allocation71_spill] sm:$0xff] }
 0x39c   : > { %8196 = vst [vmem:[#allocation115_spill] sm:$0xff] %v6822_v10  ;;  %vm8203_vm7 = vcmp.ge.f32.partialorder %v8202_v60, 0.0 }
 0x39d   : > { %1611 = vmax.xlane.f32.xlu1 %v1610_v12  ;;  %v1616_v12 = vmax.f32 %v6791_v46, %v6794_v13  ;;  %v6833_v13 = vmul.f32 %v4012_v3, %v8193_v50  ;;  %v4017_v46 = vsel %vm1270_vm14, 1.0, %v5441_v21  ;;  %v6850_v3 = vmul.f32 %v4015_v58, %v8198_v23  ;;  %v8204_v50 = vld [vmem:[#allocation67_spill] sm:$0xff] }
 0x39e   : > { %v4018_v6 = vsel %vm8203_vm7, 1.0, %v5441_v21  ;;  %vm8205_vm8 = vcmp.ge.f32.partialorder %v8204_v50, 0.0  ;;  %vm8209_vm14 = vcmask 261120  }
 0x39f   : > { %1614 = vmax.xlane.f32.xlu0 %v1613_v51  ;;  %v1619_v51 = vmax.f32 %v6805_v32, %v6808_v16  ;;  %v6847_v16 = vmul.f32 %v4014_v56, %v8197_v15  ;;  %v4019_v32 = vsel %vm8205_vm8, 1.0, %v5441_v21  ;;  %v6864_v56 = vmul.f32 %v4017_v46, %v8201_v48 }
 0x3a0   : > { %v6869_v23 = vmul.f32 %v4018_v6, %v8202_v60  ;;  %v6872_v15 = vmul.f32 %v4019_v32, %v8204_v50 }
 0x3a1   : > { %1617 = vmax.xlane.f32.xlu1 %v1616_v12  ;;  %v1622_v12 = vmax.f32 %v6819_v45, %v6822_v10  ;;  %v6861_v10 = vmul.f32 %v4016_v0, %v8200_v39  ;;  %v1628_v58 = vmax.f32 %v6847_v16, %v6850_v3 }
 0x3a2   : > { %8206 = vst [vmem:[#allocation116_spill] sm:$0xff] %v6872_v15  ;;  %v1634_v0 = vmax.f32 %v6869_v23, %v6872_v15 }
 0x3a3   : > { %1620 = vmax.xlane.f32.xlu0 %v1619_v51  ;;  %v1625_v51 = vmax.f32 %v6833_v13, %v6836_v17  ;;  %v1631_v21 = vmax.f32 %v6861_v10, %v6864_v56 }
 0x3a5   : > { %1623 = vmax.xlane.f32.xlu1 %v1622_v12 }
 0x3a7   : > { %1626 = vmax.xlane.f32.xlu0 %v1625_v51 }
 0x3a9   : > { %1629 = vmax.xlane.f32.xlu1 %v1628_v58  ;;  %v1353_v58 = vld [vmem:[%s7790_s4] sm:$0xff] }
 0x3ab   : > { %1632 = vmax.xlane.f32.xlu0 %v1631_v21  ;;  %v1354_v21 = vld [vmem:[%s7790_s4 + $0x8] sm:$0xff] }
 0x3ad   : > { %1635 = vmax.xlane.f32.xlu1 %v1634_v0  ;;  %v1355_v0 = vld [vmem:[%s7790_s4 + $0x10] sm:$0xff] }
 0x3e0   : > { %v2558_v46 = vpop.xlane.xlu0 %2557 }
 0x3e1   : > { %5053 = vrcp.f32 %v2558_v46  ;;  %v4749_v46 = vpack.c.bf16 %v1354_v21, %v1353_v58 }
 0x3e3   : > { %4750 = vmatprep.subr.bf16.mxu1 %v4749_v46 }
 0x3e4   : > { %v2561_v12 = vpop.xlane.xlu1 %2560  ;;  %4752 = vmatpush3.bf16.msra.mxu1 %v4749_v46 }
 0x3e5   : > { %5055 = vrcp.f32 %v2561_v12  ;;  %v1356_v12 = vld [vmem:[%s7790_s4 + $0x18] sm:$0xff] }
 0x3e8   : > { %v2564_v6 = vpop.xlane.xlu0 %2563 }
 0x3e9   : > { %5057 = vrcp.f32 %v2564_v6 }
 0x3eb   : > { %v5054_v32 = vpop.eup %5053 }
 0x3ec   : > { %v2567_v51 = vpop.xlane.xlu1 %2566  ;;  %v2620_v50 = vmul.f32 %v5054_v32, %v6534_v1  ;;  %v2621_v39 = vmul.f32 %v5054_v32, %v6536_v8  ;;  %v1337_v8 = vld [vmem:[%s6903_s15] sm:$0xff] }
 0x3ed   : > { %5059 = vrcp.f32 %v2567_v51  ;;  %v4753_v51 = vpack.c.bf16 %v1356_v12, %v1355_v0  ;;  %4629 = vmatprep.mubr.msk.f32.mxu1 %vm8209_vm14, %v1337_v8  ;;  %v5279_v8 = vld [vmem:[%s5765_s14 + $0x48] sm:$0xff]  }
 0x3ef   : > { %v5056_v6 = vpop.eup %5055  ;;  %4754 = vmatprep.subr.bf16.mxu1 %v4753_v51 }
 0x3f0   : > { %v2622_v60 = vmul.f32 %v5056_v6, %v6542_v53  ;;  %v2570_v48 = vpop.xlane.xlu0 %2569  ;;  %v2623_v15 = vmul.f32 %v5056_v6, %v6546_v52  ;;  %4756 = vmatpush3.bf16.msra.mxu1 %v4753_v51  ;;  %v1338_v53 = vld [vmem:[%s6903_s15 + $0x8] sm:$0xff]  ;;  %v8207_v52 = vmov 1.0|1.0  }
 0x3f1   : > { %5061 = vrcp.f32 %v2570_v48  ;;  %v5280_v48 = vld [vmem:[%s5765_s14 + $0x8] sm:$0xff]  }
 0x3f2   : > { %v2653_v58 = vpack.c.bf16 %v2623_v15, %v2621_v39  ;;  %v2652_v21 = vpack.c.bf16 %v2622_v60, %v2620_v50  ;;  %v1339_v50 = vld [vmem:[%s6903_s15 + $0x10] sm:$0xff]  ;;  %v5277_v60 = vld [vmem:[%s5765_s14 + $0x40] sm:$0xff]  }
 0x3f3   : > { %v2573_v0 = vpop.xlane.xlu1 %2572  ;;  %v5058_v1 = vpop.eup %5057  ;;  %4369 = vmatprep.subr.bf16.mxu1 %v5277_v60  ;;  %v1343_v60 = vld [vmem:[%s6903_s15 + $0x30] sm:$0xff] }
 0x3f4   : > { %5063 = vrcp.f32 %v2573_v0  ;;  %2700 = vmatprep.mubr.bf16.mxu0 %v2653_v58  ;;  %v2625_v46 = vmul.f32 %v5058_v1, %v6552_v28  ;;  %v2624_v6 = vmul.f32 %v5058_v1, %v6550_v34  ;;  %v5278_v58 = vld [vmem:[%s5765_s14] sm:$0xff]  }
 0x3f5   : > { %2701 = vmatmul.mubr.bf16.vlgmr.msra.gmra.mrb[96].mxu0 %v2652_v21  ;;  %v1340_v21 = vld [vmem:[%s6903_s15 + $0x18] sm:$0xff]  ;;  %v1341_v1 = vld [vmem:[%s6903_s15 + $0x20] sm:$0xff] }
 0x3f6   : > { %4184 = vmatpush1.bf16.msk.msra.mxu0 %vm5769_vm4, %v8207_v52  ;;  %vm8211_vm4 = vmmov %vm8209_vm14 }
 0x3f7   : > { %v5060_v15 = vpop.eup %5059  ;;  %4186 = vmatprep.subr.msk.bf16.mxu0 %vm5802_vm15, %v8207_v52  ;;  %4630 = vmatmul.mubr.msk.f32.vlgmr.msra.gmra.mrb[32].mxu1 %vm8211_vm4, %v1338_v53  ;;  %vm8212_vm12 = vmmov %vm8211_vm4 }
 0x3f8   : > { %v2576_v32 = vpop.xlane.xlu0 %2575  ;;  %v2627_v12 = vmul.f32 %v5060_v15, %v6562_v24  ;;  %v2626_v51 = vmul.f32 %v5060_v15, %v6558_v20  ;;  %4370 = vmatpush3.bf16.msra.mxu1 %v5278_v58  ;;  %4632 = vmatprep.mubr.msk.f32.mxu1 %vm8212_vm12, %v1339_v50  ;;  %vm8215_vm15 = vmmov %vm8211_vm4  ;;  %v1342_v50 = vld [vmem:[%s6903_s15 + $0x28] sm:$0xff] }
 0x3f9   : > { %5065 = vrcp.f32 %v2576_v32  ;;  %4371 = vmatprep.subr.bf16.mxu1 %v5279_v8 }
 0x3fa   : > { %4188 = vmatpush1.bf16.msk.msra.mxu0 %vm5798_vm13, %v8207_v52  ;;  %v2655_v28 = vpack.c.bf16 %v2627_v12, %v2625_v46  ;;  %v2654_v24 = vpack.c.bf16 %v2626_v51, %v2624_v6  ;;  %vm8217_vm13 = vmmov %vm8211_vm4  ;;  %v5281_v51 = vld [vmem:[%s5765_s14 + $0x50] sm:$0xff]  }
 0x3fb   : > { %4190 = vmatprep.subr.msk.bf16.mxu0 %vm5824_vm10, %v8207_v52  ;;  %v2579_v20 = vpop.xlane.xlu1 %2578  ;;  %v5062_v53 = vpop.eup %5061  ;;  %4633 = vmatmul.mubr.msk.f32.gmra.mrb[34].mxu1 %vm8215_vm15, %v1340_v21  ;;  %vm8219_vm10 = vmmov %vm8211_vm4 }
 0x3fc   : > { %5067 = vrcp.f32 %v2579_v20  ;;  %2708 = vmatprep.mubr.bf16.mxu0 %v2655_v28  ;;  %4372 = vmatpush3.bf16.msra.mxu1 %v5280_v48  ;;  %v2629_v46 = vmul.f32 %v5062_v53, %v6568_v31  ;;  %v2628_v0 = vmul.f32 %v5062_v53, %v6566_v18  ;;  %v5282_v28 = vld [vmem:[%s5765_s14 + $0x10] sm:$0xff]   ;;  %v5284_v20 = vld [vmem:[%s5765_s14 + $0x18] sm:$0xff]   ;;  %v8224_v53 = vld [vmem:[#allocation18_spill] sm:$0xff] }
 0x3fd   : > { %2709 = vmatmul.mubr.bf16.gmra.mrb[100].mxu0 %v2654_v24  ;;  %4635 = vmatprep.mubr.msk.f32.mxu1 %vm8217_vm13, %v1341_v1  ;;  %v1344_v24 = vld [vmem:[%s6903_s15 + $0x38] sm:$0xff]  ;;  %v5285_v48 = vld [vmem:[%s5765_s14 + $0x60] sm:$0xff]  }
 0x3fe   : > { %v5064_v15 = vpop.eup %5063  ;;  %4192 = vmatpush1.bf16.msk.msra.mxu0 %vm5820_vm5, %v8207_v52  ;;  %4373 = vmatprep.subr.bf16.mxu1 %v5281_v51  ;;  %vm8220_vm5 = vmmov %vm8211_vm4  ;;  %v8228_v51 = vld [vmem:[#allocation20_spill] sm:$0xff]  ;;  %v8234_v31 = vld [vmem:[#allocation25_spill] sm:$0xff] }
 0x3ff   : > { %4194 = vmatprep.subr.msk.bf16.mxu0 %vm5846_vm3, %v8207_v52  ;;  %v2631_v12 = vmul.f32 %v5064_v15, %v6576_v19  ;;  %v2630_v6 = vmul.f32 %v5064_v15, %v6570_v14  ;;  %4636 = vmatmul.mubr.msk.f32.gmra.mrb[36].mxu1 %vm8219_vm10, %v1342_v50  ;;  %v5283_v14 = vld [vmem:[%s5765_s14 + $0x58] sm:$0xff]   ;;  %vm8223_vm3 = vmmov %vm8211_vm4  ;;  %v8226_v50 = vld [vmem:[#allocation21_spill] sm:$0xff]  ;;  %vm8229_vm9 = vnez %v8228_v51  ;;  %vm8235_vm2 = vnez %v8234_v31 }
 0x400   : > { %v2582_v58 = vpop.xlane.xlu0 %2581  ;;  %4374 = vmatpush3.bf16.msra.mxu1 %v5282_v28  ;;  %4638 = vmatprep.mubr.msk.f32.mxu1 %vm8220_vm5, %v1343_v60  ;;  %v8232_v28 = vld [vmem:[#allocation22_spill] sm:$0xff] }
 0x401   : > { %v2657_v21 = vpack.c.bf16 %v2631_v12, %v2629_v46  ;;  %5069 = vrcp.f32 %v2582_v58  ;;  %4375 = vmatprep.subr.bf16.mxu1 %v5283_v14  ;;  %v2656_v8 = vpack.c.bf16 %v2630_v6, %v2628_v0  ;;  %v5286_v6 = vld [vmem:[%s5765_s14 + $0x20] sm:$0xff]   ;;  %v5287_v58 = vld [vmem:[%s5765_s14 + $0x68] sm:$0xff]   ;;  %vm8233_vm6 = vnez %v8232_v28 }
 0x402   : > { %4196 = vmatpush1.bf16.msk.msra.mxu0 %vm5842_vm1, %v8207_v52  ;;  %vm8225_vm1 = vnez %v8224_v53  ;;  %v8236_v53 = vld [vmem:[#allocation24_spill] sm:$0xff] }
 0x403   : > { %2716 = vmatprep.mubr.bf16.mxu0 %v2657_v21  ;;  %4198 = vmatprep.subr.msk.bf16.mxu0 %vm5868_vm0, %v8207_v52  ;;  %v2585_v18 = vpop.xlane.xlu1 %2584  ;;  %v5066_v34 = vpop.eup %5065  ;;  %vm8227_vm0 = vnez %v8226_v50  ;;  %vm8237_vm7 = vnez %v8236_v53  ;;  %v5291_v50 = vld [vmem:[%s5765_s14 + $0x78] sm:$0xff]  }
 0x404   : > { %5071 = vrcp.f32 %v2585_v18  ;;  %4639 = vmatmul.mubr.msk.f32.gmra.mrb[38].mxu1 %vm8223_vm3, %v1344_v24  ;;  %v2633_v15 = vmul.f32 %v5066_v34, %v6584_v57  ;;  %v2632_v12 = vmul.f32 %v5066_v34, %v6582_v7  ;;  %v8230_v57 = vld [vmem:[#allocation23_spill] sm:$0xff]  ;;  %v5288_v7 = vld [vmem:[%s5765_s14 + $0x28] sm:$0xff]  }
 0x405   : > { %2717 = vmatmul.mubr.bf16.gmra.mrb[104].mxu0 %v2656_v8  ;;  %4376 = vmatpush3.bf16.msra.mxu1 %v5284_v20  ;;  %vm8231_vm11 = vnez %v8230_v57  ;;  %v5289_v24 = vld [vmem:[%s5765_s14 + $0x70] sm:$0xff]   ;;  %v8244_v57 = vld [vmem:[#allocation28_spill] sm:$0xff] }
 0x406   : > { %v5068_v1 = vpop.eup %5067  ;;  %4200 = vmatpush1.bf16.msk.msra.mxu0 %vm8225_vm1, %v8207_v52  ;;  %4377 = vmatprep.subr.bf16.mxu1 %v5285_v48  ;;  %vm8245_vm12 = vnez %v8244_v57 }
 0x407   : > { %4202 = vmatprep.subr.msk.bf16.mxu0 %vm8227_vm0, %v8207_v52  ;;  %v2635_v39 = vmul.f32 %v5068_v1, %v6592_v59  ;;  %v2634_v60 = vmul.f32 %v5068_v1, %v6586_v9  ;;  %v5290_v1 = vld [vmem:[%s5765_s14 + $0x30] sm:$0xff]  }
 0x408   : > { %v2588_v32 = vpop.xlane.xlu0 %2587 }
 0x409   : > { %v2659_v46 = vpack.c.bf16 %v2635_v39, %v2633_v15  ;;  %4378 = vmatpush3.bf16.msra.mxu1 %v5286_v6  ;;  %5073 = vrcp.f32 %v2588_v32  ;;  %v2658_v59 = vpack.c.bf16 %v2634_v60, %v2632_v12  ;;  %v5292_v15 = vld [vmem:[%s5765_s14 + $0x38] sm:$0xff]   ;;  %v8240_v39 = vld [vmem:[#allocation26_spill] sm:$0xff]  ;;  %v8242_v60 = vld [vmem:[#allocation29_spill] sm:$0xff] }
 0x40a   : > { %4204 = vmatpush1.bf16.msk.msra.mxu0 %vm8229_vm9, %v8207_v52  ;;  %4379 = vmatprep.subr.bf16.mxu1 %v5287_v58  ;;  %vm8241_vm14 = vnez %v8240_v39  ;;  %vm8243_vm4 = vnez %v8242_v60 }
 0x40b   : > { %2724 = vmatprep.mubr.bf16.mxu0 %v2659_v46  ;;  %4206 = vmatprep.subr.msk.bf16.mxu0 %vm8231_vm11, %v8207_v52  ;;  %v2591_v9 = vpop.xlane.xlu1 %2590  ;;  %v5070_v21 = vpop.eup %5069 }
 0x40c   : > { %5075 = vrcp.f32 %v2591_v9  ;;  %v2637_v14 = vmul.f32 %v5070_v21, %v6600_v63  ;;  %v2636_v20 = vmul.f32 %v5070_v21, %v6598_v4  ;;  %v8238_v63 = vld [vmem:[#allocation27_spill] sm:$0xff] }
 0x40d   : > { %2725 = vmatmul.mubr.bf16.gmra.mrb[108].mxu0 %v2658_v59  ;;  %4380 = vmatpush3.bf16.msra.mxu1 %v5288_v7  ;;  %vm8239_vm8 = vnez %v8238_v63  ;;  %v8246_v21 = vld [vmem:[#allocation31_spill] sm:$0xff] }
 0x40e   : > { %v5072_v0 = vpop.eup %5071  ;;  %4208 = vmatpush1.bf16.msk.msra.mxu0 %vm8233_vm6, %v8207_v52  ;;  %4381 = vmatprep.subr.bf16.mxu1 %v5289_v24  ;;  %vm8247_vm15 = vnez %v8246_v21 }
 0x40f   : > { %4210 = vmatprep.subr.msk.bf16.mxu0 %vm8235_vm2, %v8207_v52  ;;  %v2639_v19 = vmul.f32 %v5072_v0, %v6608_v29  ;;  %v2638_v18 = vmul.f32 %v5072_v0, %v6602_v40 }
 0x410   : > { %v2594_v8 = vpop.xlane.xlu0 %2593 }
 0x411   : > { %5077 = vrcp.f32 %v2594_v8  ;;  %v2661_v34 = vpack.c.bf16 %v2639_v19, %v2637_v14  ;;  %4382 = vmatpush3.bf16.msra.mxu1 %v5290_v1  ;;  %v2660_v40 = vpack.c.bf16 %v2638_v18, %v2636_v20  ;;  %v8250_v8 = vld [vmem:[#allocation33_spill] sm:$0xff] }
 0x412   : > { %4212 = vmatpush1.bf16.msk.msra.mxu0 %vm8237_vm7, %v8207_v52  ;;  %v2597_v48 = vpop.xlane.xlu1 %2596  ;;  %4383 = vmatprep.subr.bf16.mxu1 %v5291_v50  ;;  %vm8251_vm10 = vnez %v8250_v8 }
 0x413   : > { %2732 = vmatprep.mubr.bf16.mxu0 %v2661_v34  ;;  %4214 = vmatprep.subr.msk.bf16.mxu0 %vm8239_vm8, %v8207_v52  ;;  %5079 = vrcp.f32 %v2597_v48  ;;  %v5074_v29 = vpop.eup %5073  ;;  %v8252_v48 = vld [vmem:[#allocation32_spill] sm:$0xff]  ;;  %vm8298_vm8 = vcmask 261120  }
 0x414   : > { %v2641_v32 = vmul.f32 %v5074_v29, %v6616_v38  ;;  %v2640_v58 = vmul.f32 %v5074_v29, %v6614_v25  ;;  %v8248_v25 = vld [vmem:[#allocation30_spill] sm:$0xff]  ;;  %vm8253_vm5 = vnez %v8252_v48 }
 0x415   : > { %2733 = vmatmul.mubr.bf16.gmra.mrb[112].mxu0 %v2660_v40  ;;  %4384 = vmatpush3.bf16.msra.mxu1 %v5292_v15  ;;  %vm8249_vm13 = vnez %v8248_v25 }
 0x416   : > { %v5076_v4 = vpop.eup %5075  ;;  %4216 = vmatpush1.bf16.msk.msra.mxu0 %vm8241_vm14, %v8207_v52  ;;  %vm8299_vm14 = vmmov %vm8298_vm8 }
 0x417   : > { %4218 = vmatprep.subr.msk.bf16.mxu0 %vm8243_vm4, %v8207_v52  ;;  %v2643_v46 = vmul.f32 %v5076_v4, %v6624_v41  ;;  %v2642_v12 = vmul.f32 %v5076_v4, %v6618_v22  ;;  %vm8300_vm4 = vmmov %vm8298_vm8 }
 0x418   : > { %v2600_v6 = vpop.xlane.xlu0 %2599 }
 0x419   : > { %5081 = vrcp.f32 %v2600_v6  ;;  %v2663_v51 = vpack.c.bf16 %v2643_v46, %v2641_v32  ;;  %v2662_v38 = vpack.c.bf16 %v2642_v12, %v2640_v58  ;;  %v8256_v12 = vld [vmem:[#allocation34_spill] sm:$0xff] }
 0x41a   : > { %4220 = vmatpush1.bf16.msk.msra.mxu0 %vm8245_vm12, %v8207_v52  ;;  %v2603_v9 = vpop.xlane.xlu1 %2602  ;;  %vm8257_vm1 = vnez %v8256_v12  ;;  %vm8301_vm12 = vmmov %vm8300_vm4 }
 0x41b   : > { %v5078_v59 = vpop.eup %5077  ;;  %2740 = vmatprep.mubr.bf16.mxu0 %v2663_v51  ;;  %4222 = vmatprep.subr.msk.bf16.mxu0 %vm8247_vm15, %v8207_v52  ;;  %5083 = vrcp.f32 %v2603_v9  ;;  %v8258_v51 = vld [vmem:[#allocation37_spill] sm:$0xff]  ;;  %vm8308_vm15 = vmmov %vm8300_vm4 }
 0x41c   : > { %v1591_v41 = vpop.xlane.xlu0 %1590  ;;  %v2645_v24 = vmul.f32 %v5078_v59, %v6632_v49  ;;  %v2644_v1 = vmul.f32 %v5078_v59, %v6630_v61  ;;  %v8254_v61 = vld [vmem:[#allocation35_spill] sm:$0xff]  ;;  %vm8259_vm0 = vnez %v8258_v51  ;;  %v8260_v59 = vld [vmem:[#allocation104_spill] sm:$0xff]  ;;  %v8280_v51 = vld [vmem:[#allocation113_spill] sm:$0xff] }
 0x41d   : > { %v5080_v22 = vpop.eup %5079  ;;  %v1637_v7 = vsub.f32 %v6663_v36, %v1591_v41  ;;  %v1638_v0 = vsub.f32 %v6666_v26, %v1591_v41  ;;  %2741 = vmatmul.mubr.bf16.gmra.mrb[116].mxu0 %v2662_v38  ;;  %vm8255_vm3 = vnez %v8254_v61 }
 0x41e   : > { %4224 = vmatpush1.bf16.msk.msra.mxu0 %vm8249_vm13, %v8207_v52  ;;  %v1594_v28 = vpop.xlane.xlu1 %1593  ;;  %v2647_v31 = vmul.f32 %v5080_v22, %v6638_v43  ;;  %v2646_v14 = vmul.f32 %v5080_v22, %v6634_v5  ;;  %v8262_v22 = vld [vmem:[#allocation106_spill] sm:$0xff]  ;;  %vm8309_vm13 = vmmov %vm8300_vm4 }
 0x41f   : > { %v1669_v19 = vmul.f32 1.442695, %v1637_v7  ;;  %v1671_v18 = vmul.f32 1.442695, %v1638_v0  ;;  %4226 = vmatprep.subr.msk.bf16.mxu0 %vm8251_vm10, %v8207_v52  ;;  %v1639_v36 = vsub.f32 %v6679_v47, %v1594_v28  ;;  %v1640_v26 = vsub.f32 %v6682_v27, %v1594_v28  ;;  %v8263_v0 = vld [vmem:[#allocation36_spill] sm:$0xff]  ;;  %vm8310_vm10 = vmmov %vm8300_vm4 }
 0x420   : > { %v1597_v34 = vpop.xlane.xlu0 %1596  ;;  %v2665_v20 = vpack.c.bf16 %v2647_v31, %v2645_v24  ;;  %v2664_v50 = vpack.c.bf16 %v2646_v14, %v2644_v1  ;;  %vm8264_vm9 = vnez %v8263_v0  ;;  %v8265_v24 = vld [vmem:[#allocation39_spill] sm:$0xff] }
 0x421   : > { %5085 = vpow2.f32 %v1669_v19  ;;  %v1673_v49 = vmul.f32 1.442695, %v1639_v36  ;;  %v1675_v53 = vmul.f32 1.442695, %v1640_v26  ;;  %v1641_v43 = vsub.f32 %v6693_v42, %v1597_v34  ;;  %v8267_v31 = vld [vmem:[#allocation107_spill] sm:$0xff]  ;;  %v8268_v19 = vld [vmem:[#allocation108_spill] sm:$0xff] }
 0x422   : > { %5087 = vpow2.f32 %v1671_v18  ;;  %v1642_v5 = vsub.f32 %v6696_v62, %v1597_v34  ;;  %4228 = vmatpush1.bf16.msk.msra.mxu0 %vm8253_vm5, %v8207_v52  ;;  %2748 = vmatprep.mubr.bf16.mxu0 %v2665_v20  ;;  %v1600_v47 = vpop.xlane.xlu1 %1599  ;;  %vm8266_vm11 = vnez %v8265_v24  ;;  %vm8311_vm5 = vmmov %vm8300_vm4 }
 0x423   : > { %v5082_v27 = vpop.eup %5081  ;;  %5089 = vpow2.f32 %v1673_v49  ;;  %v1677_v63 = vmul.f32 1.442695, %v1641_v43  ;;  %4230 = vmatprep.subr.msk.bf16.mxu0 %vm8255_vm3, %v8207_v52  ;;  %v1643_v40 = vsub.f32 %v6707_v44, %v1600_v47  ;;  %v1644_v42 = vsub.f32 %v6710_v35, %v1600_v47  ;;  %v8269_v49 = vld [vmem:[#allocation109_spill] sm:$0xff]  ;;  %v8271_v47 = vld [vmem:[#allocation38_spill] sm:$0xff]  ;;  %vm8371_vm3 = vmmov %vm8300_vm4 }
 0x424   : > { %5091 = vpow2.f32 %v1675_v53  ;;  %v1679_v62 = vmul.f32 1.442695, %v1642_v5  ;;  %v1603_v29 = vpop.xlane.xlu0 %1602  ;;  %v2649_v15 = vmul.f32 %v5082_v27, %v6650_v30  ;;  %v2648_v21 = vmul.f32 %v5082_v27, %v8260_v59  ;;  %v8270_v5 = vld [vmem:[#allocation110_spill] sm:$0xff]  ;;  %v8273_v27 = vld [vmem:[#allocation75_spill] sm:$0xff] }
 0x425   : > { %v5084_v4 = vpop.eup %5083  ;;  %5093 = vpow2.f32 %v1677_v63  ;;  %v1681_v39 = vmul.f32 1.442695, %v1643_v40  ;;  %v1683_v60 = vmul.f32 1.442695, %v1644_v42  ;;  %v1645_v32 = vsub.f32 %v6721_v54, %v1603_v29  ;;  %2749 = vmatmul.mubr.bf16.gmra.mrb[120].mxu0 %v2664_v50  ;;  %v8274_v63 = vld [vmem:[#allocation73_spill] sm:$0xff] }
 0x426   : > { %5095 = vpow2.f32 %v1679_v62  ;;  %v1646_v46 = vsub.f32 %v6724_v11, %v1603_v29  ;;  %4232 = vmatpush1.bf16.msk.msra.mxu0 %vm8257_vm1, %v8207_v52  ;;  %v1606_v44 = vpop.xlane.xlu1 %1605  ;;  %v2651_v35 = vmul.f32 %v5084_v4, %v6668_v2  ;;  %v2650_v6 = vmul.f32 %v5084_v4, %v6658_v33  ;;  %v8261_v33 = vld [vmem:[#allocation105_spill] sm:$0xff]  ;;  %vm8372_vm1 = vmmov %vm8371_vm3 }
 0x427   : > { %5097 = vpow2.f32 %v1681_v39  ;;  %v1685_v30 = vmul.f32 1.442695, %v1645_v32  ;;  %4234 = vmatprep.subr.msk.bf16.mxu0 %vm8259_vm0, %v8207_v52  ;;  %v1647_v54 = vsub.f32 %v6735_v55, %v1606_v44  ;;  %v1648_v58 = vsub.f32 %v6738_v37, %v1606_v44  ;;  %v8276_v29 = vld [vmem:[#allocation45_spill] sm:$0xff]  ;;  %v8279_v39 = vld [vmem:[#allocation112_spill] sm:$0xff]  ;;  %vm8373_vm0 = vmmov %vm8372_vm1 }
 0x428   : > { %5099 = vpow2.f32 %v1683_v60  ;;  %v1687_v11 = vmul.f32 1.442695, %v1646_v46  ;;  %v1609_v57 = vpop.xlane.xlu0 %1608  ;;  %v2667_v9 = vpack.c.bf16 %v2651_v35, %v2649_v15  ;;  %v2666_v37 = vpack.c.bf16 %v2650_v6, %v2648_v21  ;;  %v8278_v15 = vld [vmem:[#allocation111_spill] sm:$0xff] }
 0x429   : > { %5101 = vpow2.f32 %v1685_v30  ;;  %v1689_v2 = vmul.f32 1.442695, %v1647_v54  ;;  %v1691_v38 = vmul.f32 1.442695, %v1648_v58  ;;  %v1649_v41 = vsub.f32 %v8261_v33, %v1609_v57 }
 0x42a   : > { %5103 = vpow2.f32 %v1687_v11  ;;  %v1650_v7 = vsub.f32 %v8262_v22, %v1609_v57  ;;  %4236 = vmatpush1.bf16.msk.msra.mxu0 %vm8264_vm9, %v8207_v52  ;;  %2756 = vmatprep.mubr.bf16.mxu0 %v2667_v9  ;;  %v1612_v55 = vpop.xlane.xlu1 %1611  ;;  %vm8272_vm6 = vnez %v8271_v47  ;;  %v8275_v61 = vpack.c.bf16 %v8273_v27, %v8274_v63  ;;  %v8281_v11 = vld [vmem:[#allocation114_spill] sm:$0xff]  ;;  %v8282_v9 = vld [vmem:[#allocation43_spill] sm:$0xff]  ;;  %vm8374_vm9 = vmmov %vm8373_vm0 }
 0x42b   : > { %v7060_v25 = vpop.eup %5085  ;;  %5105 = vpow2.f32 %v1689_v2  ;;  %v1693_v28 = vmul.f32 1.442695, %v1649_v41  ;;  %4238 = vmatprep.subr.msk.bf16.mxu0 %vm8266_vm11, %v8207_v52  ;;  %v1651_v14 = vsub.f32 %v8267_v31, %v1612_v55  ;;  %v1652_v18 = vsub.f32 %v8268_v19, %v1612_v55  ;;  %v8284_v41 = vld [vmem:[#allocation115_spill] sm:$0xff]  ;;  %vm8375_vm11 = vmmov %vm8373_vm0 }
 0x42c   : > { %v7067_v8 = vpop.eup %5087  ;;  %5107 = vpow2.f32 %v1691_v38  ;;  %v1695_v36 = vmul.f32 1.442695, %v1650_v7  ;;  %v1615_v26 = vpop.xlane.xlu0 %1614  ;;  %vm8277_vm2 = vnez %v8276_v29  ;;  %vm8283_vm7 = vnez %v8282_v9 }
 0x42d   : > { %v7069_v34 = vpop.eup %5089  ;;  %5109 = vpow2.f32 %v1693_v28  ;;  %v1697_v20 = vmul.f32 1.442695, %v1651_v14  ;;  %v1699_v1 = vmul.f32 1.442695, %v1652_v18  ;;  %v1653_v53 = vsub.f32 %v8269_v49, %v1615_v26  ;;  %2757 = vmatmul.mubr.bf16.gmra.mrb[124].mxu0 %v2666_v37  ;;  %v8285_v14 = vld [vmem:[#allocation74_spill] sm:$0xff] }
 0x42e   : > { %v7072_v43 = vpop.eup %5091  ;;  %5111 = vpow2.f32 %v1695_v36  ;;  %v1654_v48 = vsub.f32 %v8270_v5, %v1615_v26  ;;  %4240 = vmatpush1.bf16.msk.msra.mxu0 %vm8272_vm6, %v8207_v52  ;;  %v1733_v50 = vadd.f32 %v7067_v8, %v7060_v25  ;;  %3027 = vmatprep.mubr.bf16.mxu0 %v8275_v61  ;;  %v1618_v40 = vpop.xlane.xlu1 %1617  ;;  %vm8376_vm6 = vmmov %vm8373_vm0 }
 0x42f   : > { %v7083_v42 = vpop.eup %5093  ;;  %5113 = vpow2.f32 %v1697_v20  ;;  %v1701_v62 = vmul.f32 1.442695, %v1653_v53  ;;  %4242 = vmatprep.subr.msk.bf16.mxu0 %vm8277_vm2, %v8207_v52  ;;  %v1655_v4 = vsub.f32 %v8278_v15, %v1618_v40  ;;  %v1656_v60 = vsub.f32 %v8279_v39, %v1618_v40  ;;  %v8288_v20 = vld [vmem:[#allocation79_spill] sm:$0xff]  ;;  %vm8377_vm2 = vmmov %vm8373_vm0 }
 0x430   : > { %v7090_v32 = vpop.eup %5095  ;;  %5115 = vpow2.f32 %v1699_v1  ;;  %v1703_v46 = vmul.f32 1.442695, %v1654_v48  ;;  %1734 = vadd.xlane.f32.xlu0 %v1733_v50  ;;  %v1621_v12 = vpop.xlane.xlu0 %1620  ;;  %v1736_v44 = vadd.f32 %v7072_v43, %v7069_v34  ;;  %v8289_v1 = vld [vmem:[#allocation77_spill] sm:$0xff] }
 0x431   : > { %v7094_v35 = vpop.eup %5097  ;;  %5117 = vpow2.f32 %v1701_v62  ;;  %v1705_v6 = vmul.f32 1.442695, %v1655_v4  ;;  %v1707_v30 = vmul.f32 1.442695, %v1656_v60  ;;  %v1657_v54 = vsub.f32 %v8280_v51, %v1621_v12 }
 0x432   : > { %v7097_v58 = vpop.eup %5099  ;;  %5119 = vpow2.f32 %v1703_v46  ;;  %v1658_v57 = vsub.f32 %v8281_v11, %v1621_v12  ;;  %1737 = vadd.xlane.f32.xlu1 %v1736_v44  ;;  %4244 = vmatpush1.bf16.msk.msra.mxu0 %vm8283_vm7, %v8207_v52  ;;  %v1739_v59 = vadd.f32 %v7090_v32, %v7083_v42  ;;  %v1624_v21 = vpop.xlane.xlu1 %1623  ;;  %v8290_v49 = vpack.c.bf16 %v8288_v20, %v8289_v1  ;;  %v8291_v12 = vld [vmem:[#allocation116_spill] sm:$0xff]  ;;  %v8292_v11 = vld [vmem:[#allocation78_spill] sm:$0xff]  ;;  %vm8378_vm7 = vmmov %vm8373_vm0 }
 0x433   : > { %v7105_v2 = vpop.eup %5101  ;;  %5121 = vpow2.f32 %v1705_v6  ;;  %v1709_v38 = vmul.f32 1.442695, %v1657_v54  ;;  %v1659_v33 = vsub.f32 %v6819_v45, %v1624_v21  ;;  %v1660_v22 = vsub.f32 %v8284_v41, %v1624_v21  ;;  %v8286_v45 = vld [vmem:[#allocation72_spill] sm:$0xff]  ;;  %v8295_v21 = vld [vmem:[#allocation83_spill] sm:$0xff]  ;;  %v1345_v41 = vld [vmem:[%s6903_s15 + $0x40] sm:$0xff] }
 0x434   : > { %v7109_v7 = vpop.eup %5103  ;;  %5123 = vpow2.f32 %v1707_v30  ;;  %v1711_v0 = vmul.f32 1.442695, %v1658_v57  ;;  %1740 = vadd.xlane.f32.xlu0 %v1739_v59  ;;  %v1627_v55 = vpop.xlane.xlu0 %1626  ;;  %v1742_v52 = vadd.f32 %v7097_v58, %v7094_v35  ;;  %v8287_v19 = vpack.c.bf16 %v8285_v14, %v8286_v45  ;;  %v8293_v57 = vld [vmem:[#allocation76_spill] sm:$0xff]  ;;  %4641 = vmatprep.mubr.msk.f32.mxu1 %vm8298_vm8, %v1345_v41  ;;  %v1347_v14 = vld [vmem:[%s6903_s15 + $0x50] sm:$0xff]  ;;  %v8302_v1 = vld [vmem:[#allocation82_spill] sm:$0xff] }
 0x435   : > { %v7113_v37 = vpop.eup %5105  ;;  %5125 = vpow2.f32 %v1709_v38  ;;  %v1713_v28 = vmul.f32 1.442695, %v1659_v33  ;;  %v1715_v24 = vmul.f32 1.442695, %v1660_v22  ;;  %v1661_v31 = vsub.f32 %v6833_v13, %v1627_v55  ;;  %v8296_v38 = vld [vmem:[#allocation81_spill] sm:$0xff]  ;;  %vm8379_vm8 = vmmov %vm8373_vm0 }
 0x436   : > { %3028 = vmatmul.mubr.bf16.vlgmr.msra.gmra.mrb[128].mxu0 %v8287_v19  ;;  %v7119_v18 = vpop.eup %5107  ;;  %5127 = vpow2.f32 %v1711_v0  ;;  %v1662_v36 = vsub.f32 %v6836_v17, %v1627_v55  ;;  %1743 = vadd.xlane.f32.xlu1 %v1742_v52  ;;  %v1745_v26 = vadd.f32 %v7109_v7, %v7105_v2  ;;  %v1630_v53 = vpop.xlane.xlu1 %1629  ;;  %v8297_v33 = vpack.c.bf16 %v8295_v21, %v8296_v38  ;;  %v1346_v55 = vld [vmem:[%s6903_s15 + $0x48] sm:$0xff]  ;;  %v8321_v38 = vld [vmem:[#allocation95_spill] sm:$0xff] }
 0x437   : > { %3037 = vmatprep.mubr.bf16.mxu0 %v8290_v49  ;;  %v7127_v5 = vpop.eup %5109  ;;  %5129 = vpow2.f32 %v1713_v28  ;;  %v1717_v13 = vmul.f32 1.442695, %v1661_v31  ;;  %v1663_v48 = vsub.f32 %v6847_v16, %v1630_v53  ;;  %v1664_v47 = vsub.f32 %v6850_v3, %v1630_v53  ;;  %4642 = vmatmul.mubr.msk.f32.gmra.mrb[40].mxu1 %vm8299_vm14, %v1346_v55  ;;  %v8303_v49 = vld [vmem:[#allocation80_spill] sm:$0xff]  ;;  %vm8380_vm14 = vmmov %vm8373_vm0 }
 0x438   : > { %v7131_v50 = vpop.eup %5111  ;;  %5131 = vpow2.f32 %v1715_v24  ;;  %v1719_v17 = vmul.f32 1.442695, %v1662_v36  ;;  %1746 = vadd.xlane.f32.xlu0 %v1745_v26  ;;  %v1633_v27 = vpop.xlane.xlu0 %1632  ;;  %v1748_v63 = vadd.f32 %v7119_v18, %v7113_v37  ;;  %4644 = vmatprep.mubr.msk.f32.mxu1 %vm8300_vm4, %v1347_v14  ;;  %v1348_v36 = vld [vmem:[%s6903_s15 + $0x58] sm:$0xff]  ;;  %v8304_v53 = vpack.c.bf16 %v8302_v1, %v8303_v49  ;;  %v8327_v14 = vld [vmem:[#allocation99_spill] sm:$0xff]  ;;  %v8330_v1 = vld [vmem:[#allocation98_spill] sm:$0xff] }
 0x439   : > { %v7135_v61 = vpop.eup %5113  ;;  %5133 = vpow2.f32 %v1717_v13  ;;  %v1721_v40 = vmul.f32 1.442695, %v1663_v48  ;;  %v1723_v62 = vmul.f32 1.442695, %v1664_v47  ;;  %v1665_v29 = vsub.f32 %v6861_v10, %v1633_v27  ;;  %v8305_v47 = vld [vmem:[#allocation87_spill] sm:$0xff]  ;;  %v8325_v55 = vld [vmem:[#allocation92_spill] sm:$0xff]  ;;  %vm8381_vm4 = vmmov %vm8373_vm0 }
 0x43a   : > { %v7138_v15 = vpop.eup %5115  ;;  %5135 = vpow2.f32 %v1719_v17  ;;  %v1666_v16 = vsub.f32 %v6864_v56, %v1633_v27  ;;  %1749 = vadd.xlane.f32.xlu1 %v1748_v63  ;;  %v1751_v3 = vadd.f32 %v7131_v50, %v7127_v5  ;;  %v1636_v4 = vpop.xlane.xlu1 %1635  ;;  %v8306_v17 = vld [vmem:[#allocation85_spill] sm:$0xff]  ;;  %v8331_v49 = vld [vmem:[#allocation96_spill] sm:$0xff] }
 0x43b   : > { %v7143_v39 = vpop.eup %5117  ;;  %5137 = vpow2.f32 %v1721_v40  ;;  %v1725_v60 = vmul.f32 1.442695, %v1665_v29  ;;  %v1667_v46 = vsub.f32 %v6869_v23, %v1636_v4  ;;  %v1668_v44 = vsub.f32 %v8291_v12, %v1636_v4  ;;  %4645 = vmatmul.mubr.msk.f32.gmra.mrb[42].mxu1 %vm8301_vm12, %v1348_v36  ;;  %v1349_v63 = vld [vmem:[%s6903_s15 + $0x60] sm:$0xff]  ;;  %v1350_v29 = vld [vmem:[%s6903_s15 + $0x68] sm:$0xff]  ;;  %vm8382_vm12 = vmmov %vm8373_vm0 }
 0x43c   : > { %v7147_v10 = vpop.eup %5119  ;;  %5139 = vpow2.f32 %v1723_v62  ;;  %v1727_v6 = vmul.f32 1.442695, %v1666_v16  ;;  %1752 = vadd.xlane.f32.xlu0 %v1751_v3  ;;  %v1754_v56 = vadd.f32 %v7138_v15, %v7135_v61  ;;  %v8294_v23 = vpack.c.bf16 %v8292_v11, %v8293_v57  ;;  %4647 = vmatprep.mubr.msk.f32.mxu1 %vm8308_vm15, %v1349_v63  ;;  %v8316_v11 = vld [vmem:[#allocation89_spill] sm:$0xff]  ;;  %v8337_v63 = vld [vmem:[#allocation100_spill] sm:$0xff]  ;;  %vm8383_vm15 = vmmov %vm8373_vm0 }
 0x43d   : > { %v7151_v30 = vpop.eup %5121  ;;  %5141 = vpow2.f32 %v1725_v60  ;;  %v1729_v51 = vmul.f32 1.442695, %v1667_v46  ;;  %v1731_v54 = vmul.f32 1.442695, %v1668_v44  ;;  %v1757_v9 = vadd.f32 %v7147_v10, %v7143_v39  ;;  %v1351_v46 = vld [vmem:[%s6903_s15 + $0x70] sm:$0xff]  ;;  %v1352_v44 = vld [vmem:[%s6903_s15 + $0x78] sm:$0xff]  ;;  %s7724_s15 = scalar_lea.hbm %s7792_s6, %s4264_s20 }
 0x43e   : > { %3038 = vmatmul.mubr.bf16.gmra.mrb[132].mxu0 %v8294_v23  ;;  %v7158_v59 = vpop.eup %5123  ;;  %5143 = vpow2.f32 %v1727_v6  ;;  %1755 = vadd.xlane.f32.xlu1 %v1754_v56  ;;  %v8307_v27 = vpack.c.bf16 %v8305_v47, %v8306_v17  ;;  %v8312_v6 = vld [vmem:[#allocation86_spill] sm:$0xff]  ;;  %v8313_v56 = vld [vmem:[#allocation84_spill] sm:$0xff]  ;;  %v8334_v47 = vld [vmem:[#allocation101_spill] sm:$0xff] }
 0x43f   : > { %3047 = vmatprep.mubr.bf16.mxu0 %v8297_v33  ;;  %v7164_v22 = vpop.eup %5125  ;;  %5145 = vpow2.f32 %v1729_v51  ;;  %v1760_v0 = vadd.f32 %v7158_v59, %v7151_v30  ;;  %4648 = vmatmul.mubr.msk.f32.gmra.mrb[44].mxu1 %vm8309_vm13, %v1350_v29  ;;  %v8314_v51 = vpack.c.bf16 %v8312_v6, %v8313_v56  ;;  %v8318_v23 = vld [vmem:[#allocation90_spill] sm:$0xff]  ;;  %v8322_v33 = vld [vmem:[#allocation93_spill] sm:$0xff]  ;;  %vm8384_vm13 = vmmov %vm8373_vm0 }
 0x440   : > { %v7170_v52 = vpop.eup %5127  ;;  %5147 = vpow2.f32 %v1731_v54  ;;  %1758 = vadd.xlane.f32.xlu0 %v1757_v9  ;;  %4650 = vmatprep.mubr.msk.f32.mxu1 %vm8310_vm10, %v1351_v46  ;;  %v8315_v54 = vld [vmem:[#allocation91_spill] sm:$0xff]  ;;  %v8319_v9 = vld [vmem:[#allocation88_spill] sm:$0xff]  ;;  %v8323_v41 = vpack.c.bf16 %v8321_v38, %v8322_v33  ;;  %vm8385_vm10 = vmmov %vm8373_vm0 }
 0x441   : > { %v7173_v28 = vpop.eup %5129  ;;  %v1763_v24 = vadd.f32 %v7170_v52, %v7164_v22  ;;  %v8317_v57 = vpack.c.bf16 %v8315_v54, %v8316_v11  ;;  %v8320_v21 = vpack.c.bf16 %v8318_v23, %v8319_v9 }
 0x442   : > { %v7177_v31 = vpop.eup %5131  ;;  %1761 = vadd.xlane.f32.xlu1 %v1760_v0  ;;  %v8324_v0 = vld [vmem:[#allocation94_spill] sm:$0xff] }
 0x443   : > { %v7180_v45 = vpop.eup %5133  ;;  %v1766_v19 = vadd.f32 %v7177_v31, %v7173_v28  ;;  %4651 = vmatmul.mubr.msk.f32.gmra.mrb[46].mxu1 %vm8311_vm5, %v1352_v44  ;;  %vm8386_vm5 = vmmov %vm8373_vm0 }
 0x444   : > { %v7186_v26 = vpop.eup %5135  ;;  %1764 = vadd.xlane.f32.xlu0 %v1763_v24  ;;  %v8326_v24 = vpack.c.bf16 %v8324_v0, %v8325_v55 }
 0x445   : > { %v7189_v20 = vpop.eup %5137  ;;  %v1769_v13 = vadd.f32 %v7186_v26, %v7180_v45 }
 0x446   : > { %3048 = vmatmul.mubr.bf16.gmra.mrb[136].mxu0 %v8304_v53  ;;  %v7196_v48 = vpop.eup %5139  ;;  %1767 = vadd.xlane.f32.xlu1 %v1766_v19  ;;  %v8328_v19 = vld [vmem:[#allocation97_spill] sm:$0xff]  ;;  %v8332_v53 = vpack.c.bf16 %v8330_v1, %v8331_v49 }
 0x447   : > { %3057 = vmatprep.mubr.bf16.mxu0 %v8307_v27  ;;  %v7202_v40 = vpop.eup %5141  ;;  %v1772_v62 = vadd.f32 %v7196_v48, %v7189_v20  ;;  %v8329_v36 = vpack.c.bf16 %v8327_v14, %v8328_v19  ;;  %v8336_v27 = vld [vmem:[#allocation102_spill] sm:$0xff] }
 0x448   : > { %v7208_v16 = vpop.eup %5143  ;;  %1770 = vadd.xlane.f32.xlu0 %v1769_v13  ;;  %v8333_v13 = vld [vmem:[#allocation103_spill] sm:$0xff] }
 0x449   : > { %v7211_v3 = vpop.eup %5145  ;;  %v1775_v4 = vadd.f32 %v7208_v16, %v7202_v40  ;;  %v8335_v17 = vpack.c.bf16 %v8333_v13, %v8334_v47 }
 0x44a   : > { %v7215_v60 = vpop.eup %5147  ;;  %1773 = vadd.xlane.f32.xlu1 %v1772_v62  ;;  %v8338_v62 = vpack.c.bf16 %v8336_v27, %v8337_v63 }
 0x44b   : > { %v1778_v12 = vadd.f32 %v7215_v60, %v7211_v3 }
 0x44c   : > { %1776 = vadd.xlane.f32.xlu0 %v1775_v4 }
 0x44e   : > { %3058 = vmatmul.mubr.bf16.gmra.mrb[140].mxu0 %v8314_v51  ;;  %1779 = vadd.xlane.f32.xlu1 %v1778_v12 }
 0x44f   : > { %3067 = vmatprep.mubr.bf16.mxu0 %v8317_v57 }
 0x456   : > { %3068 = vmatmul.mubr.bf16.gmra.mrb[144].mxu0 %v8320_v21 }
 0x457   : > { %3077 = vmatprep.mubr.bf16.mxu0 %v8323_v41 }
 0x45e   : > { %3078 = vmatmul.mubr.bf16.gmra.mrb[148].mxu0 %v8326_v24 }
 0x45f   : > { %3087 = vmatprep.mubr.bf16.mxu0 %v8329_v36 }
 0x466   : > { %3088 = vmatmul.mubr.bf16.gmra.mrb[152].mxu0 %v8332_v53 }
 0x467   : > { %3097 = vmatprep.mubr.bf16.mxu0 %v8335_v17 }
 0x46e   : > { %3098 = vmatmul.mubr.bf16.gmra.mrb[156].mxu0 %v8338_v62 }
 0x4bd   : > { %v1735_v29 = vpop.xlane.xlu0 %1734 }
 0x4be   : > { %5149 = vrcp.f32 %v1735_v29 }
 0x4bf   : > { %v1738_v4 = vpop.xlane.xlu1 %1737 }
 0x4c0   : > { %5151 = vrcp.f32 %v1738_v4 }
 0x4c1   : > { %v1741_v46 = vpop.xlane.xlu0 %1740 }
 0x4c2   : > { %5153 = vrcp.f32 %v1741_v46 }
 0x4c3   : > { %v1744_v12 = vpop.xlane.xlu1 %1743 }
 0x4c4   : > { %5155 = vrcp.f32 %v1744_v12 }
 0x4c5   : > { %v1747_v44 = vpop.xlane.xlu0 %1746 }
 0x4c6   : > { %5157 = vrcp.f32 %v1747_v44 }
 0x4c7   : > { %v1750_v6 = vpop.xlane.xlu1 %1749 }
 0x4c8   : > { %v5150_v56 = vpop.eup %5149  ;;  %5159 = vrcp.f32 %v1750_v6  ;;  %v4469_v51 = vpop.f32.mrb[96].mxu0 }
 0x4c9   : > { %v4470_v54 = vpop.f32.mrb[97].mxu0  ;;  %v1797_v9 = vmul.f32 %v5150_v56, %v7060_v25  ;;  %v1798_v41 = vmul.f32 %v5150_v56, %v7067_v8  ;;  %v1753_v14 = vpop.xlane.xlu0 %1752 }
 0x4ca   : > { %v5152_v11 = vpop.eup %5151  ;;  %v7250_v57 = vadd.f32 %v4470_v54, %v4469_v51  ;;  %v4472_v23 = vpop.f32.mrb[98].mxu0 }
 0x4cb   : > { %v1799_v21 = vmul.f32 %v5152_v11, %v7069_v34  ;;  %v1756_v38 = vpop.xlane.xlu1 %1755  ;;  %v4473_v33 = vpop.f32.mrb[99].mxu0  ;;  %v1800_v0 = vmul.f32 %v5152_v11, %v7072_v43 }
 0x4cc   : > { %v5154_v55 = vpop.eup %5153  ;;  %v7256_v24 = vadd.f32 %v4473_v33, %v4472_v23  ;;  %5161 = vrcp.f32 %v1756_v38 }
 0x4cd   : > { %v1830_v19 = vpack.c.bf16 %v1800_v0, %v1798_v41  ;;  %v1829_v36 = vpack.c.bf16 %v1799_v21, %v1797_v9  ;;  %v1802_v49 = vmul.f32 %v5154_v55, %v7090_v32  ;;  %5163 = vrcp.f32 %v1753_v14  ;;  %v1759_v4 = vpop.xlane.xlu0 %1758 }
 0x4ce   : > { %v5156_v1 = vpop.eup %5155 }
 0x4cf   : > { %1973 = vmatprep.mubr.bf16.mxu1 %v1830_v19  ;;  %v1804_v25 = vmul.f32 %v5156_v1, %v7097_v58  ;;  %v1803_v27 = vmul.f32 %v5156_v1, %v7094_v35  ;;  %v1762_v63 = vpop.xlane.xlu1 %1761  ;;  %v1801_v58 = vmul.f32 %v5154_v55, %v7083_v42 }
 0x4d0   : > { %1974 = vmatmul.mubr.bf16.vlgmr.msra.gmra.mrb[48].mxu1 %v1829_v36  ;;  %v4475_v34 = vpop.f32.mrb[100].mxu0  ;;  %v5158_v53 = vpop.eup %5157  ;;  %5165 = vrcp.f32 %v1762_v63 }
 0x4d1   : > { %v1832_v8 = vpack.c.bf16 %v1804_v25, %v1802_v49  ;;  %v4476_v13 = vpop.f32.mrb[101].mxu0  ;;  %v1806_v46 = vmul.f32 %v5158_v53, %v7109_v7  ;;  %v1831_v12 = vpack.c.bf16 %v1803_v27, %v1801_v58  ;;  %5167 = vrcp.f32 %v1759_v4  ;;  %v1765_v38 = vpop.xlane.xlu0 %1764 }
 0x4d2   : > { %v5160_v43 = vpop.eup %5159  ;;  %v7260_v47 = vadd.f32 %v4476_v13, %v4475_v34  ;;  %v4478_v17 = vpop.f32.mrb[102].mxu0  ;;  %v1805_v21 = vmul.f32 %v5158_v53, %v7105_v2 }
 0x4d3   : > { %1981 = vmatprep.mubr.bf16.mxu1 %v1832_v8  ;;  %v4479_v62 = vpop.f32.mrb[103].mxu0  ;;  %v1808_v29 = vmul.f32 %v5160_v43, %v7119_v18  ;;  %v1807_v11 = vmul.f32 %v5160_v43, %v7113_v37  ;;  %v1768_v23 = vpop.xlane.xlu1 %1767 }
 0x4d4   : > { %v7264_v32 = vadd.f32 %v4479_v62, %v4478_v17  ;;  %5169 = vrcp.f32 %v1768_v23 }
 0x4d5   : > { %v1834_v44 = vpack.c.bf16 %v1808_v29, %v1806_v46  ;;  %v1833_v41 = vpack.c.bf16 %v1807_v11, %v1805_v21  ;;  %5171 = vrcp.f32 %v1765_v38  ;;  %v1771_v53 = vpop.xlane.xlu0 %1770 }
 0x4d6   : > { %v5162_v6 = vpop.eup %5161 }
 0x4d7   : > { %v5164_v51 = vpop.eup %5163  ;;  %v1812_v9 = vmul.f32 %v5162_v6, %v7138_v15  ;;  %v1811_v1 = vmul.f32 %v5162_v6, %v7135_v61  ;;  %v1774_v49 = vpop.xlane.xlu1 %1773 }
 0x4d8   : > { %1982 = vmatmul.mubr.bf16.gmra.mrb[52].mxu1 %v1831_v12  ;;  %v4481_v56 = vpop.f32.mrb[104].mxu0  ;;  %v1810_v33 = vmul.f32 %v5164_v51, %v7131_v50  ;;  %v1809_v34 = vmul.f32 %v5164_v51, %v7127_v5  ;;  %5173 = vrcp.f32 %v1774_v49 }
 0x4d9   : > { %1989 = vmatprep.mubr.bf16.mxu1 %v1834_v44  ;;  %v4482_v35 = vpop.f32.mrb[105].mxu0  ;;  %5175 = vrcp.f32 %v1771_v53  ;;  %v1777_v12 = vpop.xlane.xlu0 %1776 }
 0x4da   : > { %v7268_v54 = vadd.f32 %v4482_v35, %v4481_v56  ;;  %v4484_v18 = vpop.f32.mrb[106].mxu0  ;;  %v1836_v0 = vpack.c.bf16 %v1812_v9, %v1810_v33  ;;  %v5166_v55 = vpop.eup %5165  ;;  %v1835_v13 = vpack.c.bf16 %v1811_v1, %v1809_v34 }
 0x4db   : > { %v4485_v42 = vpop.f32.mrb[107].mxu0  ;;  %v5168_v19 = vpop.eup %5167  ;;  %v1816_v25 = vmul.f32 %v5166_v55, %v7158_v59  ;;  %v1815_v29 = vmul.f32 %v5166_v55, %v7151_v30 }
 0x4dc   : > { %v7272_v7 = vadd.f32 %v4485_v42, %v4484_v18  ;;  %v1814_v8 = vmul.f32 %v5168_v19, %v7147_v10  ;;  %v1780_v58 = vpop.xlane.xlu1 %1779  ;;  %v1813_v46 = vmul.f32 %v5168_v19, %v7143_v39 }
 0x4dd   : > { %5177 = vrcp.f32 %v1780_v58  ;;  %v8341_v58 = vld [vmem:[#allocation44_spill] sm:$0xff] }
 0x4de   : > { %v1838_v43 = vpack.c.bf16 %v1816_v25, %v1814_v8  ;;  %v5170_v17 = vpop.eup %5169  ;;  %v1837_v6 = vpack.c.bf16 %v1815_v29, %v1813_v46  ;;  %5179 = vrcp.f32 %v1777_v12 }
 0x4df   : > { %v5172_v63 = vpop.eup %5171  ;;  %v1820_v4 = vmul.f32 %v5170_v17, %v7177_v31  ;;  %v1819_v23 = vmul.f32 %v5170_v17, %v7173_v28 }
 0x4e0   : > { %1990 = vmatmul.mubr.bf16.gmra.mrb[56].mxu1 %v1833_v41  ;;  %v4487_v14 = vpop.f32.mrb[108].mxu0  ;;  %v1818_v44 = vmul.f32 %v5172_v63, %v7170_v52  ;;  %v1817_v52 = vmul.f32 %v5172_v63, %v7164_v22  ;;  %v8340_v63 = vld [vmem:[#allocation9_spill] sm:$0xff] }
 0x4e1   : > { %1997 = vmatprep.mubr.bf16.mxu1 %v1836_v0  ;;  %v4488_v37 = vpop.f32.mrb[109].mxu0 }
 0x4e2   : > { %v7276_v36 = vadd.f32 %v4488_v37, %v4487_v14  ;;  %v4490_v15 = vpop.f32.mrb[110].mxu0  ;;  %v1840_v56 = vpack.c.bf16 %v1820_v4, %v1818_v44  ;;  %v5174_v35 = vpop.eup %5173  ;;  %v1839_v38 = vpack.c.bf16 %v1819_v23, %v1817_v52  ;;  %v8342_v4 = vld [vmem:[#allocation10_spill] sm:$0xff] }
 0x4e3   : > { %v4491_v2 = vpop.f32.mrb[111].mxu0  ;;  %v5176_v18 = vpop.eup %5175  ;;  %v1824_v39 = vmul.f32 %v5174_v35, %v7196_v48  ;;  %v1823_v19 = vmul.f32 %v5174_v35, %v7189_v20 }
 0x4e4   : > { %v7280_v50 = vadd.f32 %v4491_v2, %v4490_v15  ;;  %v1822_v21 = vmul.f32 %v5176_v18, %v7186_v26  ;;  %v1821_v22 = vmul.f32 %v5176_v18, %v7180_v45 }
 0x4e6   : > { %v1842_v33 = vpack.c.bf16 %v1824_v39, %v1822_v21  ;;  %v1841_v49 = vpack.c.bf16 %v1823_v19, %v1821_v22  ;;  %v8346_v39 = vld [vmem:[#allocation42_spill] sm:$0xff] }
 0x4e7   : > { %v5178_v41 = vpop.eup %5177 }
 0x4e8   : > { %1998 = vmatmul.mubr.bf16.gmra.mrb[60].mxu1 %v1835_v13  ;;  %v4493_v27 = vpop.f32.mrb[112].mxu0  ;;  %v5180_v14 = vpop.eup %5179  ;;  %v1828_v15 = vmul.f32 %v5178_v41, %v7215_v60  ;;  %v1827_v20 = vmul.f32 %v5178_v41, %v7211_v3  ;;  %v8347_v41 = vld [vmem:[#allocation52_spill] sm:$0xff] }
 0x4e9   : > { %2005 = vmatprep.mubr.bf16.mxu1 %v1838_v43  ;;  %v4494_v61 = vpop.f32.mrb[113].mxu0  ;;  %v1826_v26 = vmul.f32 %v5180_v14, %v7208_v16  ;;  %v1825_v60 = vmul.f32 %v5180_v14, %v7202_v40  ;;  %v8339_v16 = vld [vmem:[#allocation40_spill] sm:$0xff]  ;;  %v8348_v14 = vld [vmem:[#allocation46_spill] sm:$0xff] }
 0x4ea   : > { %v7284_v62 = vadd.f32 %v4494_v61, %v4493_v27  ;;  %v4496_v59 = vpop.f32.mrb[114].mxu0 }
 0x4eb   : > { %v4497_v5 = vpop.f32.mrb[115].mxu0  ;;  %v1844_v2 = vpack.c.bf16 %v1828_v15, %v1826_v26  ;;  %v1843_v17 = vpack.c.bf16 %v1827_v20, %v1825_v60  ;;  %v8350_v26 = vld [vmem:[#allocation47_spill] sm:$0xff]  ;;  %v8351_v60 = vld [vmem:[#allocation56_spill] sm:$0xff] }
 0x4ec   : > { %v7288_v10 = vadd.f32 %v4497_v5, %v4496_v59 }
 0x4f0   : > { %2006 = vmatmul.mubr.bf16.gmra.mrb[64].mxu1 %v1837_v6  ;;  %v4499_v51 = vpop.f32.mrb[116].mxu0  ;;  %v8343_v6 = vld [vmem:[#allocation48_spill] sm:$0xff] }
 0x4f1   : > { %2013 = vmatprep.mubr.bf16.mxu1 %v1840_v56  ;;  %v4500_v30 = vpop.f32.mrb[117].mxu0 }
 0x4f2   : > { %v7292_v11 = vadd.f32 %v4500_v30, %v4499_v51  ;;  %v4502_v31 = vpop.f32.mrb[118].mxu0  ;;  %v8344_v51 = vld [vmem:[#allocation41_spill] sm:$0xff] }
 0x4f3   : > { %v4503_v42 = vpop.f32.mrb[119].mxu0 }
 0x4f4   : > { %v7296_v9 = vadd.f32 %v4503_v42, %v4502_v31  ;;  %v8345_v31 = vld [vmem:[#allocation49_spill] sm:$0xff] }
 0x4f8   : > { %2014 = vmatmul.mubr.bf16.gmra.mrb[68].mxu1 %v1839_v38  ;;  %v4505_v0 = vpop.f32.mrb[120].mxu0 }
 0x4f9   : > { %2021 = vmatprep.mubr.bf16.mxu1 %v1842_v33  ;;  %v4506_v55 = vpop.f32.mrb[121].mxu0 }
 0x4fa   : > { %v7300_v37 = vadd.f32 %v4506_v55, %v4505_v0  ;;  %v4508_v28 = vpop.f32.mrb[122].mxu0 }
 0x4fb   : > { %v4509_v48 = vpop.f32.mrb[123].mxu0 }
 0x4fc   : > { %v7304_v1 = vadd.f32 %v4509_v48, %v4508_v28  ;;  %v8349_v48 = vld [vmem:[#allocation53_spill] sm:$0xff] }
 0x500   : > { %2022 = vmatmul.mubr.bf16.gmra.mrb[72].mxu1 %v1841_v49  ;;  %v4511_v25 = vpop.f32.mrb[124].mxu0 }
 0x501   : > { %2029 = vmatprep.mubr.bf16.mxu1 %v1844_v2  ;;  %v4512_v34 = vpop.f32.mrb[125].mxu0 }
 0x502   : > { %v7308_v53 = vadd.f32 %v4512_v34, %v4511_v25  ;;  %v4514_v8 = vpop.f32.mrb[126].mxu0  ;;  %v2038_v34 = vld [vmem:[#allocation2] sm:$0xff] }
 0x503   : > { %v4515_v13 = vpop.f32.mrb[127].mxu0 }
 0x504   : > { %v7311_v43 = vadd.f32 %v4515_v13, %v4514_v8  ;;  %v2039_v8 = vld [vmem:[#allocation2 + $0x8] sm:$0xff] }
 0x505   : > { %v4757_v20 = vpack.c.bf16 %v2039_v8, %v2038_v34 }
 0x507   : > { %4758 = vmatprep.subr.bf16.mxu1 %v4757_v20 }
 0x508   : > { %2030 = vmatmul.mubr.bf16.gmra.mrb[76].mxu1 %v1843_v17 }
 0x509   : > { %v3029_v45 = vpop.f32.mrb[128].mxu0  ;;  %4760 = vmatpush3.bf16.msra.mxu1 %v4757_v20  ;;  %v8360_v20 = vld [vmem:[#allocation58_spill] sm:$0xff] }
 0x50a   : > { %v7315_v27 = vmul.f32 %v3029_v45, %v8339_v16  ;;  %v3031_v61 = vpop.f32.mrb[129].mxu0  ;;  %v8352_v16 = vld [vmem:[#allocation50_spill] sm:$0xff] }
 0x50b   : > { %v7318_v59 = vmul.f32 %v3031_v61, %v8340_v63  ;;  %v3033_v29 = vpop.f32.mrb[130].mxu0 }
 0x50c   : > { %v7321_v5 = vmul.f32 %v3033_v29, %v8341_v58  ;;  %v3035_v3 = vpop.f32.mrb[131].mxu0  ;;  %v2040_v29 = vld [vmem:[#allocation2 + $0x10] sm:$0xff]  ;;  %v2041_v58 = vld [vmem:[#allocation2 + $0x18] sm:$0xff] }
 0x50d   : > { %v7324_v46 = vmul.f32 %v3035_v3, %v8342_v4  ;;  %v3140_v40 = vmax.f32 %v7315_v27, %v7318_v59  ;;  %v8353_v3 = vld [vmem:[#allocation57_spill] sm:$0xff] }
 0x50f   : > { %3141 = vmax.xlane.f32.xlu0 %v3140_v40  ;;  %v3143_v12 = vmax.f32 %v7321_v5, %v7324_v46 }
 0x511   : > { %v3039_v44 = vpop.f32.mrb[132].mxu0  ;;  %3144 = vmax.xlane.f32.xlu1 %v3143_v12  ;;  %v4761_v12 = vpack.c.bf16 %v2041_v58, %v2040_v29  ;;  %v8362_v29 = vld [vmem:[#allocation59_spill] sm:$0xff] }
 0x512   : > { %v7331_v56 = vmul.f32 %v3039_v44, %v8343_v6  ;;  %v3041_v35 = vpop.f32.mrb[133].mxu0  ;;  %v8354_v44 = vld [vmem:[#allocation51_spill] sm:$0xff] }
 0x513   : > { %v7334_v30 = vmul.f32 %v3041_v35, %v8344_v51  ;;  %v3043_v18 = vpop.f32.mrb[134].mxu0  ;;  %4762 = vmatprep.subr.bf16.mxu1 %v4761_v12 }
 0x514   : > { %v7337_v23 = vmul.f32 %v3043_v18, %v8345_v31  ;;  %v3045_v42 = vpop.f32.mrb[135].mxu0  ;;  %4764 = vmatpush3.bf16.msra.mxu1 %v4761_v12  ;;  %v8355_v31 = vld [vmem:[#allocation60_spill] sm:$0xff] }
 0x515   : > { %v7340_v52 = vmul.f32 %v3045_v42, %v8346_v39  ;;  %v3146_v21 = vmax.f32 %v7331_v56, %v7334_v30 }
 0x517   : > { %3147 = vmax.xlane.f32.xlu0 %v3146_v21  ;;  %v3149_v38 = vmax.f32 %v7337_v23, %v7340_v52  ;;  %v8356_v21 = vld [vmem:[#allocation54_spill] sm:$0xff] }
 0x519   : > { %v3049_v33 = vpop.f32.mrb[136].mxu0  ;;  %3150 = vmax.xlane.f32.xlu1 %v3149_v38 }
 0x51a   : > { %v7347_v0 = vmul.f32 %v3049_v33, %v8347_v41  ;;  %v3051_v55 = vpop.f32.mrb[137].mxu0  ;;  %v8357_v41 = vld [vmem:[#allocation61_spill] sm:$0xff] }
 0x51b   : > { %v7350_v28 = vmul.f32 %v3051_v55, %v8348_v14  ;;  %v3053_v19 = vpop.f32.mrb[138].mxu0 }
 0x51c   : > { %v7353_v15 = vmul.f32 %v3053_v19, %v8349_v48  ;;  %v3055_v22 = vpop.f32.mrb[139].mxu0  ;;  %v8358_v19 = vld [vmem:[#allocation55_spill] sm:$0xff] }
 0x51d   : > { %v7356_v49 = vmul.f32 %v3055_v22, %v8350_v26  ;;  %v3152_v2 = vmax.f32 %v7347_v0, %v7350_v28 }
 0x51f   : > { %3153 = vmax.xlane.f32.xlu0 %v3152_v2  ;;  %v3155_v25 = vmax.f32 %v7353_v15, %v7356_v49 }
 0x521   : > { %v3059_v13 = vpop.f32.mrb[140].mxu0  ;;  %3156 = vmax.xlane.f32.xlu1 %v3155_v25  ;;  %v8359_v25 = vld [vmem:[#allocation64_spill] sm:$0xff] }
 0x522   : > { %v7363_v17 = vmul.f32 %v3059_v13, %v8351_v60  ;;  %v3061_v45 = vpop.f32.mrb[141].mxu0 }
 0x523   : > { %v7366_v61 = vmul.f32 %v3061_v45, %v8352_v16  ;;  %v3063_v63 = vpop.f32.mrb[142].mxu0  ;;  %v8361_v45 = vld [vmem:[#allocation65_spill] sm:$0xff] }
 0x524   : > { %v7369_v4 = vmul.f32 %v3063_v63, %v8353_v3  ;;  %v3065_v40 = vpop.f32.mrb[143].mxu0 }
 0x525   : > { %v7372_v6 = vmul.f32 %v3065_v40, %v8354_v44  ;;  %v3158_v35 = vmax.f32 %v7363_v17, %v7366_v61  ;;  %v8363_v44 = vld [vmem:[#allocation68_spill] sm:$0xff] }
 0x527   : > { %3159 = vmax.xlane.f32.xlu0 %v3158_v35  ;;  %v3161_v51 = vmax.f32 %v7369_v4, %v7372_v6 }
 0x529   : > { %v3069_v18 = vpop.f32.mrb[144].mxu0  ;;  %3162 = vmax.xlane.f32.xlu1 %v3161_v51 }
 0x52a   : > { %v7379_v42 = vmul.f32 %v3069_v18, %v8355_v31  ;;  %v3071_v39 = vpop.f32.mrb[145].mxu0  ;;  %v8364_v18 = vld [vmem:[#allocation62_spill] sm:$0xff] }
 0x52b   : > { %v7382_v38 = vmul.f32 %v3071_v39, %v8356_v21  ;;  %v3073_v33 = vpop.f32.mrb[146].mxu0  ;;  %v8365_v21 = vld [vmem:[#allocation69_spill] sm:$0xff] }
 0x52c   : > { %v7385_v55 = vmul.f32 %v3073_v33, %v8357_v41  ;;  %v3075_v14 = vpop.f32.mrb[147].mxu0 }
 0x52d   : > { %v7388_v48 = vmul.f32 %v3075_v14, %v8358_v19  ;;  %v3164_v22 = vmax.f32 %v7379_v42, %v7382_v38  ;;  %v8366_v14 = vld [vmem:[#allocation63_spill] sm:$0xff] }
 0x52f   : > { %3165 = vmax.xlane.f32.xlu0 %v3164_v22  ;;  %v3167_v26 = vmax.f32 %v7385_v55, %v7388_v48 }
 0x531   : > { %v3079_v2 = vpop.f32.mrb[148].mxu0  ;;  %3168 = vmax.xlane.f32.xlu1 %v3167_v26 }
 0x532   : > { %v7395_v34 = vmul.f32 %v3079_v2, %v8359_v25  ;;  %v3081_v8 = vpop.f32.mrb[149].mxu0  ;;  %v8367_v25 = vld [vmem:[#allocation70_spill] sm:$0xff] }
 0x533   : > { %v7398_v13 = vmul.f32 %v3081_v8, %v8360_v20  ;;  %v3083_v60 = vpop.f32.mrb[150].mxu0 }
 0x534   : > { %v7401_v16 = vmul.f32 %v3083_v60, %v8361_v45  ;;  %v3085_v63 = vpop.f32.mrb[151].mxu0  ;;  %v8368_v60 = vld [vmem:[#allocation66_spill] sm:$0xff] }
 0x535   : > { %v7404_v58 = vmul.f32 %v3085_v63, %v8362_v29  ;;  %v3170_v3 = vmax.f32 %v7395_v34, %v7398_v13  ;;  %v8369_v29 = vld [vmem:[#allocation71_spill] sm:$0xff] }
 0x537   : > { %3171 = vmax.xlane.f32.xlu0 %v3170_v3  ;;  %v3173_v40 = vmax.f32 %v7401_v16, %v7404_v58 }
 0x539   : > { %v3089_v12 = vpop.f32.mrb[152].mxu0  ;;  %3174 = vmax.xlane.f32.xlu1 %v3173_v40 }
 0x53a   : > { %v7411_v35 = vmul.f32 %v3089_v12, %v8363_v44  ;;  %v3091_v51 = vpop.f32.mrb[153].mxu0  ;;  %v8370_v12 = vld [vmem:[#allocation67_spill] sm:$0xff] }
 0x53b   : > { %v7414_v31 = vmul.f32 %v3091_v51, %v8364_v18  ;;  %v3093_v39 = vpop.f32.mrb[154].mxu0 }
 0x53c   : > { %v7417_v33 = vmul.f32 %v3093_v39, %v8365_v21  ;;  %v3095_v41 = vpop.f32.mrb[155].mxu0  ;;  %v2766_v39 = vld [vmem:[#allocation2 + $0x20] sm:$0xff]  ;;  %v2767_v21 = vld [vmem:[#allocation2 + $0x28] sm:$0xff] }
 0x53d   : > { %v7420_v19 = vmul.f32 %v3095_v41, %v8366_v14  ;;  %v3176_v22 = vmax.f32 %v7411_v35, %v7414_v31  ;;  %v4765_v41 = vpack.c.bf16 %v2767_v21, %v2766_v39  ;;  %v2768_v39 = vld [vmem:[#allocation2 + $0x30] sm:$0xff]  ;;  %v2769_v21 = vld [vmem:[#allocation2 + $0x38] sm:$0xff] }
 0x53f   : > { %3177 = vmax.xlane.f32.xlu0 %v3176_v22  ;;  %v3179_v26 = vmax.f32 %v7417_v33, %v7420_v19  ;;  %4766 = vmatprep.subr.bf16.mxu1 %v4765_v41 }
 0x541   : > { %v3099_v2 = vpop.f32.mrb[156].mxu0  ;;  %3180 = vmax.xlane.f32.xlu1 %v3179_v26 }
 0x542   : > { %v7427_v8 = vmul.f32 %v3099_v2, %v8367_v25  ;;  %v3101_v20 = vpop.f32.mrb[157].mxu0 }
 0x543   : > { %v7430_v45 = vmul.f32 %v3101_v20, %v8368_v60  ;;  %v3103_v63 = vpop.f32.mrb[158].mxu0 }
 0x544   : > { %v7433_v3 = vmul.f32 %v3103_v63, %v8369_v29  ;;  %v3105_v40 = vpop.f32.mrb[159].mxu0 }
 0x545   : > { %v7436_v44 = vmul.f32 %v3105_v40, %v8370_v12  ;;  %v3182_v51 = vmax.f32 %v7427_v8, %v7430_v45 }
 0x547   : > { %3183 = vmax.xlane.f32.xlu0 %v3182_v51  ;;  %v3185_v18 = vmax.f32 %v7433_v3, %v7436_v44 }
 0x549   : > { %3186 = vmax.xlane.f32.xlu1 %v3185_v18 }
 0x59c   : > { %v3142_v14 = vpop.xlane.xlu0 %3141 }
 0x59d   : > { %v3188_v22 = vsub.f32 %v7315_v27, %v3142_v14  ;;  %v3189_v26 = vsub.f32 %v7318_v59, %v3142_v14 }
 0x59e   : > { %v3145_v2 = vpop.xlane.xlu1 %3144 }
 0x59f   : > { %v3220_v25 = vmul.f32 1.442695, %v3188_v22  ;;  %v3222_v20 = vmul.f32 1.442695, %v3189_v26  ;;  %v3190_v60 = vsub.f32 %v7321_v5, %v3145_v2  ;;  %v3191_v63 = vsub.f32 %v7324_v46, %v3145_v2 }
 0x5a1   : > { %5181 = vpow2.f32 %v3220_v25  ;;  %v3224_v29 = vmul.f32 1.442695, %v3190_v60  ;;  %v3226_v40 = vmul.f32 1.442695, %v3191_v63  ;;  %v4769_v63 = vpack.c.bf16 %v2769_v21, %v2768_v39 }
 0x5a2   : > { %5183 = vpow2.f32 %v3222_v20 }
 0x5a3   : > { %5185 = vpow2.f32 %v3224_v29  ;;  %v4385_v12 = vpop.f32.mrb[48].mxu1 }
 0x5a4   : > { %5187 = vpow2.f32 %v3226_v40  ;;  %v3148_v51 = vpop.xlane.xlu0 %3147  ;;  %v4386_v18 = vpop.f32.mrb[49].mxu1 }
 0x5a5   : > { %v3192_v27 = vsub.f32 %v7331_v56, %v3148_v51  ;;  %v3193_v59 = vsub.f32 %v7334_v30, %v3148_v51  ;;  %v4387_v14 = vadd.f32 %v4386_v18, %v4385_v12  ;;  %v4388_v22 = vpop.f32.mrb[50].mxu1 }
 0x5a6   : > { %v3151_v5 = vpop.xlane.xlu1 %3150  ;;  %v4389_v2 = vpop.f32.mrb[51].mxu1 }
 0x5a7   : > { %v3228_v26 = vmul.f32 1.442695, %v3192_v27  ;;  %v3230_v46 = vmul.f32 1.442695, %v3193_v59  ;;  %v3194_v25 = vsub.f32 %v7337_v23, %v3151_v5  ;;  %v3195_v20 = vsub.f32 %v7340_v52, %v3151_v5  ;;  %4661 = vmatprep.mubr.msk.f32.mxu1 %vm8371_vm3, %v4387_v14  ;;  %vm8387_vm3 = vmmov %vm8373_vm0 }
 0x5a8   : > { %v4390_v60 = vadd.f32 %v4389_v2, %v4388_v22 }
 0x5a9   : > { %5189 = vpow2.f32 %v3228_v26  ;;  %v3232_v56 = vmul.f32 1.442695, %v3194_v25  ;;  %v3234_v29 = vmul.f32 1.442695, %v3195_v20  ;;  %v5293_v25 = vld [vmem:[%s5765_s14 + $0x40] sm:$0xff]  }
 0x5aa   : > { %5191 = vpow2.f32 %v3230_v46  ;;  %4662 = vmatmul.mubr.msk.f32.vlgmr.msra.gmra.mrb[32].mxu1 %vm8372_vm1, %v4390_v60  ;;  %vm8388_vm1 = vmmov %vm8373_vm0 }
 0x5ab   : > { %v7452_v30 = vpop.eup %5181  ;;  %5193 = vpow2.f32 %v3232_v56  ;;  %4768 = vmatpush3.bf16.msra.mxu1 %v4765_v41  ;;  %v4391_v23 = vpop.f32.mrb[52].mxu1 }
 0x5ac   : > { %v7454_v40 = vpop.eup %5183  ;;  %5195 = vpow2.f32 %v3234_v29  ;;  %v3154_v12 = vpop.xlane.xlu0 %3153  ;;  %4770 = vmatprep.subr.bf16.mxu1 %v4769_v63 }
 0x5ad   : > { %v7456_v52 = vpop.eup %5185  ;;  %v4392_v51 = vpop.f32.mrb[53].mxu1  ;;  %v3196_v18 = vsub.f32 %v7347_v0, %v3154_v12  ;;  %v3197_v27 = vsub.f32 %v7350_v28, %v3154_v12  ;;  %v3284_v59 = vadd.f32 %v7454_v40, %v7452_v30 }
 0x5ae   : > { %v7462_v39 = vpop.eup %5187  ;;  %v4393_v41 = vadd.f32 %v4392_v51, %v4391_v23  ;;  %v4394_v21 = vpop.f32.mrb[54].mxu1 }
 0x5af   : > { %v3157_v14 = vpop.xlane.xlu1 %3156  ;;  %v3236_v22 = vmul.f32 1.442695, %v3196_v18  ;;  %v3238_v5 = vmul.f32 1.442695, %v3197_v27  ;;  %v4395_v26 = vpop.f32.mrb[55].mxu1  ;;  %3285 = vadd.xlane.f32.xlu0 %v3284_v59  ;;  %4772 = vmatpush3.bf16.msra.mxu1 %v4769_v63  ;;  %v3287_v28 = vadd.f32 %v7462_v39, %v7456_v52 }
 0x5b0   : > { %v3198_v46 = vsub.f32 %v7353_v15, %v3157_v14  ;;  %v3199_v2 = vsub.f32 %v7356_v49, %v3157_v14  ;;  %v4396_v0 = vadd.f32 %v4395_v26, %v4394_v21  ;;  %4664 = vmatprep.mubr.msk.f32.mxu1 %vm8373_vm0, %v4393_v41  ;;  %4537 = vmatprep.subr.bf16.mxu1 %v5293_v25 }
 0x5b1   : > { %5197 = vpow2.f32 %v3236_v22  ;;  %3288 = vadd.xlane.f32.xlu1 %v3287_v28 }
 0x5b2   : > { %v3240_v20 = vmul.f32 1.442695, %v3198_v46  ;;  %v3242_v60 = vmul.f32 1.442695, %v3199_v2  ;;  %5199 = vpow2.f32 %v3238_v5  ;;  %4665 = vmatmul.mubr.msk.f32.gmra.mrb[34].mxu1 %vm8374_vm9, %v4396_v0  ;;  %vm8389_vm9 = vmmov %vm8373_vm0 }
 0x5b3   : > { %v7471_v56 = vpop.eup %5189  ;;  %v4397_v49 = vpop.f32.mrb[56].mxu1 }
 0x5b4   : > { %5201 = vpow2.f32 %v3240_v20  ;;  %v7473_v15 = vpop.eup %5191  ;;  %v3160_v63 = vpop.xlane.xlu0 %3159 }
 0x5b5   : > { %5203 = vpow2.f32 %v3242_v60  ;;  %v7475_v29 = vpop.eup %5193  ;;  %v4398_v23 = vpop.f32.mrb[57].mxu1  ;;  %v3200_v12 = vsub.f32 %v7363_v17, %v3160_v63  ;;  %v3201_v51 = vsub.f32 %v7366_v61, %v3160_v63  ;;  %v3290_v18 = vadd.f32 %v7473_v15, %v7471_v56 }
 0x5b6   : > { %v7481_v27 = vpop.eup %5195  ;;  %v4399_v59 = vadd.f32 %v4398_v23, %v4397_v49  ;;  %v4400_v41 = vpop.f32.mrb[58].mxu1 }
 0x5b7   : > { %v3163_v21 = vpop.xlane.xlu1 %3162  ;;  %v3244_v14 = vmul.f32 1.442695, %v3200_v12  ;;  %v3246_v22 = vmul.f32 1.442695, %v3201_v51  ;;  %v4401_v5 = vpop.f32.mrb[59].mxu1  ;;  %3291 = vadd.xlane.f32.xlu0 %v3290_v18  ;;  %v3293_v17 = vadd.f32 %v7481_v27, %v7475_v29 }
 0x5b8   : > { %v3202_v26 = vsub.f32 %v7369_v4, %v3163_v21  ;;  %v3203_v46 = vsub.f32 %v7372_v6, %v3163_v21  ;;  %v4402_v2 = vadd.f32 %v4401_v5, %v4400_v41  ;;  %4667 = vmatprep.mubr.msk.f32.mxu1 %vm8375_vm11, %v4399_v59  ;;  %vm8390_vm11 = vmmov %vm8373_vm0 }
 0x5b9   : > { %5205 = vpow2.f32 %v3244_v14  ;;  %3294 = vadd.xlane.f32.xlu1 %v3293_v17 }
 0x5ba   : > { %v3248_v61 = vmul.f32 1.442695, %v3202_v26  ;;  %v3250_v0 = vmul.f32 1.442695, %v3203_v46  ;;  %5207 = vpow2.f32 %v3246_v22  ;;  %4668 = vmatmul.mubr.msk.f32.gmra.mrb[36].mxu1 %vm8376_vm6, %v4402_v2  ;;  %vm8391_vm6 = vmmov %vm8373_vm0 }
 0x5bb   : > { %v7489_v28 = vpop.eup %5197  ;;  %v4403_v4 = vpop.f32.mrb[60].mxu1 }
 0x5bc   : > { %5209 = vpow2.f32 %v3248_v61  ;;  %v7491_v25 = vpop.eup %5199  ;;  %v3166_v6 = vpop.xlane.xlu0 %3165 }
 0x5bd   : > { %5211 = vpow2.f32 %v3250_v0  ;;  %v4404_v60 = vpop.f32.mrb[61].mxu1  ;;  %v3204_v49 = vsub.f32 %v7379_v42, %v3166_v6  ;;  %v3205_v63 = vsub.f32 %v7382_v38, %v3166_v6  ;;  %v3296_v23 = vadd.f32 %v7491_v25, %v7489_v28 }
 0x5be   : > { %v7493_v20 = vpop.eup %5201  ;;  %v4405_v51 = vadd.f32 %v4404_v60, %v4403_v4  ;;  %v4406_v18 = vpop.f32.mrb[62].mxu1 }
 0x5bf   : > { %v7499_v12 = vpop.eup %5203  ;;  %v3169_v59 = vpop.xlane.xlu1 %3168  ;;  %v3252_v41 = vmul.f32 1.442695, %v3204_v49  ;;  %v3254_v21 = vmul.f32 1.442695, %v3205_v63  ;;  %3297 = vadd.xlane.f32.xlu0 %v3296_v23 }
 0x5c0   : > { %v4407_v14 = vpop.f32.mrb[63].mxu1  ;;  %v3206_v22 = vsub.f32 %v7385_v55, %v3169_v59  ;;  %v3207_v5 = vsub.f32 %v7388_v48, %v3169_v59  ;;  %4670 = vmatprep.mubr.msk.f32.mxu1 %vm8377_vm2, %v4405_v51  ;;  %v3299_v42 = vadd.f32 %v7499_v12, %v7493_v20  ;;  %vm8392_vm2 = vmmov %vm8373_vm0 }
 0x5c1   : > { %v4408_v26 = vadd.f32 %v4407_v14, %v4406_v18  ;;  %5213 = vpow2.f32 %v3252_v41 }
 0x5c2   : > { %v3256_v38 = vmul.f32 1.442695, %v3206_v22  ;;  %v3258_v46 = vmul.f32 1.442695, %v3207_v5  ;;  %5215 = vpow2.f32 %v3254_v21  ;;  %3300 = vadd.xlane.f32.xlu1 %v3299_v42 }
 0x5c3   : > { %4671 = vmatmul.mubr.msk.f32.gmra.mrb[38].mxu1 %vm8378_vm7, %v4408_v26  ;;  %v7507_v2 = vpop.eup %5205  ;;  %v4409_v55 = vpop.f32.mrb[64].mxu1  ;;  %vm8393_vm7 = vmmov %vm8373_vm0 }
 0x5c4   : > { %5217 = vpow2.f32 %v3256_v38  ;;  %v7509_v17 = vpop.eup %5207  ;;  %v3172_v48 = vpop.xlane.xlu0 %3171 }
 0x5c5   : > { %5219 = vpow2.f32 %v3258_v46  ;;  %v4410_v0 = vpop.f32.mrb[65].mxu1  ;;  %v3208_v4 = vsub.f32 %v7395_v34, %v3172_v48  ;;  %v3209_v6 = vsub.f32 %v7398_v13, %v3172_v48  ;;  %v3302_v60 = vadd.f32 %v7509_v17, %v7507_v2 }
 0x5c6   : > { %v7511_v61 = vpop.eup %5209  ;;  %v4411_v63 = vadd.f32 %v4410_v0, %v4409_v55  ;;  %v4412_v23 = vpop.f32.mrb[66].mxu1 }
 0x5c7   : > { %v7517_v49 = vpop.eup %5211  ;;  %v3175_v51 = vpop.xlane.xlu1 %3174  ;;  %v3260_v18 = vmul.f32 1.442695, %v3208_v4  ;;  %v3262_v59 = vmul.f32 1.442695, %v3209_v6  ;;  %3303 = vadd.xlane.f32.xlu0 %v3302_v60 }
 0x5c8   : > { %v4413_v41 = vpop.f32.mrb[67].mxu1  ;;  %v3210_v21 = vsub.f32 %v7401_v16, %v3175_v51  ;;  %v3211_v14 = vsub.f32 %v7404_v58, %v3175_v51  ;;  %4673 = vmatprep.mubr.msk.f32.mxu1 %vm8379_vm8, %v4411_v63  ;;  %v3305_v34 = vadd.f32 %v7517_v49, %v7511_v61  ;;  %vm8394_vm8 = vmmov %vm8373_vm0 }
 0x5c9   : > { %v4414_v22 = vadd.f32 %v4413_v41, %v4412_v23  ;;  %5221 = vpow2.f32 %v3260_v18 }
 0x5ca   : > { %v3264_v13 = vmul.f32 1.442695, %v3210_v21  ;;  %v3266_v5 = vmul.f32 1.442695, %v3211_v14  ;;  %5223 = vpow2.f32 %v3262_v59  ;;  %3306 = vadd.xlane.f32.xlu1 %v3305_v34 }
 0x5cb   : > { %4674 = vmatmul.mubr.msk.f32.gmra.mrb[40].mxu1 %vm8380_vm14, %v4414_v22  ;;  %v7525_v26 = vpop.eup %5213  ;;  %v4415_v16 = vpop.f32.mrb[68].mxu1  ;;  %vm8395_vm14 = vmmov %vm8373_vm0 }
 0x5cc   : > { %5225 = vpow2.f32 %v3264_v13  ;;  %v7527_v42 = vpop.eup %5215  ;;  %v3178_v58 = vpop.xlane.xlu0 %3177 }
 0x5cd   : > { %5227 = vpow2.f32 %v3266_v5  ;;  %v4416_v46 = vpop.f32.mrb[69].mxu1  ;;  %v3212_v55 = vsub.f32 %v7411_v35, %v3178_v58  ;;  %v3213_v48 = vsub.f32 %v7414_v31, %v3178_v58  ;;  %v3308_v0 = vadd.f32 %v7527_v42, %v7525_v26 }
 0x5ce   : > { %v7529_v38 = vpop.eup %5217  ;;  %v4417_v6 = vadd.f32 %v4416_v46, %v4415_v16  ;;  %v4418_v60 = vpop.f32.mrb[70].mxu1 }
 0x5cf   : > { %v7535_v4 = vpop.eup %5219  ;;  %v3181_v63 = vpop.xlane.xlu1 %3180  ;;  %v3268_v23 = vmul.f32 1.442695, %v3212_v55  ;;  %v3270_v51 = vmul.f32 1.442695, %v3213_v48  ;;  %3309 = vadd.xlane.f32.xlu0 %v3308_v0 }
 0x5d0   : > { %v4419_v18 = vpop.f32.mrb[71].mxu1  ;;  %v3214_v59 = vsub.f32 %v7417_v33, %v3181_v63  ;;  %v3215_v41 = vsub.f32 %v7420_v19, %v3181_v63  ;;  %4676 = vmatprep.mubr.msk.f32.mxu1 %vm8381_vm4, %v4417_v6  ;;  %v3311_v35 = vadd.f32 %v7535_v4, %v7529_v38  ;;  %vm8396_vm4 = vmmov %vm8373_vm0 }
 0x5d1   : > { %v4420_v21 = vadd.f32 %v4419_v18, %v4418_v60  ;;  %5229 = vpow2.f32 %v3268_v23 }
 0x5d2   : > { %v3272_v31 = vmul.f32 1.442695, %v3214_v59  ;;  %v3274_v14 = vmul.f32 1.442695, %v3215_v41  ;;  %5231 = vpow2.f32 %v3270_v51  ;;  %3312 = vadd.xlane.f32.xlu1 %v3311_v35 }
 0x5d3   : > { %4677 = vmatmul.mubr.msk.f32.gmra.mrb[42].mxu1 %vm8382_vm12, %v4420_v21  ;;  %v7543_v22 = vpop.eup %5221  ;;  %v4421_v33 = vpop.f32.mrb[72].mxu1  ;;  %vm8397_vm12 = vmmov %vm8373_vm0 }
 0x5d4   : > { %5233 = vpow2.f32 %v3272_v31  ;;  %v7545_v34 = vpop.eup %5223  ;;  %v3184_v19 = vpop.xlane.xlu0 %3183 }
 0x5d5   : > { %5235 = vpow2.f32 %v3274_v14  ;;  %v4422_v5 = vpop.f32.mrb[73].mxu1  ;;  %v3216_v16 = vsub.f32 %v7427_v8, %v3184_v19  ;;  %v3217_v58 = vsub.f32 %v7430_v45, %v3184_v19  ;;  %v3314_v46 = vadd.f32 %v7545_v34, %v7543_v22 }
 0x5d6   : > { %v7547_v13 = vpop.eup %5225  ;;  %v4423_v48 = vadd.f32 %v4422_v5, %v4421_v33  ;;  %v4424_v0 = vpop.f32.mrb[74].mxu1 }
 0x5d7   : > { %v7553_v55 = vpop.eup %5227  ;;  %v3187_v6 = vpop.xlane.xlu1 %3186  ;;  %v3276_v60 = vmul.f32 1.442695, %v3216_v16  ;;  %v3278_v63 = vmul.f32 1.442695, %v3217_v58  ;;  %3315 = vadd.xlane.f32.xlu0 %v3314_v46 }
 0x5d8   : > { %v4425_v23 = vpop.f32.mrb[75].mxu1  ;;  %v3218_v51 = vsub.f32 %v7433_v3, %v3187_v6  ;;  %v3219_v18 = vsub.f32 %v7436_v44, %v3187_v6  ;;  %4679 = vmatprep.mubr.msk.f32.mxu1 %vm8383_vm15, %v4423_v48  ;;  %v3317_v8 = vadd.f32 %v7553_v55, %v7547_v13  ;;  %vm8398_vm15 = vmmov %vm8373_vm0 }
 0x5d9   : > { %v4426_v59 = vadd.f32 %v4425_v23, %v4424_v0  ;;  %5237 = vpow2.f32 %v3276_v60  ;;  %v5294_v23 = vld [vmem:[%s5765_s14] sm:$0xff]  }
 0x5da   : > { %v3280_v45 = vmul.f32 1.442695, %v3218_v51  ;;  %v3282_v41 = vmul.f32 1.442695, %v3219_v18  ;;  %5239 = vpow2.f32 %v3278_v63  ;;  %3318 = vadd.xlane.f32.xlu1 %v3317_v8  ;;  %v5295_v51 = vld [vmem:[%s5765_s14 + $0x48] sm:$0xff]   ;;  %v5298_v18 = vld [vmem:[%s5765_s14 + $0x10] sm:$0xff]  }
 0x5db   : > { %4680 = vmatmul.mubr.msk.f32.gmra.mrb[44].mxu1 %vm8384_vm13, %v4426_v59  ;;  %v7561_v21 = vpop.eup %5229  ;;  %v4427_v3 = vpop.f32.mrb[76].mxu1  ;;  %v5299_v59 = vld [vmem:[%s5765_s14 + $0x58] sm:$0xff]   ;;  %vm8399_vm13 = vmmov %vm8373_vm0  ;;  %v3495_v8 = vld [vmem:[#allocation2 + $0x48] sm:$0xff] }
 0x5dc   : > { %5241 = vpow2.f32 %v3280_v45  ;;  %v7563_v35 = vpop.eup %5231  ;;  %v4428_v31 = vpop.f32.mrb[77].mxu1 }
 0x5dd   : > { %5243 = vpow2.f32 %v3282_v41  ;;  %v3320_v14 = vadd.f32 %v7563_v35, %v7561_v21  ;;  %v4429_v19 = vadd.f32 %v4428_v31, %v4427_v3  ;;  %v4430_v5 = vpop.f32.mrb[78].mxu1 }
 0x5de   : > { %v7565_v44 = vpop.eup %5233  ;;  %v4431_v16 = vpop.f32.mrb[79].mxu1 }
 0x5df   : > { %v7569_v33 = vpop.eup %5235  ;;  %3321 = vadd.xlane.f32.xlu0 %v3320_v14  ;;  %v4432_v46 = vadd.f32 %v4431_v16, %v4430_v5  ;;  %4682 = vmatprep.mubr.msk.f32.mxu1 %vm8385_vm10, %v4429_v19  ;;  %vm8400_vm10 = vmmov %vm8373_vm0 }
 0x5e0   : > { %v3323_v58 = vadd.f32 %v7569_v33, %v7565_v44 }
 0x5e1   : > { %4683 = vmatmul.mubr.msk.f32.gmra.mrb[46].mxu1 %vm8386_vm5, %v4432_v46  ;;  %vm8401_vm5 = vmmov %vm8373_vm0 }
 0x5e2   : > { %3324 = vadd.xlane.f32.xlu1 %v3323_v58  ;;  %4693 = vmatprep.mubr.msk.f32.mxu1 %vm8387_vm3, %v7250_v57  ;;  %vm8402_vm3 = vmmov %vm8373_vm0 }
 0x5e3   : > { %v7575_v48 = vpop.eup %5237 }
 0x5e4   : > { %v7579_v0 = vpop.eup %5239 }
 0x5e5   : > { %v3326_v60 = vadd.f32 %v7579_v0, %v7575_v48  ;;  %4694 = vmatmul.mubr.msk.f32.vlgmr.msra.gmra.mrb[32].mxu1 %vm8388_vm1, %v7256_v24  ;;  %v5296_v24 = vld [vmem:[%s5765_s14 + $0x8] sm:$0xff]   ;;  %vm8403_vm1 = vmmov %vm8373_vm0 }
 0x5e6   : > { %v7581_v6 = vpop.eup %5241  ;;  %4696 = vmatprep.mubr.msk.f32.mxu1 %vm8373_vm0, %v7260_v47  ;;  %4538 = vmatpush3.bf16.msra.mxu1 %v5294_v23  ;;  %v5297_v47 = vld [vmem:[%s5765_s14 + $0x50] sm:$0xff]  }
 0x5e7   : > { %v7585_v63 = vpop.eup %5243  ;;  %3327 = vadd.xlane.f32.xlu0 %v3326_v60  ;;  %4539 = vmatprep.subr.bf16.mxu1 %v5295_v51 }
 0x5e8   : > { %v3329_v57 = vadd.f32 %v7585_v63, %v7581_v6 }
 0x5e9   : > { %4697 = vmatmul.mubr.msk.f32.gmra.mrb[34].mxu1 %vm8389_vm9, %v7264_v32  ;;  %v5300_v32 = vld [vmem:[%s5765_s14 + $0x18] sm:$0xff]   ;;  %vm8404_vm9 = vmmov %vm8373_vm0 }
 0x5ea   : > { %3330 = vadd.xlane.f32.xlu1 %v3329_v57  ;;  %4699 = vmatprep.mubr.msk.f32.mxu1 %vm8390_vm11, %v7268_v54  ;;  %v5301_v54 = vld [vmem:[%s5765_s14 + $0x60] sm:$0xff]   ;;  %vm8405_vm11 = vmmov %vm8373_vm0 }
 0x5eb   : > { %4540 = vmatpush3.bf16.msra.mxu1 %v5296_v24 }
 0x5ec   : > { %4541 = vmatprep.subr.bf16.mxu1 %v5297_v47 }
 0x5ed   : > { %4700 = vmatmul.mubr.msk.f32.gmra.mrb[36].mxu1 %vm8391_vm6, %v7272_v7  ;;  %v5302_v7 = vld [vmem:[%s5765_s14 + $0x20] sm:$0xff]   ;;  %vm8406_vm6 = vmmov %vm8373_vm0 }
 0x5ee   : > { %4702 = vmatprep.mubr.msk.f32.mxu1 %vm8392_vm2, %v7276_v36  ;;  %v5303_v36 = vld [vmem:[%s5765_s14 + $0x68] sm:$0xff]   ;;  %vm8407_vm2 = vmmov %vm8373_vm0 }
 0x5ef   : > { %4542 = vmatpush3.bf16.msra.mxu1 %v5298_v18 }
 0x5f0   : > { %4543 = vmatprep.subr.bf16.mxu1 %v5299_v59 }
 0x5f1   : > { %4703 = vmatmul.mubr.msk.f32.gmra.mrb[38].mxu1 %vm8393_vm7, %v7280_v50  ;;  %v5304_v50 = vld [vmem:[%s5765_s14 + $0x28] sm:$0xff]   ;;  %vm8408_vm7 = vmmov %vm8373_vm0 }
 0x5f2   : > { %4705 = vmatprep.mubr.msk.f32.mxu1 %vm8394_vm8, %v7284_v62  ;;  %v5305_v62 = vld [vmem:[%s5765_s14 + $0x70] sm:$0xff]   ;;  %vm8409_vm8 = vmmov %vm8373_vm0 }
 0x5f3   : > { %4544 = vmatpush3.bf16.msra.mxu1 %v5300_v32 }
 0x5f4   : > { %4545 = vmatprep.subr.bf16.mxu1 %v5301_v54 }
 0x5f5   : > { %4706 = vmatmul.mubr.msk.f32.gmra.mrb[40].mxu1 %vm8395_vm14, %v7288_v10  ;;  %v5306_v10 = vld [vmem:[%s5765_s14 + $0x30] sm:$0xff]   ;;  %vm8410_vm14 = vmmov %vm8373_vm0 }
 0x5f6   : > { %4708 = vmatprep.mubr.msk.f32.mxu1 %vm8396_vm4, %v7292_v11  ;;  %v5307_v11 = vld [vmem:[%s5765_s14 + $0x78] sm:$0xff]   ;;  %vm8411_vm4 = vmmov %vm8373_vm0 }
 0x5f7   : > { %4546 = vmatpush3.bf16.msra.mxu1 %v5302_v7 }
 0x5f8   : > { %4547 = vmatprep.subr.bf16.mxu1 %v5303_v36 }
 0x5f9   : > { %4709 = vmatmul.mubr.msk.f32.gmra.mrb[42].mxu1 %vm8397_vm12, %v7296_v9  ;;  %v5308_v9 = vld [vmem:[%s5765_s14 + $0x38] sm:$0xff]   ;;  %vm8412_vm12 = vmmov %vm8373_vm0  ;;  %s312_s14 = sand.u32 1, %s5411_s22  }
 0x5fa   : > { %4711 = vmatprep.mubr.msk.f32.mxu1 %vm8398_vm15, %v7300_v37  ;;  %v3494_v37 = vld [vmem:[#allocation2 + $0x40] sm:$0xff]  ;;  %vm8413_vm15 = vmmov %vm8373_vm0  ;;  %s3866_s16 = sshll.u32 %s312_s14, 7  ;;  %s7734_s25 = scalar_lea.sflag [#allocation4], %s312_s14 }
 0x5fb   : > { %4548 = vmatpush3.bf16.msra.mxu1 %v5304_v50  ;;  %v4773_v45 = vpack.c.bf16 %v3495_v8, %v3494_v37  ;;  %s7688_s10 = scalar_lea.vmem [#allocation5], %s3866_s16  ;;  %s5442_s16 = smov [#allocation5]  }
 0x5fc   : > { %4549 = vmatprep.subr.bf16.mxu1 %v5305_v62  ;;  %s3739_s8 = sshll.u32 %s7688_s10, 4  ;;  %s5341_s9 = sshll.u32 %s5442_s16, 4  ;;  %s7726_s8 = int_to_ptr.vmem [resolvable:$true] %s3739_s8  ;;  %s5342_s9 = int_to_ptr.vmem [resolvable:$false] %s5341_s9 }
 0x5fd   : > { %4712 = vmatmul.mubr.msk.f32.gmra.mrb[44].mxu1 %vm8399_vm13, %v7304_v1  ;;  %vm8414_vm13 = vmmov %vm8373_vm0  ;;  %s5337_s18 = scalar_lea.vmem %s7726_s8, 2048  ;;  %s5343_s30 = scalar_lea.vmem %s5342_s9, 4096 }
 0x5fe   : > { %4714 = vmatprep.mubr.msk.f32.mxu1 %vm8400_vm10, %v7308_v53  ;;  %vm8415_vm10 = vmmov %vm8373_vm0  ;;  %p5338_p10 = scmp.ne.s32.totalorder %s7726_s8, %s5337_s18  ;;  %p5344_p5 = scmp.lt.s32.totalorder %s7726_s8, %s5342_s9 }
 0x5ff   : > { %4550 = vmatpush3.bf16.msra.mxu1 %v5306_v10  ;;  %p5345_p6 = scmp.lt.s32.totalorder %s5343_s30, %s5337_s18 }
 0x600   : > { %4551 = vmatprep.subr.bf16.mxu1 %v5307_v11  ;;  %p5339_p0 = pnand %p5338_p10, %p8432_p12 }
 0x601   : > { %4715 = vmatmul.mubr.msk.f32.gmra.mrb[46].mxu1 %vm8401_vm5, %v7311_v43  ;;  %vm8416_vm5 = vmmov %vm8373_vm0  ;;  %p5346_p7 = por %p5345_p6, %p5344_p5 }
 0x602   : > { %p5340_p2 = pneg %p5339_p0 }
 0x603   : > { %4552 = vmatpush3.bf16.msra.mxu1 %v5308_v9 }
 0x604   : > { %4774 = vmatprep.subr.bf16.mxu1 %v4773_v45  ;;  %p5347_p9 = pnand %p5346_p7, %p5340_p2 }
 0x63c   : > { %v3286_v41 = vpop.xlane.xlu0 %3285 }
 0x63d   : > { %5245 = vrcp.f32 %v3286_v41 }
 0x63e   : > { %v3289_v3 = vpop.xlane.xlu1 %3288 }
 0x63f   : > { %5247 = vrcp.f32 %v3289_v3 }
 0x644   : > { %v3292_v1 = vpop.xlane.xlu0 %3291 }
 0x645   : > { %5249 = vrcp.f32 %v3292_v1 }
 0x646   : > { %v3295_v53 = vpop.xlane.xlu1 %3294 }
 0x647   : > { %v5246_v31 = vpop.eup %5245  ;;  %5251 = vrcp.f32 %v3295_v53 }
 0x648   : > { %v3348_v19 = vmul.f32 %v5246_v31, %v7452_v30  ;;  %v3349_v5 = vmul.f32 %v5246_v31, %v7454_v40 }
 0x649   : > { %v5248_v14 = vpop.eup %5247 }
 0x64a   : > { %v3350_v43 = vmul.f32 %v5248_v14, %v7456_v52  ;;  %v3351_v16 = vmul.f32 %v5248_v14, %v7462_v39 }
 0x64c   : > { %v3298_v58 = vpop.xlane.xlu0 %3297  ;;  %v3381_v46 = vpack.c.bf16 %v3351_v16, %v3349_v5  ;;  %v3380_v60 = vpack.c.bf16 %v3350_v43, %v3348_v19 }
 0x64d   : > { %5253 = vrcp.f32 %v3298_v58 }
 0x64e   : > { %3428 = vmatprep.mubr.bf16.mxu1 %v3381_v46 }
 0x64f   : > { %v3301_v57 = vpop.xlane.xlu1 %3300  ;;  %v5250_v23 = vpop.eup %5249  ;;  %3429 = vmatmul.mubr.bf16.vlgmr.msra.gmra.mrb[80].mxu1 %v3380_v60 }
 0x650   : > { %5255 = vrcp.f32 %v3301_v57  ;;  %4776 = vmatpush3.bf16.msra.mxu1 %v4773_v45  ;;  %v3353_v24 = vmul.f32 %v5250_v23, %v7473_v15  ;;  %v3352_v52 = vmul.f32 %v5250_v23, %v7471_v56 }
 0x651   : > { %v5252_v51 = vpop.eup %5251 }
 0x652   : > { %v3355_v30 = vmul.f32 %v5252_v51, %v7481_v27  ;;  %v3354_v40 = vmul.f32 %v5252_v51, %v7475_v29 }
 0x654   : > { %v3304_v39 = vpop.xlane.xlu0 %3303  ;;  %v3383_v47 = vpack.c.bf16 %v3355_v30, %v3353_v24  ;;  %v3382_v18 = vpack.c.bf16 %v3354_v40, %v3352_v52 }
 0x655   : > { %5257 = vrcp.f32 %v3304_v39 }
 0x656   : > { %3436 = vmatprep.mubr.bf16.mxu1 %v3383_v47 }
 0x657   : > { %v3307_v59 = vpop.xlane.xlu1 %3306  ;;  %v5254_v32 = vpop.eup %5253  ;;  %3437 = vmatmul.mubr.bf16.gmra.mrb[84].mxu1 %v3382_v18 }
 0x658   : > { %5259 = vrcp.f32 %v3307_v59  ;;  %v3357_v7 = vmul.f32 %v5254_v32, %v7491_v25  ;;  %v3356_v27 = vmul.f32 %v5254_v32, %v7489_v28 }
 0x65a   : > { %v5256_v54 = vpop.eup %5255 }
 0x65b   : > { %v3359_v15 = vmul.f32 %v5256_v54, %v7499_v12  ;;  %v3358_v56 = vmul.f32 %v5256_v54, %v7493_v20 }
 0x65c   : > { %v3310_v36 = vpop.xlane.xlu0 %3309 }
 0x65d   : > { %v3385_v29 = vpack.c.bf16 %v3359_v15, %v3357_v7  ;;  %v3384_v50 = vpack.c.bf16 %v3358_v56, %v3356_v27  ;;  %5261 = vrcp.f32 %v3310_v36 }
 0x65f   : > { %3444 = vmatprep.mubr.bf16.mxu1 %v3385_v29  ;;  %v3313_v62 = vpop.xlane.xlu1 %3312  ;;  %v5258_v10 = vpop.eup %5257 }
 0x660   : > { %5263 = vrcp.f32 %v3313_v62  ;;  %3445 = vmatmul.mubr.bf16.gmra.mrb[88].mxu1 %v3384_v50  ;;  %v3361_v9 = vmul.f32 %v5258_v10, %v7509_v17  ;;  %v3360_v12 = vmul.f32 %v5258_v10, %v7507_v2 }
 0x662   : > { %v5260_v11 = vpop.eup %5259 }
 0x663   : > { %v3363_v25 = vmul.f32 %v5260_v11, %v7517_v49  ;;  %v3362_v28 = vmul.f32 %v5260_v11, %v7511_v61 }
 0x664   : > { %v3316_v37 = vpop.xlane.xlu0 %3315 }
 0x665   : > { %v3387_v20 = vpack.c.bf16 %v3363_v25, %v3361_v9  ;;  %v3386_v8 = vpack.c.bf16 %v3362_v28, %v3360_v12  ;;  %5265 = vrcp.f32 %v3316_v37 }
 0x667   : > { %3452 = vmatprep.mubr.bf16.mxu1 %v3387_v20  ;;  %v3319_v45 = vpop.xlane.xlu1 %3318  ;;  %v5262_v41 = vpop.eup %5261 }
 0x668   : > { %5267 = vrcp.f32 %v3319_v45  ;;  %3453 = vmatmul.mubr.bf16.gmra.mrb[92].mxu1 %v3386_v8  ;;  %v3365_v1 = vmul.f32 %v5262_v41, %v7527_v42  ;;  %v3364_v49 = vmul.f32 %v5262_v41, %v7525_v26 }
 0x66a   : > { %v5264_v3 = vpop.eup %5263 }
 0x66b   : > { %v3367_v17 = vmul.f32 %v5264_v3, %v7535_v4  ;;  %v3366_v2 = vmul.f32 %v5264_v3, %v7529_v38 }
 0x66c   : > { %v3322_v53 = vpop.xlane.xlu0 %3321 }
 0x66d   : > { %5269 = vrcp.f32 %v3322_v53  ;;  %v3389_v61 = vpack.c.bf16 %v3367_v17, %v3365_v1  ;;  %v3388_v31 = vpack.c.bf16 %v3366_v2, %v3364_v49 }
 0x66f   : > { %v3325_v14 = vpop.xlane.xlu1 %3324  ;;  %3460 = vmatprep.mubr.bf16.mxu1 %v3389_v61  ;;  %v5266_v19 = vpop.eup %5265 }
 0x670   : > { %5271 = vrcp.f32 %v3325_v14  ;;  %3461 = vmatmul.mubr.bf16.gmra.mrb[96].mxu1 %v3388_v31  ;;  %v3369_v5 = vmul.f32 %v5266_v19, %v7545_v34  ;;  %v3368_v4 = vmul.f32 %v5266_v19, %v7543_v22 }
 0x672   : > { %v5268_v43 = vpop.eup %5267 }
 0x673   : > { %v3371_v42 = vmul.f32 %v5268_v43, %v7553_v55  ;;  %v3370_v26 = vmul.f32 %v5268_v43, %v7547_v13 }
 0x674   : > { %v3328_v16 = vpop.xlane.xlu0 %3327 }
 0x675   : > { %5273 = vrcp.f32 %v3328_v16  ;;  %v3391_v38 = vpack.c.bf16 %v3371_v42, %v3369_v5  ;;  %v3390_v58 = vpack.c.bf16 %v3370_v26, %v3368_v4 }
 0x677   : > { %v3331_v46 = vpop.xlane.xlu1 %3330  ;;  %v5270_v60 = vpop.eup %5269  ;;  %3468 = vmatprep.mubr.bf16.mxu1 %v3391_v38 }
 0x678   : > { %5275 = vrcp.f32 %v3331_v46  ;;  %3469 = vmatmul.mubr.bf16.gmra.mrb[100].mxu1 %v3390_v58  ;;  %v3373_v23 = vmul.f32 %v5270_v60, %v7563_v35  ;;  %v3372_v55 = vmul.f32 %v5270_v60, %v7561_v21  ;;  %v3496_v21 = vld [vmem:[#allocation2 + $0x50] sm:$0xff] }
 0x67a   : > { %v5272_v57 = vpop.eup %5271 }
 0x67b   : > { %v3375_v34 = vmul.f32 %v5272_v57, %v7569_v33  ;;  %v3374_v22 = vmul.f32 %v5272_v57, %v7565_v44  ;;  %v3497_v44 = vld [vmem:[#allocation2 + $0x58] sm:$0xff] }
 0x67c   : > { %v4777_v18 = vpack.c.bf16 %v3497_v44, %v3496_v21 }
 0x67d   : > { %v3393_v51 = vpack.c.bf16 %v3375_v34, %v3373_v23  ;;  %v3392_v13 = vpack.c.bf16 %v3374_v22, %v3372_v55  ;;  %v4020_v34 = vld [vmem:[%s7791_s5] ss:$0 sm:$0xff] }
 0x67e   : > { %4778 = vmatprep.subr.bf16.mxu1 %v4777_v18 }
 0x67f   : > { %3476 = vmatprep.mubr.bf16.mxu1 %v3393_v51  ;;  %v5274_v24 = vpop.eup %5273  ;;  %4780 = vmatpush3.bf16.msra.mxu1 %v4777_v18 }
 0x680   : > { %3477 = vmatmul.mubr.bf16.gmra.mrb[104].mxu1 %v3392_v13  ;;  %v3377_v52 = vmul.f32 %v5274_v24, %v7579_v0  ;;  %v3376_v39 = vmul.f32 %v5274_v24, %v7575_v48 }
 0x682   : > { %v5276_v30 = vpop.eup %5275 }
 0x683   : > { %v3379_v40 = vmul.f32 %v5276_v30, %v7585_v63  ;;  %v3378_v35 = vmul.f32 %v5276_v30, %v7581_v6 }
 0x685   : > { %v3395_v47 = vpack.c.bf16 %v3379_v40, %v3377_v52  ;;  %v3394_v33 = vpack.c.bf16 %v3378_v35, %v3376_v39 }
 0x687   : > { %3484 = vmatprep.mubr.bf16.mxu1 %v3395_v47 }
 0x688   : > { %3485 = vmatmul.mubr.bf16.gmra.mrb[108].mxu1 %v3394_v33 }
 0x722   : > { %v4553_v59 = vpop.f32.mrb[80].mxu1 }
 0x723   : > { %v4554_v32 = vpop.f32.mrb[81].mxu1 }
 0x724   : > { %v4555_v54 = vadd.f32 %v4554_v32, %v4553_v59  ;;  %v4556_v7 = vpop.f32.mrb[82].mxu1 }
 0x725   : > { %v4557_v0 = vpop.f32.mrb[83].mxu1 }
 0x726   : > { %v4558_v15 = vadd.f32 %v4557_v0, %v4556_v7  ;;  %4725 = vmatprep.mubr.msk.f32.mxu1 %vm8402_vm3, %v4555_v54  ;;  %vm8417_vm3 = vmmov %vm8373_vm0 }
 0x728   : > { %4726 = vmatmul.mubr.msk.f32.vlgmr.msra.gmra.mrb[32].mxu1 %vm8403_vm1, %v4558_v15  ;;  %vm8418_vm1 = vmmov %vm8373_vm0 }
 0x72a   : > { %v4559_v48 = vpop.f32.mrb[84].mxu1 }
 0x72b   : > { %v4560_v6 = vpop.f32.mrb[85].mxu1 }
 0x72c   : > { %v4561_v63 = vadd.f32 %v4560_v6, %v4559_v48  ;;  %v4562_v27 = vpop.f32.mrb[86].mxu1 }
 0x72d   : > { %v4563_v56 = vpop.f32.mrb[87].mxu1 }
 0x72e   : > { %v4564_v36 = vadd.f32 %v4563_v56, %v4562_v27  ;;  %4728 = vmatprep.mubr.msk.f32.mxu1 %vm8373_vm0, %v4561_v63 }
 0x730   : > { %4729 = vmatmul.mubr.msk.f32.gmra.mrb[34].mxu1 %vm8404_vm9, %v4564_v36  ;;  %vm8419_vm9 = vmmov %vm8373_vm0 }
 0x733   : > { %v4565_v29 = vpop.f32.mrb[88].mxu1 }
 0x734   : > { %v4566_v50 = vpop.f32.mrb[89].mxu1 }
 0x735   : > { %v4567_v62 = vadd.f32 %v4566_v50, %v4565_v29  ;;  %v4568_v10 = vpop.f32.mrb[90].mxu1 }
 0x736   : > { %v4569_v11 = vpop.f32.mrb[91].mxu1 }
 0x737   : > { %v4570_v9 = vadd.f32 %v4569_v11, %v4568_v10  ;;  %4731 = vmatprep.mubr.msk.f32.mxu1 %vm8405_vm11, %v4567_v62  ;;  %vm8420_vm11 = vmmov %vm8373_vm0 }
 0x739   : > { %4732 = vmatmul.mubr.msk.f32.gmra.mrb[36].mxu1 %vm8406_vm6, %v4570_v9  ;;  %vm8421_vm6 = vmmov %vm8373_vm0 }
 0x73b   : > { %v4571_v25 = vpop.f32.mrb[92].mxu1 }
 0x73c   : > { %v4572_v12 = vpop.f32.mrb[93].mxu1 }
 0x73d   : > { %v4573_v28 = vadd.f32 %v4572_v12, %v4571_v25  ;;  %v4574_v37 = vpop.f32.mrb[94].mxu1 }
 0x73e   : > { %v4575_v20 = vpop.f32.mrb[95].mxu1 }
 0x73f   : > { %v4576_v8 = vadd.f32 %v4575_v20, %v4574_v37  ;;  %4734 = vmatprep.mubr.msk.f32.mxu1 %vm8407_vm2, %v4573_v28  ;;  %vm8422_vm2 = vmmov %vm8373_vm0 }
 0x741   : > { %4735 = vmatmul.mubr.msk.f32.gmra.mrb[38].mxu1 %vm8408_vm7, %v4576_v8  ;;  %vm8423_vm7 = vmmov %vm8373_vm0 }
 0x743   : > { %v4577_v45 = vpop.f32.mrb[96].mxu1 }
 0x744   : > { %v4578_v41 = vpop.f32.mrb[97].mxu1 }
 0x745   : > { %v4579_v3 = vadd.f32 %v4578_v41, %v4577_v45  ;;  %v4580_v1 = vpop.f32.mrb[98].mxu1 }
 0x746   : > { %v4581_v17 = vpop.f32.mrb[99].mxu1 }
 0x747   : > { %v4582_v49 = vadd.f32 %v4581_v17, %v4580_v1  ;;  %4737 = vmatprep.mubr.msk.f32.mxu1 %vm8409_vm8, %v4579_v3  ;;  %vm8424_vm8 = vmmov %vm8373_vm0 }
 0x749   : > { %4738 = vmatmul.mubr.msk.f32.gmra.mrb[40].mxu1 %vm8410_vm14, %v4582_v49  ;;  %vm8425_vm14 = vmmov %vm8373_vm0 }
 0x74b   : > { %v4583_v2 = vpop.f32.mrb[100].mxu1 }
 0x74c   : > { %v4584_v53 = vpop.f32.mrb[101].mxu1 }
 0x74d   : > { %v4585_v61 = vadd.f32 %v4584_v53, %v4583_v2  ;;  %v4586_v31 = vpop.f32.mrb[102].mxu1 }
 0x74e   : > { %v4587_v14 = vpop.f32.mrb[103].mxu1 }
 0x74f   : > { %v4588_v19 = vadd.f32 %v4587_v14, %v4586_v31  ;;  %4740 = vmatprep.mubr.msk.f32.mxu1 %vm8411_vm4, %v4585_v61  ;;  %vm8426_vm4 = vmmov %vm8373_vm0 }
 0x751   : > { %4741 = vmatmul.mubr.msk.f32.gmra.mrb[42].mxu1 %vm8412_vm12, %v4588_v19  ;;  %vm8427_vm12 = vmmov %vm8373_vm0 }
 0x753   : > { %v4589_v43 = vpop.f32.mrb[104].mxu1 }
 0x754   : > { %v4590_v5 = vpop.f32.mrb[105].mxu1 }
 0x755   : > { %v4591_v42 = vadd.f32 %v4590_v5, %v4589_v43  ;;  %v4592_v4 = vpop.f32.mrb[106].mxu1 }
 0x756   : > { %v4593_v26 = vpop.f32.mrb[107].mxu1 }
 0x757   : > { %v4594_v16 = vadd.f32 %v4593_v26, %v4592_v4  ;;  %4743 = vmatprep.mubr.msk.f32.mxu1 %vm8413_vm15, %v4591_v42  ;;  %vm8428_vm15 = vmmov %vm8373_vm0 }
 0x759   : > { %4744 = vmatmul.mubr.msk.f32.gmra.mrb[44].mxu1 %vm8414_vm13, %v4594_v16  ;;  %vm8429_vm13 = vmmov %vm8373_vm0 }
 0x75b   : > { %v4595_v38 = vpop.f32.mrb[108].mxu1 }
 0x75c   : > { %v4596_v58 = vpop.f32.mrb[109].mxu1 }
 0x75d   : > { %v4597_v46 = vadd.f32 %v4596_v58, %v4595_v38  ;;  %v4598_v60 = vpop.f32.mrb[110].mxu1 }
 0x75e   : > { %v4599_v57 = vpop.f32.mrb[111].mxu1 }
 0x75f   : > { %v4600_v23 = vadd.f32 %v4599_v57, %v4598_v60  ;;  %4746 = vmatprep.mubr.msk.f32.mxu1 %vm8415_vm10, %v4597_v46  ;;  %vm8430_vm10 = vmmov %vm8373_vm0 }
 0x761   : > { %4747 = vmatmul.mubr.msk.f32.gmra.mrb[46].mxu1 %vm8416_vm5, %v4600_v23  ;;  %vm8431_vm5 = vmmov %vm8373_vm0 }
 0x7fb   : > { %v4727_v55 = vpop.f32.mrb[32].mxu1 }
 0x7fc   : > { %v4781_v22 = vadd.f32 %v4727_v55, %v4020_v34  ;;  %v3612_v51 = vpop.f32.mrb[33].mxu1 }
 0x7fd   : > { %v4782_v13 = vadd.f32 %v4020_v34, %v3612_v51 }
 0x7fe   : > { %3708 = vst.msk [vmem:[%s7688_s10 + $0x8] sm:$0xff] %vm8417_vm3, %v4781_v22 }
 0x7ff   : > { %3707 = vst.msk [vmem:[%s7688_s10] sm:$0xff] %vm8418_vm1, %v4782_v13 }
 0x803   : > { %v4730_v24 = vpop.f32.mrb[34].mxu1 }
 0x804   : > { %v4783_v30 = vadd.f32 %v4730_v24, %v4020_v34  ;;  %v3622_v52 = vpop.f32.mrb[35].mxu1 }
 0x805   : > { %v4784_v40 = vadd.f32 %v4020_v34, %v3622_v52 }
 0x806   : > { %3710 = vst.msk [vmem:[%s7688_s10 + $0x18] sm:$0xff] %vm8373_vm0, %v4783_v30 }
 0x807   : > { %3709 = vst.msk [vmem:[%s7688_s10 + $0x10] sm:$0xff] %vm8419_vm9, %v4784_v40 }
 0x80c   : > { %v4733_v39 = vpop.f32.mrb[36].mxu1 }
 0x80d   : > { %v4785_v35 = vadd.f32 %v4733_v39, %v4020_v34  ;;  %v3632_v47 = vpop.f32.mrb[37].mxu1 }
 0x80e   : > { %v4786_v33 = vadd.f32 %v4020_v34, %v3632_v47 }
 0x80f   : > { %3712 = vst.msk [vmem:[%s7688_s10 + $0x28] sm:$0xff] %vm8420_vm11, %v4785_v35 }
 0x810   : > { %3711 = vst.msk [vmem:[%s7688_s10 + $0x20] sm:$0xff] %vm8421_vm6, %v4786_v33 }
 0x814   : > { %v4736_v21 = vpop.f32.mrb[38].mxu1 }
 0x815   : > { %v4787_v44 = vadd.f32 %v4736_v21, %v4020_v34  ;;  %v3642_v18 = vpop.f32.mrb[39].mxu1 }
 0x816   : > { %v4788_v59 = vadd.f32 %v4020_v34, %v3642_v18 }
 0x817   : > { %3714 = vst.msk [vmem:[%s7688_s10 + $0x38] sm:$0xff] %vm8422_vm2, %v4787_v44 }
 0x818   : > { %3713 = vst.msk [vmem:[%s7688_s10 + $0x30] sm:$0xff] %vm8423_vm7, %v4788_v59 }
 0x81c   : > { %v4739_v32 = vpop.f32.mrb[40].mxu1 }
 0x81d   : > { %v4789_v54 = vadd.f32 %v4739_v32, %v4020_v34  ;;  %v3652_v7 = vpop.f32.mrb[41].mxu1 }
 0x81e   : > { %v4790_v0 = vadd.f32 %v4020_v34, %v3652_v7 }
 0x81f   : > { %3716 = vst.msk [vmem:[%s7688_s10 + $0x48] sm:$0xff] %vm8424_vm8, %v4789_v54 }
 0x820   : > { %3715 = vst.msk [vmem:[%s7688_s10 + $0x40] sm:$0xff] %vm8425_vm14, %v4790_v0 }
 0x824   : > { %v4742_v15 = vpop.f32.mrb[42].mxu1 }
 0x825   : > { %v4791_v48 = vadd.f32 %v4742_v15, %v4020_v34  ;;  %v3662_v6 = vpop.f32.mrb[43].mxu1 }
 0x826   : > { %v4792_v63 = vadd.f32 %v4020_v34, %v3662_v6 }
 0x827   : > { %3718 = vst.msk [vmem:[%s7688_s10 + $0x58] sm:$0xff] %vm8426_vm4, %v4791_v48 }
 0x828   : > { %3717 = vst.msk [vmem:[%s7688_s10 + $0x50] sm:$0xff] %vm8427_vm12, %v4792_v63 }
 0x82c   : > { %v4745_v27 = vpop.f32.mrb[44].mxu1 }
 0x82d   : > { %v4793_v56 = vadd.f32 %v4745_v27, %v4020_v34  ;;  %v3672_v36 = vpop.f32.mrb[45].mxu1 }
 0x82e   : > { %v4794_v29 = vadd.f32 %v4020_v34, %v3672_v36 }
 0x82f   : > { %3720 = vst.msk [vmem:[%s7688_s10 + $0x68] sm:$0xff] %vm8428_vm15, %v4793_v56 }
 0x830   : > { %3719 = vst.msk [vmem:[%s7688_s10 + $0x60] sm:$0xff] %vm8429_vm13, %v4794_v29 }
 0x834   : > { %v4748_v50 = vpop.f32.mrb[46].mxu1 }
 0x835   : > { %v4795_v62 = vadd.f32 %v4748_v50, %v4020_v34  ;;  %v3682_v10 = vpop.f32.mrb[47].mxu1 }
 0x836   : > { %v4796_v11 = vadd.f32 %v4020_v34, %v3682_v10 }
 0x837   : > { %3722 = vst.msk [vmem:[%s7688_s10 + $0x78] sm:$0xff] %vm8430_vm10, %v4795_v62 }
 0x838   : > { %3721 = vst.msk [vmem:[%s7688_s10 + $0x70] sm:$0xff] %vm8431_vm5, %v4796_v11 }
 0x839   : > { %5350 = shalt.err (!%p5347_p9)
}
 0x83a   : > { %s5351_s14 = scalar_lea.hbm %s7724_s15, 2048  ;;  %s5355_s24 = scalar_lea.hbm %s7792_s6, 8192 }
 0x83b   : > { %p5352_p11 = scmp.ne.s32.totalorder %s7724_s15, %s5351_s14  ;;  %p5356_p4 = scmp.lt.u32.totalorder %s7724_s15, %s7792_s6 }
 0x83c   : > { %p5357_p3 = scmp.lt.u32.totalorder %s5355_s24, %s5351_s14  ;;  %p5359_p10 = scmp.lt.u32.totalorder %s5351_s14, %s7724_s15 }
 0x83d   : > { %p5353_p13 = pnand %p5352_p11, %p8432_p12 }
 0x83e   : > { %p5358_p8 = por %p5357_p3, %p5356_p4 }
 0x83f   : > { %p5354_p1 = pneg %p5353_p13 }
 0x840   : > { %p5360_p0 = por %p5359_p10, %p5358_p8 }
 0x842   : > { %p5361_p2 = pnand %p5360_p0, %p5354_p1 }
 0x844   : > { %5364 = shalt.err (!%p5361_p2)
}
 0x845   : > { %s5443_s19 = smov 128   ;;  %s5444_s18 = smov 8  }
 0x846   : > { %4865 = dma.vmem_to_hbm [thread:$0]  (%p8432_p12), %s7726_s8, 2048, %s7724_s15, %s7734_s25, %s5443_s19, %s5443_s19, %s5444_s18  }
 0x847 PF: > { %p4877_p5 = scmp.ge.s32.totalorder %s5435_s28, 2  ;;  %s3754_s16 = sand.u32 1, %s5407_s21  }
 0x848   : > { %p8433_p6 = scmp.ne.s32.totalorder %s7988_s12, 0  ;;  %s3755_s9 = scalar_lea.sflag [#allocation4], %s3754_s16 }
 0x84a   : > { %p4872_p7 = pnand %p4877_p5, %p8433_p6 }
 0x84c   : > { %5402 = dma.done.wait (!%p4872_p7), %s3755_s9, 2048  }
 0x84d   : > { %5404 = vsyncadd (!%p4872_p7), %s3755_s9, 4294965248  ;;  %s20_s28 = sadd.s32 1, %s5435_s28   ;;  %s8434_s11 = sld [smem:[#allocation8_spill]] }
 0x84e   : > { %p17_p9 = scmp.ge.s32.totalorder %s20_s28, 6   ;;  %s8435_s21 = smov %s5411_s22 }
 0x84f   : > { %s8436_s22 = smov %s5415_s23  ;;  %s8437_s23 = smov %s5559_s17 }
 0x850   : > { %s8438_s24 = smov %s5427_s26  ;;  %s8439_s25 = smov %s5431_s27 }
 0x851   : > { %s8440_s26 = smov %s8443_s7  ;;  %19 = sbr.rel (!%p17_p9) target bundleno = 6 (0x6), region = 93 }
 0x853   : > { %s8441_s27 = smov %s8434_s11 }
 0x858   :  { %3760 = vsyncpa [#allocation3], 1 }
 0x859   :  { %3762 = vsyncpa [#allocation3 + $0x1], 1 }
 0x85a   :  { %3763 = vsyncpa [#allocation4], 1 }
 0x85b   :  { %3765 = vsyncpa [#allocation4 + $0x1], 1 }

</bundles_post_ra>
